<compile_context>
chip_gen: v5e
topology: v5e:2x2
jax: 0.10.0
libtpu: 0.0.40
codegen_flags: <defaults>
</compile_context>

<pallas_src>
import functools

import numpy as np
import jax
import jax.numpy as jnp
from jax.experimental import pallas as pl
from jax.experimental.pallas import tpu as pltpu

EPS = 1e-5

# bf16 matmul operands / f32 accumulation.  Flip to jnp.float32 for bit-closer
# parity with PyTorch (slower MXU path).
_MXU_DTYPE = jnp.bfloat16

# (kind, Cin, Cout, K, stride, padding, output_padding)
_LAYER_CFG = (
    ("conv",  1, 16, 5, 2, 16, 0),
    ("conv", 16, 32, 5, 2,  2, 0),
    ("conv", 32, 64, 5, 2,  2, 0),
    ("convT", 64, 32, 5, 2, 2, 1),
    ("convT", 32, 16, 5, 2, 2, 1),
    ("convT", 16,  1, 5, 2, 16, 1),
)


def _layer_plan(l_in):
    """Static per-layer plan: (kind, cin, cout, K, stride, pad, opad, Lin, Lout)."""
    plan = []
    l = l_in
    for kind, cin, cout, k, s, p, op in _LAYER_CFG:
        if kind == "conv":
            l_out = (l + 2 * p - k) // s + 1
        else:
            l_out = (l - 1) * s - 2 * p + k + op
        plan.append((kind, cin, cout, k, s, p, op, l, l_out))
        l = l_out
    return tuple(plan)


def _build_selection_mats(n_batch, plan):
    """Host-side 0/1 selection matrices, block-diagonal over the stacked batch.

    For layer l, returns float32 G of shape (K, N*Lout, N*Lin) with
      conv :  G[k, n*Lout+j, n*Lin+i] = 1  iff  i == stride*j + k - pad
      convT:  G[k, n*Lout+j, n*Lin+i] = 1  iff  j == stride*i + k - pad
    They encode stride / padding / cropping / zero-dilation, so the channel
    matmul never touches structural zeros.
    """
    mats = []
    for kind, _cin, _cout, kw, stride, pad, _opad, l_in, l_out in plan:
        nlin, nlout = n_batch * l_in, n_batch * l_out
        g = np.zeros((kw, nlout, nlin), np.float32)
        for k in range(kw):
            for n in range(n_batch):
                for j in range(l_out):
                    if kind == "conv":
                        i = stride * j + k - pad
                    else:
                        num = j + pad - k
                        if num % stride != 0:
                            continue
                        i = num // stride
                    if 0 <= i < l_in:
                        g[k, n * l_out + j, n * l_in + i] = 1.0
        mats.append(g)
    return mats


# ----------------------------------------------------------------------------
# Single fused Pallas kernel for the whole forward pass
# ----------------------------------------------------------------------------
def _make_fused_kernel(n_batch, plan):
    n_layers = len(plan)

    def kernel(*refs):
        x_ref = refs[0]
        g_refs = refs[1:1 + n_layers]                  # selection matrices (bf16)
        w_refs = refs[1 + n_layers:1 + 2 * n_layers]   # tap-concat / special weights
        gb_ref = refs[1 + 2 * n_layers]                # (n_layers, 2, 128) gamma/beta
        o_ref = refs[1 + 2 * n_layers + 1]

        x = x_ref[...]                                 # (N*L0, 1) f32, batch-stacked
        for li, (kind, cin, cout, kw, _s, _p, _op, l_in, l_out) in enumerate(plan):
            nlin = n_batch * l_in
            nlout = n_batch * l_out
            last = li == n_layers - 1

            if last:
                # Cout == 1 decoder head: gather-first with ONE stacked selection
                # matmul; the 16->1 channel contraction runs on the VPU/XLU
                # (avoids 1-lane MXU results).
                z_all = jnp.dot(g_refs[li][...], x.astype(_MXU_DTYPE),
                                preferred_element_type=jnp.float32)   # (K*NLout, Cin)
                w_l = w_refs[li][...]                                  # (K, Cin) f32
                y = None
                for k in range(kw):
                    part = (z_all[k * nlout:(k + 1) * nlout, :] * w_l[k:k + 1, :]
                            ).sum(axis=1, keepdims=True)               # (NLout, 1)
                    y = part if y is None else y + part
            else:
                if cin == 1:
                    # (N*Lin,1) x (1,K*Cout): VPU broadcast — no K=1 matmul.
                    z_cat = x * w_refs[li][...]
                else:
                    # One tap-concatenated channel matmul per layer.
                    z_cat = jnp.dot(x.astype(_MXU_DTYPE), w_refs[li][...],
                                    preferred_element_type=jnp.float32)
                zb = z_cat.astype(_MXU_DTYPE)           # (N*Lin, K*Cout)
                y = None
                for k in range(kw):
                    # Per-tap lane slice (Cout divides 128 => stays inside a vreg),
                    # bf16 selection matmul = pure gather/route on the MXU.
                    t = jnp.dot(g_refs[li][k], zb[:, k * cout:(k + 1) * cout],
                                preferred_element_type=jnp.float32)
                    y = t if y is None else y + t       # (N*Lout, Cout) f32

            # Train-mode BatchNorm1d + ReLU.  Conv bias omitted: the batch-mean
            # subtraction cancels a per-channel pre-BN bias exactly.
            gb = gb_ref[li]                             # (2, 128) f32
            gamma = gb[0:1, 0:cout]
            beta = gb[1:2, 0:cout]
            inv_cnt = 1.0 / float(nlout)                # real row count, no padding
            s1 = y.sum(axis=0, keepdims=True)
            s2 = (y * y).sum(axis=0, keepdims=True)
            mean = s1 * inv_cnt
            var = jnp.maximum(s2 * inv_cnt - mean * mean, 0.0)
            scale = gamma * jax.lax.rsqrt(var + EPS)
            shift = beta - mean * scale
            x = jnp.maximum(y * scale + shift, 0.0)     # (N*Lout, Cout) f32

        o_ref[...] = x                                  # (N*L_final, 1)

    return kernel


def _cost_estimate(n_batch, plan):
    flops = 0
    transcendentals = 0
    bytes_accessed = 0
    n_layers = len(plan)
    for li, (_kind, cin, cout, kw, _s, _p, _op, l_in, l_out) in enumerate(plan):
        nlin, nlout = n_batch * l_in, n_batch * l_out
        if li == n_layers - 1:
            flops += 2 * kw * nlout * nlin * cin        # stacked gather matmul
            flops += 3 * kw * nlout * cin               # VPU mult + lane reduce
        else:
            flops += 2 * nlin * cin * kw * cout         # channel matmul
            flops += 2 * kw * nlout * nlin * cout       # selection matmuls
        flops += 10 * nlout * cout                      # BN + ReLU vector work
        transcendentals += cout                         # rsqrt per channel
        bytes_accessed += 2 * kw * nlout * nlin + 2 * kw * cin * cout + 4 * 2 * 128
    bytes_accessed += 4 * (n_batch * plan[0][7] + n_batch * plan[-1][8])
    return pl.CostEstimate(flops=flops, transcendentals=transcendentals,
                           bytes_accessed=bytes_accessed)


# ----------------------------------------------------------------------------
# Model wrapper
# ----------------------------------------------------------------------------
def auto_enc_small_forward(x, params):
    """x: (N, 1, L) in PyTorch NCW layout. Returns (N, 1, L_final)."""
    n_batch, c_in, l_in = x.shape
    assert c_in == 1
    plan = _layer_plan(l_in)
    n_layers = len(plan)
    l_final = plan[-1][8]

    # NCW -> batch-stacked channels-last column (exact free reshape since C==1).
    x_col = x.astype(jnp.float32).reshape(n_batch * l_in, 1)

    # Host-precomputed selection matrices (trace-time constants), bf16.
    g_in = []
    for li, g in enumerate(_build_selection_mats(n_batch, plan)):
        if li == n_layers - 1:
            g = g.reshape(-1, g.shape[-1])          # (K*NLout, NLin) gather-first stack
        g_in.append(jnp.asarray(g, dtype=_MXU_DTYPE))

    # Tap-concatenated weights (Cin, K*Cout), pre-cast for the MXU.
    w_in = []
    for li, ((kind, cin, cout, kw, *_), p) in enumerate(zip(_LAYER_CFG, params)):
        w = p["w"].astype(jnp.float32)
        if li == n_layers - 1:
            # Final convT (Cout=1): per-tap channel rows for the VPU contraction.
            w_in.append(jnp.transpose(w[:, 0, :], (1, 0)))            # (K, Cin) f32
        elif kind == "conv":
            wcat = jnp.transpose(w, (1, 2, 0)).reshape(cin, kw * cout)  # w[co,ci,k]
            w_in.append(wcat if cin == 1 else wcat.astype(_MXU_DTYPE))
        else:
            wcat = jnp.transpose(w, (0, 2, 1)).reshape(cin, kw * cout)  # w[ci,co,k]
            w_in.append(wcat.astype(_MXU_DTYPE))
        # p["b"] intentionally NOT passed: cancelled exactly by train-mode BN.

    # gamma/beta for all layers coalesced into ONE lane-padded operand.
    rows = []
    for (_kind, _cin, cout, *_), p in zip(_LAYER_CFG, params):
        g_pad = jnp.zeros((128,), jnp.float32).at[:cout].set(p["gamma"].astype(jnp.float32))
        b_pad = jnp.zeros((128,), jnp.float32).at[:cout].set(p["beta"].astype(jnp.float32))
        rows.append(jnp.stack([g_pad, b_pad], axis=0))
    gb = jnp.stack(rows, axis=0)                       # (n_layers, 2, 128) f32

    inputs = [x_col] + g_in + w_in + [gb]

    out_col = pl.pallas_call(
        _make_fused_kernel(n_batch, plan),
        out_shape=jax.ShapeDtypeStruct((n_batch * l_final, 1), jnp.float32),
        in_specs=[pl.BlockSpec(memory_space=pltpu.MemorySpace.VMEM)] * len(inputs),
        out_specs=pl.BlockSpec(memory_space=pltpu.MemorySpace.VMEM),
        cost_estimate=_cost_estimate(n_batch, plan),
    )(*inputs)

    # batch-stacked column -> NCW (C==1 => exact free reshape).
    return out_col.reshape(n_batch, 1, l_final)


def init_params(key):
    params = []
    for kind, cin, cout, k, *_ in _LAYER_CFG:
        key, k_w, k_b, k_g, k_beta = jax.random.split(key, 5)
        if kind == "conv":
            w_shape = (cout, cin, k)
            fan_in = cin * k
        else:
            w_shape = (cin, cout, k)
            fan_in = cout * k
        bound = 1.0 / jnp.sqrt(jnp.float32(fan_in))
        w = jax.random.uniform(k_w, w_shape, jnp.float32, -bound, bound)
        # Bias kept for parameter parity with the PyTorch module, but unused:
        # train-mode BatchNorm's mean subtraction cancels a pre-BN channel bias.
        b = jax.random.uniform(k_b, (cout,), jnp.float32, -bound, bound)
        gamma = 1.0 + 0.1 * jax.random.normal(k_g, (cout,), jnp.float32)
        beta = 0.1 * jax.random.normal(k_beta, (cout,), jnp.float32)
        params.append({"w": w, "b": b, "gamma": gamma, "beta": beta})
    return params


# ----------------------------------------------------------------------------
# Independent numpy reference (float64, direct conv / convT definition,
# WITH conv bias, train-mode BatchNorm).  Used only for a sanity check.
# ----------------------------------------------------------------------------
def _reference_forward_np(x, params):
    a = np.asarray(x, np.float64)
    for (kind, _cin, cout, kw, stride, pad, opad), p in zip(_LAYER_CFG, params):
        w = np.asarray(p["w"], np.float64)
        b = np.asarray(p["b"], np.float64)
        gamma = np.asarray(p["gamma"], np.float64)
        beta = np.asarray(p["beta"], np.float64)
        n, _, l_in = a.shape
        if kind == "conv":
            l_out = (l_in + 2 * pad - kw) // stride + 1
            y = np.zeros((n, cout, l_out))
            for j in range(l_out):
                for k in range(kw):
                    i = stride * j + k - pad
                    if 0 <= i < l_in:
                        y[:, :, j] += a[:, :, i] @ w[:, :, k].T
        else:
            l_out = (l_in - 1) * stride - 2 * pad + kw + opad
            y = np.zeros((n, cout, l_out))
            for i in range(l_in):
                for k in range(kw):
                    j = stride * i + k - pad
                    if 0 <= j < l_out:
                        y[:, :, j] += a[:, :, i] @ w[:, :, k]
        y += b[None, :, None]
        mean = y.mean(axis=(0, 2), keepdims=True)
        var = y.var(axis=(0, 2), keepdims=True)        # biased, like PyTorch train BN
        y = (y - mean) / np.sqrt(var + EPS) * gamma[None, :, None] + beta[None, :, None]
        a = np.maximum(y, 0.0)
    return a


if __name__ == "__main__":
    key = jax.random.PRNGKey(0)
    k_params, k_x = jax.random.split(key)
    params = init_params(k_params)
    # Small input consistent with the module: batch=2, 1 channel, length=64.
    x = jax.random.normal(k_x, (2, 1, 64), jnp.float32)

    fwd = jax.jit(functools.partial(auto_enc_small_forward, params=params))
    out = fwd(x)
    jax.block_until_ready(out)

    # L=64 -> 46 -> 23 -> 12 -> 24 -> 48 -> 68
    assert out.shape == (2, 1, 68), out.shape
    assert bool(jnp.all(jnp.isfinite(out)))
    assert bool(jnp.all(out >= 0.0))  # final ReLU

    # Sanity check vs. an independent f64 reference.  Loose tolerance only
    # accounts for the kernel's bf16 MXU path (a few % after 6 BN layers);
    # any structural bug would produce O(1) errors and fail this.
    ref = _reference_forward_np(np.asarray(x, np.float64), params)
    diff = np.asarray(out, np.float64) - ref
    rms_diff = float(np.sqrt(np.mean(diff * diff)))
    rms_ref = float(np.sqrt(np.mean(ref * ref)))
    assert rms_diff < 0.2 * max(rms_ref, 0.5), (rms_diff, rms_ref)

    print("KERNEL_OK")
</pallas_src>

<mosaic_0001>
module attributes {stable_mosaic.version = 11 : i64} {
  func.func @kernel(%arg0: memref<128x1xf32, #tpu.memory_space<vmem>>, %arg1: memref<5x92x128xbf16, #tpu.memory_space<vmem>>, %arg2: memref<5x46x92xbf16, #tpu.memory_space<vmem>>, %arg3: memref<5x24x46xbf16, #tpu.memory_space<vmem>>, %arg4: memref<5x48x24xbf16, #tpu.memory_space<vmem>>, %arg5: memref<5x96x48xbf16, #tpu.memory_space<vmem>>, %arg6: memref<680x96xbf16, #tpu.memory_space<vmem>>, %arg7: memref<1x80xf32, #tpu.memory_space<vmem>>, %arg8: memref<16x160xbf16, #tpu.memory_space<vmem>>, %arg9: memref<32x320xbf16, #tpu.memory_space<vmem>>, %arg10: memref<64x160xbf16, #tpu.memory_space<vmem>>, %arg11: memref<32x80xbf16, #tpu.memory_space<vmem>>, %arg12: memref<5x16xf32, #tpu.memory_space<vmem>>, %arg13: memref<6x2x128xf32, #tpu.memory_space<vmem>>, %arg14: memref<136x1xf32, #tpu.memory_space<vmem>>) attributes {dimension_semantics = [], scalar_prefetch = 0 : i64, scratch_operands = 0 : i64, tpu.core_type = #tpu.core_type<tc>} {
    %c0 = arith.constant 0 : index
    %c0_0 = arith.constant 0 : index
    %0 = vector.load %arg0[%c0, %c0_0] : memref<128x1xf32, #tpu.memory_space<vmem>>, vector<128x1xf32>
    %c0_1 = arith.constant 0 : index
    %c0_2 = arith.constant 0 : index
    %1 = vector.load %arg7[%c0_1, %c0_2] : memref<1x80xf32, #tpu.memory_space<vmem>>, vector<1x80xf32>
    %2 = vector.broadcast %0 : vector<128x1xf32> to vector<128x80xf32>
    %3 = vector.broadcast %1 : vector<1x80xf32> to vector<128x80xf32>
    %4 = arith.mulf %2, %3 : vector<128x80xf32>
    %5 = arith.truncf %4 : vector<128x80xf32> to vector<128x80xbf16>
    %c0_3 = arith.constant 0 : index
    %c0_4 = arith.constant 0 : index
    %c0_5 = arith.constant 0 : index
    %6 = vector.load %arg1[%c0_3, %c0_4, %c0_5] : memref<5x92x128xbf16, #tpu.memory_space<vmem>>, vector<1x92x128xbf16>
    %7 = vector.shape_cast %6 : vector<1x92x128xbf16> to vector<92x128xbf16>
    %8 = vector.extract_strided_slice %5 {offsets = [0, 0], sizes = [128, 16], strides = [1, 1]} : vector<128x80xbf16> to vector<128x16xbf16>
    %cst = arith.constant dense<0.000000e+00> : vector<92x16xf32>
    %9 = tpu.matmul %7, %8, %cst {dimension_numbers = #tpu.dot_dimension_numbers<[1], [0], [0], [1], [0, 0, 1, 1], [], []>} : vector<92x128xbf16>, vector<128x16xbf16>, vector<92x16xf32> -> vector<92x16xf32>
    %c1 = arith.constant 1 : index
    %c0_6 = arith.constant 0 : index
    %c0_7 = arith.constant 0 : index
    %10 = vector.load %arg1[%c1, %c0_6, %c0_7] : memref<5x92x128xbf16, #tpu.memory_space<vmem>>, vector<1x92x128xbf16>
    %11 = vector.shape_cast %10 : vector<1x92x128xbf16> to vector<92x128xbf16>
    %12 = vector.extract_strided_slice %5 {offsets = [0, 16], sizes = [128, 16], strides = [1, 1]} : vector<128x80xbf16> to vector<128x16xbf16>
    %cst_8 = arith.constant dense<0.000000e+00> : vector<92x16xf32>
    %13 = tpu.matmul %11, %12, %cst_8 {dimension_numbers = #tpu.dot_dimension_numbers<[1], [0], [0], [1], [0, 0, 1, 1], [], []>} : vector<92x128xbf16>, vector<128x16xbf16>, vector<92x16xf32> -> vector<92x16xf32>
    %14 = arith.addf %9, %13 : vector<92x16xf32>
    %c2 = arith.constant 2 : index
    %c0_9 = arith.constant 0 : index
    %c0_10 = arith.constant 0 : index
    %15 = vector.load %arg1[%c2, %c0_9, %c0_10] : memref<5x92x128xbf16, #tpu.memory_space<vmem>>, vector<1x92x128xbf16>
    %16 = vector.shape_cast %15 : vector<1x92x128xbf16> to vector<92x128xbf16>
    %17 = vector.extract_strided_slice %5 {offsets = [0, 32], sizes = [128, 16], strides = [1, 1]} : vector<128x80xbf16> to vector<128x16xbf16>
    %cst_11 = arith.constant dense<0.000000e+00> : vector<92x16xf32>
    %18 = tpu.matmul %16, %17, %cst_11 {dimension_numbers = #tpu.dot_dimension_numbers<[1], [0], [0], [1], [0, 0, 1, 1], [], []>} : vector<92x128xbf16>, vector<128x16xbf16>, vector<92x16xf32> -> vector<92x16xf32>
    %19 = arith.addf %14, %18 : vector<92x16xf32>
    %c3 = arith.constant 3 : index
    %c0_12 = arith.constant 0 : index
    %c0_13 = arith.constant 0 : index
    %20 = vector.load %arg1[%c3, %c0_12, %c0_13] : memref<5x92x128xbf16, #tpu.memory_space<vmem>>, vector<1x92x128xbf16>
    %21 = vector.shape_cast %20 : vector<1x92x128xbf16> to vector<92x128xbf16>
    %22 = vector.extract_strided_slice %5 {offsets = [0, 48], sizes = [128, 16], strides = [1, 1]} : vector<128x80xbf16> to vector<128x16xbf16>
    %cst_14 = arith.constant dense<0.000000e+00> : vector<92x16xf32>
    %23 = tpu.matmul %21, %22, %cst_14 {dimension_numbers = #tpu.dot_dimension_numbers<[1], [0], [0], [1], [0, 0, 1, 1], [], []>} : vector<92x128xbf16>, vector<128x16xbf16>, vector<92x16xf32> -> vector<92x16xf32>
    %24 = arith.addf %19, %23 : vector<92x16xf32>
    %c4 = arith.constant 4 : index
    %c0_15 = arith.constant 0 : index
    %c0_16 = arith.constant 0 : index
    %25 = vector.load %arg1[%c4, %c0_15, %c0_16] : memref<5x92x128xbf16, #tpu.memory_space<vmem>>, vector<1x92x128xbf16>
    %26 = vector.shape_cast %25 : vector<1x92x128xbf16> to vector<92x128xbf16>
    %27 = vector.extract_strided_slice %5 {offsets = [0, 64], sizes = [128, 16], strides = [1, 1]} : vector<128x80xbf16> to vector<128x16xbf16>
    %cst_17 = arith.constant dense<0.000000e+00> : vector<92x16xf32>
    %28 = tpu.matmul %26, %27, %cst_17 {dimension_numbers = #tpu.dot_dimension_numbers<[1], [0], [0], [1], [0, 0, 1, 1], [], []>} : vector<92x128xbf16>, vector<128x16xbf16>, vector<92x16xf32> -> vector<92x16xf32>
    %29 = arith.addf %24, %28 : vector<92x16xf32>
    %c0_18 = arith.constant 0 : index
    %c0_19 = arith.constant 0 : index
    %c0_20 = arith.constant 0 : index
    %30 = vector.load %arg13[%c0_18, %c0_19, %c0_20] : memref<6x2x128xf32, #tpu.memory_space<vmem>>, vector<1x2x128xf32>
    %31 = vector.shape_cast %30 : vector<1x2x128xf32> to vector<2x128xf32>
    %32 = vector.extract_strided_slice %31 {offsets = [0, 0], sizes = [1, 16], strides = [1, 1]} : vector<2x128xf32> to vector<1x16xf32>
    %33 = vector.extract_strided_slice %31 {offsets = [1, 0], sizes = [1, 16], strides = [1, 1]} : vector<2x128xf32> to vector<1x16xf32>
    %cst_21 = arith.constant dense<0.000000e+00> : vector<16xf32>
    %34 = vector.multi_reduction <add>, %29, %cst_21 [0] : vector<92x16xf32> to vector<16xf32>
    %35 = vector.shape_cast %34 : vector<16xf32> to vector<1x16xf32>
    %36 = arith.mulf %29, %29 : vector<92x16xf32>
    %cst_22 = arith.constant dense<0.000000e+00> : vector<16xf32>
    %37 = vector.multi_reduction <add>, %36, %cst_22 [0] : vector<92x16xf32> to vector<16xf32>
    %38 = vector.shape_cast %37 : vector<16xf32> to vector<1x16xf32>
    %cst_23 = arith.constant 0.0108695654 : f32
    %39 = vector.broadcast %cst_23 : f32 to vector<1x16xf32>
    %40 = arith.mulf %35, %39 : vector<1x16xf32>
    %cst_24 = arith.constant 0.0108695654 : f32
    %41 = vector.broadcast %cst_24 : f32 to vector<1x16xf32>
    %42 = arith.mulf %38, %41 : vector<1x16xf32>
    %43 = arith.mulf %40, %40 : vector<1x16xf32>
    %44 = arith.subf %42, %43 : vector<1x16xf32>
    %cst_25 = arith.constant 0.000000e+00 : f32
    %45 = vector.broadcast %cst_25 : f32 to vector<1x16xf32>
    %46 = arith.maximumf %44, %45 : vector<1x16xf32>
    %cst_26 = arith.constant 9.99999974E-6 : f32
    %47 = vector.broadcast %cst_26 : f32 to vector<1x16xf32>
    %48 = arith.addf %46, %47 : vector<1x16xf32>
    %49 = math.rsqrt %48 : vector<1x16xf32>
    %50 = arith.mulf %32, %49 : vector<1x16xf32>
    %51 = arith.mulf %40, %50 : vector<1x16xf32>
    %52 = arith.subf %33, %51 : vector<1x16xf32>
    %53 = vector.broadcast %50 : vector<1x16xf32> to vector<92x16xf32>
    %54 = arith.mulf %29, %53 : vector<92x16xf32>
    %55 = vector.broadcast %52 : vector<1x16xf32> to vector<92x16xf32>
    %56 = arith.addf %54, %55 : vector<92x16xf32>
    %cst_27 = arith.constant 0.000000e+00 : f32
    %57 = vector.broadcast %cst_27 : f32 to vector<92x16xf32>
    %58 = arith.maximumf %56, %57 : vector<92x16xf32>
    %59 = arith.truncf %58 : vector<92x16xf32> to vector<92x16xbf16>
    %c0_28 = arith.constant 0 : index
    %c0_29 = arith.constant 0 : index
    %60 = vector.load %arg8[%c0_28, %c0_29] : memref<16x160xbf16, #tpu.memory_space<vmem>>, vector<16x160xbf16>
    %cst_30 = arith.constant dense<0.000000e+00> : vector<92x160xf32>
    %61 = tpu.matmul %59, %60, %cst_30 {dimension_numbers = #tpu.dot_dimension_numbers<[1], [0], [0], [1], [0, 0, 1, 1], [], []>} : vector<92x16xbf16>, vector<16x160xbf16>, vector<92x160xf32> -> vector<92x160xf32>
    %62 = arith.truncf %61 : vector<92x160xf32> to vector<92x160xbf16>
    %c0_31 = arith.constant 0 : index
    %c0_32 = arith.constant 0 : index
    %c0_33 = arith.constant 0 : index
    %63 = vector.load %arg2[%c0_31, %c0_32, %c0_33] : memref<5x46x92xbf16, #tpu.memory_space<vmem>>, vector<1x46x92xbf16>
    %64 = vector.shape_cast %63 : vector<1x46x92xbf16> to vector<46x92xbf16>
    %65 = vector.extract_strided_slice %62 {offsets = [0, 0], sizes = [92, 32], strides = [1, 1]} : vector<92x160xbf16> to vector<92x32xbf16>
    %cst_34 = arith.constant dense<0.000000e+00> : vector<46x32xf32>
    %66 = tpu.matmul %64, %65, %cst_34 {dimension_numbers = #tpu.dot_dimension_numbers<[1], [0], [0], [1], [0, 0, 1, 1], [], []>} : vector<46x92xbf16>, vector<92x32xbf16>, vector<46x32xf32> -> vector<46x32xf32>
    %c1_35 = arith.constant 1 : index
    %c0_36 = arith.constant 0 : index
    %c0_37 = arith.constant 0 : index
    %67 = vector.load %arg2[%c1_35, %c0_36, %c0_37] : memref<5x46x92xbf16, #tpu.memory_space<vmem>>, vector<1x46x92xbf16>
    %68 = vector.shape_cast %67 : vector<1x46x92xbf16> to vector<46x92xbf16>
    %69 = vector.extract_strided_slice %62 {offsets = [0, 32], sizes = [92, 32], strides = [1, 1]} : vector<92x160xbf16> to vector<92x32xbf16>
    %cst_38 = arith.constant dense<0.000000e+00> : vector<46x32xf32>
    %70 = tpu.matmul %68, %69, %cst_38 {dimension_numbers = #tpu.dot_dimension_numbers<[1], [0], [0], [1], [0, 0, 1, 1], [], []>} : vector<46x92xbf16>, vector<92x32xbf16>, vector<46x32xf32> -> vector<46x32xf32>
    %71 = arith.addf %66, %70 : vector<46x32xf32>
    %c2_39 = arith.constant 2 : index
    %c0_40 = arith.constant 0 : index
    %c0_41 = arith.constant 0 : index
    %72 = vector.load %arg2[%c2_39, %c0_40, %c0_41] : memref<5x46x92xbf16, #tpu.memory_space<vmem>>, vector<1x46x92xbf16>
    %73 = vector.shape_cast %72 : vector<1x46x92xbf16> to vector<46x92xbf16>
    %74 = vector.extract_strided_slice %62 {offsets = [0, 64], sizes = [92, 32], strides = [1, 1]} : vector<92x160xbf16> to vector<92x32xbf16>
    %cst_42 = arith.constant dense<0.000000e+00> : vector<46x32xf32>
    %75 = tpu.matmul %73, %74, %cst_42 {dimension_numbers = #tpu.dot_dimension_numbers<[1], [0], [0], [1], [0, 0, 1, 1], [], []>} : vector<46x92xbf16>, vector<92x32xbf16>, vector<46x32xf32> -> vector<46x32xf32>
    %76 = arith.addf %71, %75 : vector<46x32xf32>
    %c3_43 = arith.constant 3 : index
    %c0_44 = arith.constant 0 : index
    %c0_45 = arith.constant 0 : index
    %77 = vector.load %arg2[%c3_43, %c0_44, %c0_45] : memref<5x46x92xbf16, #tpu.memory_space<vmem>>, vector<1x46x92xbf16>
    %78 = vector.shape_cast %77 : vector<1x46x92xbf16> to vector<46x92xbf16>
    %79 = vector.extract_strided_slice %62 {offsets = [0, 96], sizes = [92, 32], strides = [1, 1]} : vector<92x160xbf16> to vector<92x32xbf16>
    %cst_46 = arith.constant dense<0.000000e+00> : vector<46x32xf32>
    %80 = tpu.matmul %78, %79, %cst_46 {dimension_numbers = #tpu.dot_dimension_numbers<[1], [0], [0], [1], [0, 0, 1, 1], [], []>} : vector<46x92xbf16>, vector<92x32xbf16>, vector<46x32xf32> -> vector<46x32xf32>
    %81 = arith.addf %76, %80 : vector<46x32xf32>
    %c4_47 = arith.constant 4 : index
    %c0_48 = arith.constant 0 : index
    %c0_49 = arith.constant 0 : index
    %82 = vector.load %arg2[%c4_47, %c0_48, %c0_49] : memref<5x46x92xbf16, #tpu.memory_space<vmem>>, vector<1x46x92xbf16>
    %83 = vector.shape_cast %82 : vector<1x46x92xbf16> to vector<46x92xbf16>
    %84 = vector.extract_strided_slice %62 {offsets = [0, 128], sizes = [92, 32], strides = [1, 1]} : vector<92x160xbf16> to vector<92x32xbf16>
    %cst_50 = arith.constant dense<0.000000e+00> : vector<46x32xf32>
    %85 = tpu.matmul %83, %84, %cst_50 {dimension_numbers = #tpu.dot_dimension_numbers<[1], [0], [0], [1], [0, 0, 1, 1], [], []>} : vector<46x92xbf16>, vector<92x32xbf16>, vector<46x32xf32> -> vector<46x32xf32>
    %86 = arith.addf %81, %85 : vector<46x32xf32>
    %c1_51 = arith.constant 1 : index
    %c0_52 = arith.constant 0 : index
    %c0_53 = arith.constant 0 : index
    %87 = vector.load %arg13[%c1_51, %c0_52, %c0_53] : memref<6x2x128xf32, #tpu.memory_space<vmem>>, vector<1x2x128xf32>
    %88 = vector.shape_cast %87 : vector<1x2x128xf32> to vector<2x128xf32>
    %89 = vector.extract_strided_slice %88 {offsets = [0, 0], sizes = [1, 32], strides = [1, 1]} : vector<2x128xf32> to vector<1x32xf32>
    %90 = vector.extract_strided_slice %88 {offsets = [1, 0], sizes = [1, 32], strides = [1, 1]} : vector<2x128xf32> to vector<1x32xf32>
    %cst_54 = arith.constant dense<0.000000e+00> : vector<32xf32>
    %91 = vector.multi_reduction <add>, %86, %cst_54 [0] : vector<46x32xf32> to vector<32xf32>
    %92 = vector.shape_cast %91 : vector<32xf32> to vector<1x32xf32>
    %93 = arith.mulf %86, %86 : vector<46x32xf32>
    %cst_55 = arith.constant dense<0.000000e+00> : vector<32xf32>
    %94 = vector.multi_reduction <add>, %93, %cst_55 [0] : vector<46x32xf32> to vector<32xf32>
    %95 = vector.shape_cast %94 : vector<32xf32> to vector<1x32xf32>
    %cst_56 = arith.constant 0.0217391308 : f32
    %96 = vector.broadcast %cst_56 : f32 to vector<1x32xf32>
    %97 = arith.mulf %92, %96 : vector<1x32xf32>
    %cst_57 = arith.constant 0.0217391308 : f32
    %98 = vector.broadcast %cst_57 : f32 to vector<1x32xf32>
    %99 = arith.mulf %95, %98 : vector<1x32xf32>
    %100 = arith.mulf %97, %97 : vector<1x32xf32>
    %101 = arith.subf %99, %100 : vector<1x32xf32>
    %cst_58 = arith.constant 0.000000e+00 : f32
    %102 = vector.broadcast %cst_58 : f32 to vector<1x32xf32>
    %103 = arith.maximumf %101, %102 : vector<1x32xf32>
    %cst_59 = arith.constant 9.99999974E-6 : f32
    %104 = vector.broadcast %cst_59 : f32 to vector<1x32xf32>
    %105 = arith.addf %103, %104 : vector<1x32xf32>
    %106 = math.rsqrt %105 : vector<1x32xf32>
    %107 = arith.mulf %89, %106 : vector<1x32xf32>
    %108 = arith.mulf %97, %107 : vector<1x32xf32>
    %109 = arith.subf %90, %108 : vector<1x32xf32>
    %110 = vector.broadcast %107 : vector<1x32xf32> to vector<46x32xf32>
    %111 = arith.mulf %86, %110 : vector<46x32xf32>
    %112 = vector.broadcast %109 : vector<1x32xf32> to vector<46x32xf32>
    %113 = arith.addf %111, %112 : vector<46x32xf32>
    %cst_60 = arith.constant 0.000000e+00 : f32
    %114 = vector.broadcast %cst_60 : f32 to vector<46x32xf32>
    %115 = arith.maximumf %113, %114 : vector<46x32xf32>
    %116 = arith.truncf %115 : vector<46x32xf32> to vector<46x32xbf16>
    %c0_61 = arith.constant 0 : index
    %c0_62 = arith.constant 0 : index
    %117 = vector.load %arg9[%c0_61, %c0_62] : memref<32x320xbf16, #tpu.memory_space<vmem>>, vector<32x320xbf16>
    %cst_63 = arith.constant dense<0.000000e+00> : vector<46x320xf32>
    %118 = tpu.matmul %116, %117, %cst_63 {dimension_numbers = #tpu.dot_dimension_numbers<[1], [0], [0], [1], [0, 0, 1, 1], [], []>} : vector<46x32xbf16>, vector<32x320xbf16>, vector<46x320xf32> -> vector<46x320xf32>
    %119 = arith.truncf %118 : vector<46x320xf32> to vector<46x320xbf16>
    %c0_64 = arith.constant 0 : index
    %c0_65 = arith.constant 0 : index
    %c0_66 = arith.constant 0 : index
    %120 = vector.load %arg3[%c0_64, %c0_65, %c0_66] : memref<5x24x46xbf16, #tpu.memory_space<vmem>>, vector<1x24x46xbf16>
    %121 = vector.shape_cast %120 : vector<1x24x46xbf16> to vector<24x46xbf16>
    %122 = vector.extract_strided_slice %119 {offsets = [0, 0], sizes = [46, 64], strides = [1, 1]} : vector<46x320xbf16> to vector<46x64xbf16>
    %cst_67 = arith.constant dense<0.000000e+00> : vector<24x64xf32>
    %123 = tpu.matmul %121, %122, %cst_67 {dimension_numbers = #tpu.dot_dimension_numbers<[1], [0], [0], [1], [0, 0, 1, 1], [], []>} : vector<24x46xbf16>, vector<46x64xbf16>, vector<24x64xf32> -> vector<24x64xf32>
    %c1_68 = arith.constant 1 : index
    %c0_69 = arith.constant 0 : index
    %c0_70 = arith.constant 0 : index
    %124 = vector.load %arg3[%c1_68, %c0_69, %c0_70] : memref<5x24x46xbf16, #tpu.memory_space<vmem>>, vector<1x24x46xbf16>
    %125 = vector.shape_cast %124 : vector<1x24x46xbf16> to vector<24x46xbf16>
    %126 = vector.extract_strided_slice %119 {offsets = [0, 64], sizes = [46, 64], strides = [1, 1]} : vector<46x320xbf16> to vector<46x64xbf16>
    %cst_71 = arith.constant dense<0.000000e+00> : vector<24x64xf32>
    %127 = tpu.matmul %125, %126, %cst_71 {dimension_numbers = #tpu.dot_dimension_numbers<[1], [0], [0], [1], [0, 0, 1, 1], [], []>} : vector<24x46xbf16>, vector<46x64xbf16>, vector<24x64xf32> -> vector<24x64xf32>
    %128 = arith.addf %123, %127 : vector<24x64xf32>
    %c2_72 = arith.constant 2 : index
    %c0_73 = arith.constant 0 : index
    %c0_74 = arith.constant 0 : index
    %129 = vector.load %arg3[%c2_72, %c0_73, %c0_74] : memref<5x24x46xbf16, #tpu.memory_space<vmem>>, vector<1x24x46xbf16>
    %130 = vector.shape_cast %129 : vector<1x24x46xbf16> to vector<24x46xbf16>
    %131 = vector.extract_strided_slice %119 {offsets = [0, 128], sizes = [46, 64], strides = [1, 1]} : vector<46x320xbf16> to vector<46x64xbf16>
    %cst_75 = arith.constant dense<0.000000e+00> : vector<24x64xf32>
    %132 = tpu.matmul %130, %131, %cst_75 {dimension_numbers = #tpu.dot_dimension_numbers<[1], [0], [0], [1], [0, 0, 1, 1], [], []>} : vector<24x46xbf16>, vector<46x64xbf16>, vector<24x64xf32> -> vector<24x64xf32>
    %133 = arith.addf %128, %132 : vector<24x64xf32>
    %c3_76 = arith.constant 3 : index
    %c0_77 = arith.constant 0 : index
    %c0_78 = arith.constant 0 : index
    %134 = vector.load %arg3[%c3_76, %c0_77, %c0_78] : memref<5x24x46xbf16, #tpu.memory_space<vmem>>, vector<1x24x46xbf16>
    %135 = vector.shape_cast %134 : vector<1x24x46xbf16> to vector<24x46xbf16>
    %136 = vector.extract_strided_slice %119 {offsets = [0, 192], sizes = [46, 64], strides = [1, 1]} : vector<46x320xbf16> to vector<46x64xbf16>
    %cst_79 = arith.constant dense<0.000000e+00> : vector<24x64xf32>
    %137 = tpu.matmul %135, %136, %cst_79 {dimension_numbers = #tpu.dot_dimension_numbers<[1], [0], [0], [1], [0, 0, 1, 1], [], []>} : vector<24x46xbf16>, vector<46x64xbf16>, vector<24x64xf32> -> vector<24x64xf32>
    %138 = arith.addf %133, %137 : vector<24x64xf32>
    %c4_80 = arith.constant 4 : index
    %c0_81 = arith.constant 0 : index
    %c0_82 = arith.constant 0 : index
    %139 = vector.load %arg3[%c4_80, %c0_81, %c0_82] : memref<5x24x46xbf16, #tpu.memory_space<vmem>>, vector<1x24x46xbf16>
    %140 = vector.shape_cast %139 : vector<1x24x46xbf16> to vector<24x46xbf16>
    %141 = vector.extract_strided_slice %119 {offsets = [0, 256], sizes = [46, 64], strides = [1, 1]} : vector<46x320xbf16> to vector<46x64xbf16>
    %cst_83 = arith.constant dense<0.000000e+00> : vector<24x64xf32>
    %142 = tpu.matmul %140, %141, %cst_83 {dimension_numbers = #tpu.dot_dimension_numbers<[1], [0], [0], [1], [0, 0, 1, 1], [], []>} : vector<24x46xbf16>, vector<46x64xbf16>, vector<24x64xf32> -> vector<24x64xf32>
    %143 = arith.addf %138, %142 : vector<24x64xf32>
    %c2_84 = arith.constant 2 : index
    %c0_85 = arith.constant 0 : index
    %c0_86 = arith.constant 0 : index
    %144 = vector.load %arg13[%c2_84, %c0_85, %c0_86] : memref<6x2x128xf32, #tpu.memory_space<vmem>>, vector<1x2x128xf32>
    %145 = vector.shape_cast %144 : vector<1x2x128xf32> to vector<2x128xf32>
    %146 = vector.extract_strided_slice %145 {offsets = [0, 0], sizes = [1, 64], strides = [1, 1]} : vector<2x128xf32> to vector<1x64xf32>
    %147 = vector.extract_strided_slice %145 {offsets = [1, 0], sizes = [1, 64], strides = [1, 1]} : vector<2x128xf32> to vector<1x64xf32>
    %cst_87 = arith.constant dense<0.000000e+00> : vector<64xf32>
    %148 = vector.multi_reduction <add>, %143, %cst_87 [0] : vector<24x64xf32> to vector<64xf32>
    %149 = vector.shape_cast %148 : vector<64xf32> to vector<1x64xf32>
    %150 = arith.mulf %143, %143 : vector<24x64xf32>
    %cst_88 = arith.constant dense<0.000000e+00> : vector<64xf32>
    %151 = vector.multi_reduction <add>, %150, %cst_88 [0] : vector<24x64xf32> to vector<64xf32>
    %152 = vector.shape_cast %151 : vector<64xf32> to vector<1x64xf32>
    %cst_89 = arith.constant 0.0416666679 : f32
    %153 = vector.broadcast %cst_89 : f32 to vector<1x64xf32>
    %154 = arith.mulf %149, %153 : vector<1x64xf32>
    %cst_90 = arith.constant 0.0416666679 : f32
    %155 = vector.broadcast %cst_90 : f32 to vector<1x64xf32>
    %156 = arith.mulf %152, %155 : vector<1x64xf32>
    %157 = arith.mulf %154, %154 : vector<1x64xf32>
    %158 = arith.subf %156, %157 : vector<1x64xf32>
    %cst_91 = arith.constant 0.000000e+00 : f32
    %159 = vector.broadcast %cst_91 : f32 to vector<1x64xf32>
    %160 = arith.maximumf %158, %159 : vector<1x64xf32>
    %cst_92 = arith.constant 9.99999974E-6 : f32
    %161 = vector.broadcast %cst_92 : f32 to vector<1x64xf32>
    %162 = arith.addf %160, %161 : vector<1x64xf32>
    %163 = math.rsqrt %162 : vector<1x64xf32>
    %164 = arith.mulf %146, %163 : vector<1x64xf32>
    %165 = arith.mulf %154, %164 : vector<1x64xf32>
    %166 = arith.subf %147, %165 : vector<1x64xf32>
    %167 = vector.broadcast %164 : vector<1x64xf32> to vector<24x64xf32>
    %168 = arith.mulf %143, %167 : vector<24x64xf32>
    %169 = vector.broadcast %166 : vector<1x64xf32> to vector<24x64xf32>
    %170 = arith.addf %168, %169 : vector<24x64xf32>
    %cst_93 = arith.constant 0.000000e+00 : f32
    %171 = vector.broadcast %cst_93 : f32 to vector<24x64xf32>
    %172 = arith.maximumf %170, %171 : vector<24x64xf32>
    %173 = arith.truncf %172 : vector<24x64xf32> to vector<24x64xbf16>
    %c0_94 = arith.constant 0 : index
    %c0_95 = arith.constant 0 : index
    %174 = vector.load %arg10[%c0_94, %c0_95] : memref<64x160xbf16, #tpu.memory_space<vmem>>, vector<64x160xbf16>
    %cst_96 = arith.constant dense<0.000000e+00> : vector<24x160xf32>
    %175 = tpu.matmul %173, %174, %cst_96 {dimension_numbers = #tpu.dot_dimension_numbers<[1], [0], [0], [1], [0, 0, 1, 1], [], []>} : vector<24x64xbf16>, vector<64x160xbf16>, vector<24x160xf32> -> vector<24x160xf32>
    %176 = arith.truncf %175 : vector<24x160xf32> to vector<24x160xbf16>
    %c0_97 = arith.constant 0 : index
    %c0_98 = arith.constant 0 : index
    %c0_99 = arith.constant 0 : index
    %177 = vector.load %arg4[%c0_97, %c0_98, %c0_99] : memref<5x48x24xbf16, #tpu.memory_space<vmem>>, vector<1x48x24xbf16>
    %178 = vector.shape_cast %177 : vector<1x48x24xbf16> to vector<48x24xbf16>
    %179 = vector.extract_strided_slice %176 {offsets = [0, 0], sizes = [24, 32], strides = [1, 1]} : vector<24x160xbf16> to vector<24x32xbf16>
    %cst_100 = arith.constant dense<0.000000e+00> : vector<48x32xf32>
    %180 = tpu.matmul %178, %179, %cst_100 {dimension_numbers = #tpu.dot_dimension_numbers<[1], [0], [0], [1], [0, 0, 1, 1], [], []>} : vector<48x24xbf16>, vector<24x32xbf16>, vector<48x32xf32> -> vector<48x32xf32>
    %c1_101 = arith.constant 1 : index
    %c0_102 = arith.constant 0 : index
    %c0_103 = arith.constant 0 : index
    %181 = vector.load %arg4[%c1_101, %c0_102, %c0_103] : memref<5x48x24xbf16, #tpu.memory_space<vmem>>, vector<1x48x24xbf16>
    %182 = vector.shape_cast %181 : vector<1x48x24xbf16> to vector<48x24xbf16>
    %183 = vector.extract_strided_slice %176 {offsets = [0, 32], sizes = [24, 32], strides = [1, 1]} : vector<24x160xbf16> to vector<24x32xbf16>
    %cst_104 = arith.constant dense<0.000000e+00> : vector<48x32xf32>
    %184 = tpu.matmul %182, %183, %cst_104 {dimension_numbers = #tpu.dot_dimension_numbers<[1], [0], [0], [1], [0, 0, 1, 1], [], []>} : vector<48x24xbf16>, vector<24x32xbf16>, vector<48x32xf32> -> vector<48x32xf32>
    %185 = arith.addf %180, %184 : vector<48x32xf32>
    %c2_105 = arith.constant 2 : index
    %c0_106 = arith.constant 0 : index
    %c0_107 = arith.constant 0 : index
    %186 = vector.load %arg4[%c2_105, %c0_106, %c0_107] : memref<5x48x24xbf16, #tpu.memory_space<vmem>>, vector<1x48x24xbf16>
    %187 = vector.shape_cast %186 : vector<1x48x24xbf16> to vector<48x24xbf16>
    %188 = vector.extract_strided_slice %176 {offsets = [0, 64], sizes = [24, 32], strides = [1, 1]} : vector<24x160xbf16> to vector<24x32xbf16>
    %cst_108 = arith.constant dense<0.000000e+00> : vector<48x32xf32>
    %189 = tpu.matmul %187, %188, %cst_108 {dimension_numbers = #tpu.dot_dimension_numbers<[1], [0], [0], [1], [0, 0, 1, 1], [], []>} : vector<48x24xbf16>, vector<24x32xbf16>, vector<48x32xf32> -> vector<48x32xf32>
    %190 = arith.addf %185, %189 : vector<48x32xf32>
    %c3_109 = arith.constant 3 : index
    %c0_110 = arith.constant 0 : index
    %c0_111 = arith.constant 0 : index
    %191 = vector.load %arg4[%c3_109, %c0_110, %c0_111] : memref<5x48x24xbf16, #tpu.memory_space<vmem>>, vector<1x48x24xbf16>
    %192 = vector.shape_cast %191 : vector<1x48x24xbf16> to vector<48x24xbf16>
    %193 = vector.extract_strided_slice %176 {offsets = [0, 96], sizes = [24, 32], strides = [1, 1]} : vector<24x160xbf16> to vector<24x32xbf16>
    %cst_112 = arith.constant dense<0.000000e+00> : vector<48x32xf32>
    %194 = tpu.matmul %192, %193, %cst_112 {dimension_numbers = #tpu.dot_dimension_numbers<[1], [0], [0], [1], [0, 0, 1, 1], [], []>} : vector<48x24xbf16>, vector<24x32xbf16>, vector<48x32xf32> -> vector<48x32xf32>
    %195 = arith.addf %190, %194 : vector<48x32xf32>
    %c4_113 = arith.constant 4 : index
    %c0_114 = arith.constant 0 : index
    %c0_115 = arith.constant 0 : index
    %196 = vector.load %arg4[%c4_113, %c0_114, %c0_115] : memref<5x48x24xbf16, #tpu.memory_space<vmem>>, vector<1x48x24xbf16>
    %197 = vector.shape_cast %196 : vector<1x48x24xbf16> to vector<48x24xbf16>
    %198 = vector.extract_strided_slice %176 {offsets = [0, 128], sizes = [24, 32], strides = [1, 1]} : vector<24x160xbf16> to vector<24x32xbf16>
    %cst_116 = arith.constant dense<0.000000e+00> : vector<48x32xf32>
    %199 = tpu.matmul %197, %198, %cst_116 {dimension_numbers = #tpu.dot_dimension_numbers<[1], [0], [0], [1], [0, 0, 1, 1], [], []>} : vector<48x24xbf16>, vector<24x32xbf16>, vector<48x32xf32> -> vector<48x32xf32>
    %200 = arith.addf %195, %199 : vector<48x32xf32>
    %c3_117 = arith.constant 3 : index
    %c0_118 = arith.constant 0 : index
    %c0_119 = arith.constant 0 : index
    %201 = vector.load %arg13[%c3_117, %c0_118, %c0_119] : memref<6x2x128xf32, #tpu.memory_space<vmem>>, vector<1x2x128xf32>
    %202 = vector.shape_cast %201 : vector<1x2x128xf32> to vector<2x128xf32>
    %203 = vector.extract_strided_slice %202 {offsets = [0, 0], sizes = [1, 32], strides = [1, 1]} : vector<2x128xf32> to vector<1x32xf32>
    %204 = vector.extract_strided_slice %202 {offsets = [1, 0], sizes = [1, 32], strides = [1, 1]} : vector<2x128xf32> to vector<1x32xf32>
    %cst_120 = arith.constant dense<0.000000e+00> : vector<32xf32>
    %205 = vector.multi_reduction <add>, %200, %cst_120 [0] : vector<48x32xf32> to vector<32xf32>
    %206 = vector.shape_cast %205 : vector<32xf32> to vector<1x32xf32>
    %207 = arith.mulf %200, %200 : vector<48x32xf32>
    %cst_121 = arith.constant dense<0.000000e+00> : vector<32xf32>
    %208 = vector.multi_reduction <add>, %207, %cst_121 [0] : vector<48x32xf32> to vector<32xf32>
    %209 = vector.shape_cast %208 : vector<32xf32> to vector<1x32xf32>
    %cst_122 = arith.constant 0.020833334 : f32
    %210 = vector.broadcast %cst_122 : f32 to vector<1x32xf32>
    %211 = arith.mulf %206, %210 : vector<1x32xf32>
    %cst_123 = arith.constant 0.020833334 : f32
    %212 = vector.broadcast %cst_123 : f32 to vector<1x32xf32>
    %213 = arith.mulf %209, %212 : vector<1x32xf32>
    %214 = arith.mulf %211, %211 : vector<1x32xf32>
    %215 = arith.subf %213, %214 : vector<1x32xf32>
    %cst_124 = arith.constant 0.000000e+00 : f32
    %216 = vector.broadcast %cst_124 : f32 to vector<1x32xf32>
    %217 = arith.maximumf %215, %216 : vector<1x32xf32>
    %cst_125 = arith.constant 9.99999974E-6 : f32
    %218 = vector.broadcast %cst_125 : f32 to vector<1x32xf32>
    %219 = arith.addf %217, %218 : vector<1x32xf32>
    %220 = math.rsqrt %219 : vector<1x32xf32>
    %221 = arith.mulf %203, %220 : vector<1x32xf32>
    %222 = arith.mulf %211, %221 : vector<1x32xf32>
    %223 = arith.subf %204, %222 : vector<1x32xf32>
    %224 = vector.broadcast %221 : vector<1x32xf32> to vector<48x32xf32>
    %225 = arith.mulf %200, %224 : vector<48x32xf32>
    %226 = vector.broadcast %223 : vector<1x32xf32> to vector<48x32xf32>
    %227 = arith.addf %225, %226 : vector<48x32xf32>
    %cst_126 = arith.constant 0.000000e+00 : f32
    %228 = vector.broadcast %cst_126 : f32 to vector<48x32xf32>
    %229 = arith.maximumf %227, %228 : vector<48x32xf32>
    %230 = arith.truncf %229 : vector<48x32xf32> to vector<48x32xbf16>
    %c0_127 = arith.constant 0 : index
    %c0_128 = arith.constant 0 : index
    %231 = vector.load %arg11[%c0_127, %c0_128] : memref<32x80xbf16, #tpu.memory_space<vmem>>, vector<32x80xbf16>
    %cst_129 = arith.constant dense<0.000000e+00> : vector<48x80xf32>
    %232 = tpu.matmul %230, %231, %cst_129 {dimension_numbers = #tpu.dot_dimension_numbers<[1], [0], [0], [1], [0, 0, 1, 1], [], []>} : vector<48x32xbf16>, vector<32x80xbf16>, vector<48x80xf32> -> vector<48x80xf32>
    %233 = arith.truncf %232 : vector<48x80xf32> to vector<48x80xbf16>
    %c0_130 = arith.constant 0 : index
    %c0_131 = arith.constant 0 : index
    %c0_132 = arith.constant 0 : index
    %234 = vector.load %arg5[%c0_130, %c0_131, %c0_132] : memref<5x96x48xbf16, #tpu.memory_space<vmem>>, vector<1x96x48xbf16>
    %235 = vector.shape_cast %234 : vector<1x96x48xbf16> to vector<96x48xbf16>
    %236 = vector.extract_strided_slice %233 {offsets = [0, 0], sizes = [48, 16], strides = [1, 1]} : vector<48x80xbf16> to vector<48x16xbf16>
    %cst_133 = arith.constant dense<0.000000e+00> : vector<96x16xf32>
    %237 = tpu.matmul %235, %236, %cst_133 {dimension_numbers = #tpu.dot_dimension_numbers<[1], [0], [0], [1], [0, 0, 1, 1], [], []>} : vector<96x48xbf16>, vector<48x16xbf16>, vector<96x16xf32> -> vector<96x16xf32>
    %c1_134 = arith.constant 1 : index
    %c0_135 = arith.constant 0 : index
    %c0_136 = arith.constant 0 : index
    %238 = vector.load %arg5[%c1_134, %c0_135, %c0_136] : memref<5x96x48xbf16, #tpu.memory_space<vmem>>, vector<1x96x48xbf16>
    %239 = vector.shape_cast %238 : vector<1x96x48xbf16> to vector<96x48xbf16>
    %240 = vector.extract_strided_slice %233 {offsets = [0, 16], sizes = [48, 16], strides = [1, 1]} : vector<48x80xbf16> to vector<48x16xbf16>
    %cst_137 = arith.constant dense<0.000000e+00> : vector<96x16xf32>
    %241 = tpu.matmul %239, %240, %cst_137 {dimension_numbers = #tpu.dot_dimension_numbers<[1], [0], [0], [1], [0, 0, 1, 1], [], []>} : vector<96x48xbf16>, vector<48x16xbf16>, vector<96x16xf32> -> vector<96x16xf32>
    %242 = arith.addf %237, %241 : vector<96x16xf32>
    %c2_138 = arith.constant 2 : index
    %c0_139 = arith.constant 0 : index
    %c0_140 = arith.constant 0 : index
    %243 = vector.load %arg5[%c2_138, %c0_139, %c0_140] : memref<5x96x48xbf16, #tpu.memory_space<vmem>>, vector<1x96x48xbf16>
    %244 = vector.shape_cast %243 : vector<1x96x48xbf16> to vector<96x48xbf16>
    %245 = vector.extract_strided_slice %233 {offsets = [0, 32], sizes = [48, 16], strides = [1, 1]} : vector<48x80xbf16> to vector<48x16xbf16>
    %cst_141 = arith.constant dense<0.000000e+00> : vector<96x16xf32>
    %246 = tpu.matmul %244, %245, %cst_141 {dimension_numbers = #tpu.dot_dimension_numbers<[1], [0], [0], [1], [0, 0, 1, 1], [], []>} : vector<96x48xbf16>, vector<48x16xbf16>, vector<96x16xf32> -> vector<96x16xf32>
    %247 = arith.addf %242, %246 : vector<96x16xf32>
    %c3_142 = arith.constant 3 : index
    %c0_143 = arith.constant 0 : index
    %c0_144 = arith.constant 0 : index
    %248 = vector.load %arg5[%c3_142, %c0_143, %c0_144] : memref<5x96x48xbf16, #tpu.memory_space<vmem>>, vector<1x96x48xbf16>
    %249 = vector.shape_cast %248 : vector<1x96x48xbf16> to vector<96x48xbf16>
    %250 = vector.extract_strided_slice %233 {offsets = [0, 48], sizes = [48, 16], strides = [1, 1]} : vector<48x80xbf16> to vector<48x16xbf16>
    %cst_145 = arith.constant dense<0.000000e+00> : vector<96x16xf32>
    %251 = tpu.matmul %249, %250, %cst_145 {dimension_numbers = #tpu.dot_dimension_numbers<[1], [0], [0], [1], [0, 0, 1, 1], [], []>} : vector<96x48xbf16>, vector<48x16xbf16>, vector<96x16xf32> -> vector<96x16xf32>
    %252 = arith.addf %247, %251 : vector<96x16xf32>
    %c4_146 = arith.constant 4 : index
    %c0_147 = arith.constant 0 : index
    %c0_148 = arith.constant 0 : index
    %253 = vector.load %arg5[%c4_146, %c0_147, %c0_148] : memref<5x96x48xbf16, #tpu.memory_space<vmem>>, vector<1x96x48xbf16>
    %254 = vector.shape_cast %253 : vector<1x96x48xbf16> to vector<96x48xbf16>
    %255 = vector.extract_strided_slice %233 {offsets = [0, 64], sizes = [48, 16], strides = [1, 1]} : vector<48x80xbf16> to vector<48x16xbf16>
    %cst_149 = arith.constant dense<0.000000e+00> : vector<96x16xf32>
    %256 = tpu.matmul %254, %255, %cst_149 {dimension_numbers = #tpu.dot_dimension_numbers<[1], [0], [0], [1], [0, 0, 1, 1], [], []>} : vector<96x48xbf16>, vector<48x16xbf16>, vector<96x16xf32> -> vector<96x16xf32>
    %257 = arith.addf %252, %256 : vector<96x16xf32>
    %c4_150 = arith.constant 4 : index
    %c0_151 = arith.constant 0 : index
    %c0_152 = arith.constant 0 : index
    %258 = vector.load %arg13[%c4_150, %c0_151, %c0_152] : memref<6x2x128xf32, #tpu.memory_space<vmem>>, vector<1x2x128xf32>
    %259 = vector.shape_cast %258 : vector<1x2x128xf32> to vector<2x128xf32>
    %260 = vector.extract_strided_slice %259 {offsets = [0, 0], sizes = [1, 16], strides = [1, 1]} : vector<2x128xf32> to vector<1x16xf32>
    %261 = vector.extract_strided_slice %259 {offsets = [1, 0], sizes = [1, 16], strides = [1, 1]} : vector<2x128xf32> to vector<1x16xf32>
    %cst_153 = arith.constant dense<0.000000e+00> : vector<16xf32>
    %262 = vector.multi_reduction <add>, %257, %cst_153 [0] : vector<96x16xf32> to vector<16xf32>
    %263 = vector.shape_cast %262 : vector<16xf32> to vector<1x16xf32>
    %264 = arith.mulf %257, %257 : vector<96x16xf32>
    %cst_154 = arith.constant dense<0.000000e+00> : vector<16xf32>
    %265 = vector.multi_reduction <add>, %264, %cst_154 [0] : vector<96x16xf32> to vector<16xf32>
    %266 = vector.shape_cast %265 : vector<16xf32> to vector<1x16xf32>
    %cst_155 = arith.constant 0.010416667 : f32
    %267 = vector.broadcast %cst_155 : f32 to vector<1x16xf32>
    %268 = arith.mulf %263, %267 : vector<1x16xf32>
    %cst_156 = arith.constant 0.010416667 : f32
    %269 = vector.broadcast %cst_156 : f32 to vector<1x16xf32>
    %270 = arith.mulf %266, %269 : vector<1x16xf32>
    %271 = arith.mulf %268, %268 : vector<1x16xf32>
    %272 = arith.subf %270, %271 : vector<1x16xf32>
    %cst_157 = arith.constant 0.000000e+00 : f32
    %273 = vector.broadcast %cst_157 : f32 to vector<1x16xf32>
    %274 = arith.maximumf %272, %273 : vector<1x16xf32>
    %cst_158 = arith.constant 9.99999974E-6 : f32
    %275 = vector.broadcast %cst_158 : f32 to vector<1x16xf32>
    %276 = arith.addf %274, %275 : vector<1x16xf32>
    %277 = math.rsqrt %276 : vector<1x16xf32>
    %278 = arith.mulf %260, %277 : vector<1x16xf32>
    %279 = arith.mulf %268, %278 : vector<1x16xf32>
    %280 = arith.subf %261, %279 : vector<1x16xf32>
    %281 = vector.broadcast %278 : vector<1x16xf32> to vector<96x16xf32>
    %282 = arith.mulf %257, %281 : vector<96x16xf32>
    %283 = vector.broadcast %280 : vector<1x16xf32> to vector<96x16xf32>
    %284 = arith.addf %282, %283 : vector<96x16xf32>
    %cst_159 = arith.constant 0.000000e+00 : f32
    %285 = vector.broadcast %cst_159 : f32 to vector<96x16xf32>
    %286 = arith.maximumf %284, %285 : vector<96x16xf32>
    %c0_160 = arith.constant 0 : index
    %c0_161 = arith.constant 0 : index
    %287 = vector.load %arg6[%c0_160, %c0_161] : memref<680x96xbf16, #tpu.memory_space<vmem>>, vector<680x96xbf16>
    %288 = arith.truncf %286 : vector<96x16xf32> to vector<96x16xbf16>
    %cst_162 = arith.constant dense<0.000000e+00> : vector<680x16xf32>
    %289 = tpu.matmul %287, %288, %cst_162 {dimension_numbers = #tpu.dot_dimension_numbers<[1], [0], [0], [1], [0, 0, 1, 1], [], []>} : vector<680x96xbf16>, vector<96x16xbf16>, vector<680x16xf32> -> vector<680x16xf32>
    %c0_163 = arith.constant 0 : index
    %c0_164 = arith.constant 0 : index
    %290 = vector.load %arg12[%c0_163, %c0_164] : memref<5x16xf32, #tpu.memory_space<vmem>>, vector<5x16xf32>
    %291 = vector.extract_strided_slice %289 {offsets = [0, 0], sizes = [136, 16], strides = [1, 1]} : vector<680x16xf32> to vector<136x16xf32>
    %292 = vector.extract_strided_slice %290 {offsets = [0, 0], sizes = [1, 16], strides = [1, 1]} : vector<5x16xf32> to vector<1x16xf32>
    %293 = vector.broadcast %292 : vector<1x16xf32> to vector<136x16xf32>
    %294 = arith.mulf %291, %293 : vector<136x16xf32>
    %cst_165 = arith.constant dense<0.000000e+00> : vector<136xf32>
    %295 = vector.multi_reduction <add>, %294, %cst_165 [1] : vector<136x16xf32> to vector<136xf32>
    %296 = vector.shape_cast %295 : vector<136xf32> to vector<136x1xf32>
    %297 = vector.extract_strided_slice %289 {offsets = [136, 0], sizes = [136, 16], strides = [1, 1]} : vector<680x16xf32> to vector<136x16xf32>
    %298 = vector.extract_strided_slice %290 {offsets = [1, 0], sizes = [1, 16], strides = [1, 1]} : vector<5x16xf32> to vector<1x16xf32>
    %299 = vector.broadcast %298 : vector<1x16xf32> to vector<136x16xf32>
    %300 = arith.mulf %297, %299 : vector<136x16xf32>
    %cst_166 = arith.constant dense<0.000000e+00> : vector<136xf32>
    %301 = vector.multi_reduction <add>, %300, %cst_166 [1] : vector<136x16xf32> to vector<136xf32>
    %302 = vector.shape_cast %301 : vector<136xf32> to vector<136x1xf32>
    %303 = arith.addf %296, %302 : vector<136x1xf32>
    %304 = vector.extract_strided_slice %289 {offsets = [272, 0], sizes = [136, 16], strides = [1, 1]} : vector<680x16xf32> to vector<136x16xf32>
    %305 = vector.extract_strided_slice %290 {offsets = [2, 0], sizes = [1, 16], strides = [1, 1]} : vector<5x16xf32> to vector<1x16xf32>
    %306 = vector.broadcast %305 : vector<1x16xf32> to vector<136x16xf32>
    %307 = arith.mulf %304, %306 : vector<136x16xf32>
    %cst_167 = arith.constant dense<0.000000e+00> : vector<136xf32>
    %308 = vector.multi_reduction <add>, %307, %cst_167 [1] : vector<136x16xf32> to vector<136xf32>
    %309 = vector.shape_cast %308 : vector<136xf32> to vector<136x1xf32>
    %310 = arith.addf %303, %309 : vector<136x1xf32>
    %311 = vector.extract_strided_slice %289 {offsets = [408, 0], sizes = [136, 16], strides = [1, 1]} : vector<680x16xf32> to vector<136x16xf32>
    %312 = vector.extract_strided_slice %290 {offsets = [3, 0], sizes = [1, 16], strides = [1, 1]} : vector<5x16xf32> to vector<1x16xf32>
    %313 = vector.broadcast %312 : vector<1x16xf32> to vector<136x16xf32>
    %314 = arith.mulf %311, %313 : vector<136x16xf32>
    %cst_168 = arith.constant dense<0.000000e+00> : vector<136xf32>
    %315 = vector.multi_reduction <add>, %314, %cst_168 [1] : vector<136x16xf32> to vector<136xf32>
    %316 = vector.shape_cast %315 : vector<136xf32> to vector<136x1xf32>
    %317 = arith.addf %310, %316 : vector<136x1xf32>
    %318 = vector.extract_strided_slice %289 {offsets = [544, 0], sizes = [136, 16], strides = [1, 1]} : vector<680x16xf32> to vector<136x16xf32>
    %319 = vector.extract_strided_slice %290 {offsets = [4, 0], sizes = [1, 16], strides = [1, 1]} : vector<5x16xf32> to vector<1x16xf32>
    %320 = vector.broadcast %319 : vector<1x16xf32> to vector<136x16xf32>
    %321 = arith.mulf %318, %320 : vector<136x16xf32>
    %cst_169 = arith.constant dense<0.000000e+00> : vector<136xf32>
    %322 = vector.multi_reduction <add>, %321, %cst_169 [1] : vector<136x16xf32> to vector<136xf32>
    %323 = vector.shape_cast %322 : vector<136xf32> to vector<136x1xf32>
    %324 = arith.addf %317, %323 : vector<136x1xf32>
    %c5 = arith.constant 5 : index
    %c0_170 = arith.constant 0 : index
    %c0_171 = arith.constant 0 : index
    %325 = vector.load %arg13[%c5, %c0_170, %c0_171] : memref<6x2x128xf32, #tpu.memory_space<vmem>>, vector<1x2x128xf32>
    %326 = vector.shape_cast %325 : vector<1x2x128xf32> to vector<2x128xf32>
    %327 = vector.extract_strided_slice %326 {offsets = [0, 0], sizes = [1, 1], strides = [1, 1]} : vector<2x128xf32> to vector<1x1xf32>
    %328 = vector.extract_strided_slice %326 {offsets = [1, 0], sizes = [1, 1], strides = [1, 1]} : vector<2x128xf32> to vector<1x1xf32>
    %cst_172 = arith.constant dense<0.000000e+00> : vector<1xf32>
    %329 = vector.multi_reduction <add>, %324, %cst_172 [0] : vector<136x1xf32> to vector<1xf32>
    %330 = vector.shape_cast %329 : vector<1xf32> to vector<1x1xf32>
    %331 = arith.mulf %324, %324 : vector<136x1xf32>
    %cst_173 = arith.constant dense<0.000000e+00> : vector<1xf32>
    %332 = vector.multi_reduction <add>, %331, %cst_173 [0] : vector<136x1xf32> to vector<1xf32>
    %333 = vector.shape_cast %332 : vector<1xf32> to vector<1x1xf32>
    %cst_174 = arith.constant 0.0073529412 : f32
    %334 = vector.broadcast %cst_174 : f32 to vector<1x1xf32>
    %335 = arith.mulf %330, %334 : vector<1x1xf32>
    %cst_175 = arith.constant 0.0073529412 : f32
    %336 = vector.broadcast %cst_175 : f32 to vector<1x1xf32>
    %337 = arith.mulf %333, %336 : vector<1x1xf32>
    %338 = arith.mulf %335, %335 : vector<1x1xf32>
    %339 = arith.subf %337, %338 : vector<1x1xf32>
    %cst_176 = arith.constant 0.000000e+00 : f32
    %340 = vector.broadcast %cst_176 : f32 to vector<1x1xf32>
    %341 = arith.maximumf %339, %340 : vector<1x1xf32>
    %cst_177 = arith.constant 9.99999974E-6 : f32
    %342 = vector.broadcast %cst_177 : f32 to vector<1x1xf32>
    %343 = arith.addf %341, %342 : vector<1x1xf32>
    %344 = math.rsqrt %343 : vector<1x1xf32>
    %345 = arith.mulf %327, %344 : vector<1x1xf32>
    %346 = arith.mulf %335, %345 : vector<1x1xf32>
    %347 = arith.subf %328, %346 : vector<1x1xf32>
    %348 = vector.broadcast %345 : vector<1x1xf32> to vector<136x1xf32>
    %349 = arith.mulf %324, %348 : vector<136x1xf32>
    %350 = vector.broadcast %347 : vector<1x1xf32> to vector<136x1xf32>
    %351 = arith.addf %349, %350 : vector<136x1xf32>
    %cst_178 = arith.constant 0.000000e+00 : f32
    %352 = vector.broadcast %cst_178 : f32 to vector<136x1xf32>
    %353 = arith.maximumf %351, %352 : vector<136x1xf32>
    %c0_179 = arith.constant 0 : index
    %c0_180 = arith.constant 0 : index
    %354 = vector.load %arg14[%c0_179, %c0_180] : memref<136x1xf32, #tpu.memory_space<vmem>>, vector<136x1xf32>
    tpu.vector_store %arg14[%c0_179, %c0_180], %353 {strides = array<i32>} : memref<136x1xf32, #tpu.memory_space<vmem>>, vector<136x1xf32>,
    return
  }
}

</mosaic_0001>

<bundles_post_ra>
// kernel: auto_enc_small_forward.1
= control target key start
LH: loop header
LB: loop body
LE: loop exit
PB: predicated region body
PF: predicated region fallthrough
CT: control target
= control target key end

     0   :  { %19 = vsyncpa [#allocation3], 0  ;;  %s7404_s0 = inlined_call_operand.vmem [shape: f32[128,1], index: 0, kind: input, shape index: {}]   ;;  %s7405_s1 = inlined_call_operand.hbm [shape: bf16[5,92,128], index: 1, kind: input, shape index: {}]   ;;  %s7406_s2 = inlined_call_operand.hbm [shape: bf16[5,46,92], index: 2, kind: input, shape index: {}]   ;;  %s7407_s3 = inlined_call_operand.hbm [shape: bf16[5,24,46], index: 3, kind: input, shape index: {}]   ;;  %s7408_s4 = inlined_call_operand.vmem [shape: bf16[5,48,24], index: 4, kind: input, shape index: {}]   ;;  %s7409_s5 = inlined_call_operand.hbm [shape: bf16[5,96,48], index: 5, kind: input, shape index: {}]   ;;  %s7410_s6 = inlined_call_operand.hbm [shape: bf16[680,96], index: 6, kind: input, shape index: {}]   ;;  %s7411_s7 = inlined_call_operand.hbm [shape: f32[1,80], index: 7, kind: input, shape index: {}]   ;;  %s7412_s8 = inlined_call_operand.vmem [shape: bf16[16,160], index: 8, kind: input, shape index: {}]   ;;  %s7413_s9 = inlined_call_operand.hbm [shape: bf16[32,320], index: 9, kind: input, shape index: {}]   ;;  %s7414_s10 = inlined_call_operand.hbm [shape: bf16[64,160], index: 10, kind: input, shape index: {}]   ;;  %s7415_s11 = inlined_call_operand.hbm [shape: bf16[32,80], index: 11, kind: input, shape index: {}]   ;;  %s7416_s12 = inlined_call_operand.hbm [shape: f32[5,16], index: 12, kind: input, shape index: {}]   ;;  %s7417_s13 = inlined_call_operand.vmem [shape: f32[6,2,128], index: 13, kind: input, shape index: {}]   ;;  %s7418_s14 = inlined_call_operand.vmem [shape: f32[136,1], index: 14, kind: output, shape index: {}]  }
   0x1   :  { %20 = vsyncpa [#allocation5], 0 }
   0x2   :  { %21 = vsyncpa [#allocation8], 0 }
   0x3   :  { %22 = vsyncpa [#allocation11], 0 }
   0x4   :  { %23 = vsyncpa [#allocation14], 0 }
   0x5   :  { %24 = vsyncpa [#allocation17], 0  ;;  %s44_s15 = sshll.u32 %s7406_s2, 4  ;;  %s5964_s16 = smov [#allocation4]   ;;  %s45_s15 = int_to_ptr.hbm [resolvable:$true] %s44_s15 }
   0x6   :  { %s46_s17 = sshll.u32 %s5964_s16, 4  ;;  %s72_s20 = sshll.u32 %s7409_s5, 4  ;;  %s47_s17 = int_to_ptr.vmem [resolvable:$true] %s46_s17  ;;  %s73_s20 = int_to_ptr.hbm [resolvable:$true] %s72_s20 }
   0x7   :  { %s5965_s21 = smov 64   ;;  %s5966_s22 = smov 4  }
   0x8   :  { %52 = dma.hbm_to_vmem [thread:$0]  %s45_s15, 1920, %s47_s17, [#allocation5], %s5965_s21, %s5965_s21, %s5966_s22  }
   0x9   :  { %s5967_s23 = smov [#allocation7]   ;;  %s99_s2 = sshll.u32 %s7411_s7, 4  ;;  %s100_s2 = int_to_ptr.hbm [resolvable:$true] %s99_s2 }
   0xa   :  { %s74_s24 = sshll.u32 %s5967_s23, 4  ;;  %s124_s28 = sshll.u32 %s7414_s10, 4  ;;  %s75_s24 = int_to_ptr.vmem [resolvable:$true] %s74_s24  ;;  %s125_s28 = int_to_ptr.hbm [resolvable:$true] %s124_s28 }
   0xb   :  { %80 = dma.hbm_to_vmem [thread:$0]  %s73_s20, 3840, %s75_s24, [#allocation8], %s5965_s21, %s5965_s21, %s5966_s22  }
   0xc   :  { %s5968_s29 = smov [#allocation10]   ;;  %s5969_s15 = smov [#allocation13]  }
   0xd   :  { %s101_s30 = sshll.u32 %s5968_s29, 4  ;;  %s126_s16 = sshll.u32 %s5969_s15, 4  ;;  %s102_s30 = int_to_ptr.vmem [resolvable:$true] %s101_s30  ;;  %s127_s16 = int_to_ptr.vmem [resolvable:$true] %s126_s16 }
   0xe   :  { %104 = dma.hbm_to_vmem [thread:$0]  %s100_s2, 16, %s102_s30, [#allocation11]  }
   0xf   :  { %s5970_s17 = smov 128   ;;  %s5971_s7 = smov 8  }
  0x10   :  { %132 = dma.hbm_to_vmem [thread:$0]  %s125_s28, 1024, %s127_s16, [#allocation14], %s5970_s17, %s5970_s17, %s5971_s7  }
  0x11   :  { %s31_s23 = sshll.u32 %s7405_s1, 4  ;;  %s5972_s20 = smov [#allocation2]   ;;  %s32_s23 = int_to_ptr.hbm [resolvable:$true] %s31_s23 }
  0x12   :  { %s33_s24 = sshll.u32 %s5972_s20, 4  ;;  %s57_s26 = sshll.u32 %s7407_s3, 4  ;;  %s34_s24 = int_to_ptr.vmem [resolvable:$true] %s33_s24  ;;  %s58_s26 = int_to_ptr.hbm [resolvable:$true] %s57_s26 }
  0x13   :  { %39 = dma.hbm_to_vmem [thread:$0]  %s32_s23, 3840, %s34_s24, [#allocation3], %s5965_s21, %s5965_s21, %s5966_s22  }
  0x14   :  { %s5973_s2 = smov [#allocation6]   ;;  %s85_s29 = sshll.u32 %s7410_s6, 4  ;;  %s86_s29 = int_to_ptr.hbm [resolvable:$true] %s85_s29 }
  0x15   :  { %s59_s5 = sshll.u32 %s5973_s2, 4  ;;  %s111_s3 = sshll.u32 %s7413_s9, 4  ;;  %s60_s5 = int_to_ptr.vmem [resolvable:$true] %s59_s5  ;;  %s112_s3 = int_to_ptr.hbm [resolvable:$true] %s111_s3 }
  0x16   :  { %65 = dma.hbm_to_vmem [thread:$0]  %s58_s26, 960, %s60_s5, [#allocation5], %s5965_s21, %s5965_s21, %s5966_s22  }
  0x17   :  { %s5974_s15 = smov [#allocation9]   ;;  %s5975_s17 = smov [#allocation12]  }
  0x18   :  { %s87_s16 = sshll.u32 %s5974_s15, 4  ;;  %s113_s6 = sshll.u32 %s5975_s17, 4  ;;  %s88_s16 = int_to_ptr.vmem [resolvable:$true] %s87_s16  ;;  %s114_s6 = int_to_ptr.vmem [resolvable:$true] %s113_s6 }
  0x19   :  { %93 = dma.hbm_to_vmem [thread:$0]  %s86_s29, 5440, %s88_s16, [#allocation8], %s5965_s21, %s5965_s21, %s5966_s22  }
  0x1a   :  { %s5976_s7 = smov 192   ;;  %s5977_s18 = smov 12  }
  0x1b   :  { %119 = dma.hbm_to_vmem [thread:$0]  %s112_s3, 768, %s114_s6, [#allocation11], %s5976_s7, %s5976_s7, %s5977_s18  }
  0x1c   :  { %s137_s20 = sshll.u32 %s7415_s11, 4  ;;  %s5978_s9 = smov [#allocation15]   ;;  %s138_s20 = int_to_ptr.hbm [resolvable:$true] %s137_s20 }
  0x1d   :  { %s139_s24 = sshll.u32 %s5978_s9, 4  ;;  %s151_s26 = sshll.u32 %s7416_s12, 4  ;;  %s140_s24 = int_to_ptr.vmem [resolvable:$true] %s139_s24  ;;  %s152_s26 = int_to_ptr.hbm [resolvable:$true] %s151_s26 }
  0x1e   :  { %145 = dma.hbm_to_vmem [thread:$0]  %s138_s20, 256, %s140_s24, [#allocation14], %s5965_s21, %s5965_s21, %s5966_s22  }
  0x1f   :  { %s5979_s2 = smov [#allocation16]  }
  0x20   :  { %s153_s5 = sshll.u32 %s5979_s2, 4  ;;  %s154_s5 = int_to_ptr.vmem [resolvable:$true] %s153_s5 }
  0x21   :  { %156 = dma.hbm_to_vmem [thread:$0]  %s152_s26, 128, %s154_s5, [#allocation17]  }
  0x22   :  { %5952 = dma.done.wait [#allocation3], 3840  }
  0x23   :  { %5953 = vsyncadd [#allocation3], 4294963456 }
  0x24   :  { %5954 = dma.done.wait [#allocation5], 2880  }
  0x25   :  { %5955 = vsyncadd [#allocation5], 4294964416 }
  0x26   :  { %5956 = dma.done.wait [#allocation8], 9280  }
  0x27   :  { %5957 = vsyncadd [#allocation8], 4294958016 }
  0x28   :  { %5958 = dma.done.wait [#allocation11], 784  }
  0x29   :  { %5959 = vsyncadd [#allocation11], 4294966512 }
  0x2a   :  { %5960 = dma.done.wait [#allocation14], 1280  }
  0x2b   :  { %5961 = vsyncadd [#allocation14], 4294966016 }
  0x2c   :  { %5962 = dma.done.wait [#allocation17], 128  }
  0x2d   :  { %5963 = vsyncadd [#allocation17], 4294967168  ;;  %v5980_v0 = vmov 0   ;;  %v214_v1 = vld [vmem:[%s7404_s0 + $0x70] sm:$0xff]  ;;  %v212_v2 = vld [vmem:[%s7404_s0 + $0x60] sm:$0xff]  ;;  %s5981_s30 = smov 112  }
  0x2e   :  { %5698 = vset.pattern.permute.xlu2 %v5980_v0  ;;  %5697 = vset.pattern.permute.xlu1 %v5980_v0  ;;  %v210_v3 = vld [vmem:[%s7404_s0 + $0x50] sm:$0xff]  ;;  %v215_v4 = vld [vmem:[%s7404_s0 + $0x78] sm:$0xff]  ;;  %v213_v5 = vld [vmem:[%s7404_s0 + $0x68] sm:$0xff]  ;;  %s5983_s3 = smov 80   ;;  %vm952_vm0 = vcmask 130048   ;;  %vm974_vm1 = vcmask 125952  }
  0x2f   :  { %5696 = vset.pattern.permute.xlu0 %v5980_v0  ;;  %279 = vperm.xlu1 %5697, %v212_v2   ;;  %v211_v6 = vld [vmem:[%s7404_s0 + $0x58] sm:$0xff]  ;;  %v209_v7 = vld [vmem:[%s7404_s0 + $0x48] sm:$0xff]  ;;  %v208_v8 = vld [vmem:[%s7404_s0 + $0x40] sm:$0xff]  ;;  %vm1295_vm5 = vcmask 1045504   ;;  %vm1285_vm6 = vcmask 752640   ;;  %vm1630_vm7 = vcmask 261120  }
  0x30   :  { %289 = vperm.xlu0 %5696, %v214_v1   ;;  %269 = vperm.xlu2 %5698, %v210_v3   ;;  %v206_v9 = vld [vmem:[%s7404_s0 + $0x30] sm:$0xff]  ;;  %v207_v10 = vld [vmem:[%s7404_s0 + $0x38] sm:$0xff]  ;;  %v204_v11 = vld [vmem:[%s7404_s0 + $0x20] sm:$0xff]  ;;  %vm1640_vm8 = vcmask 259072   ;;  %vm1895_vm12 = vcmask 1046528   ;;  %vm1888_vm13 = vcmask 375808  }
  0x31   :  { %v205_v12 = vld [vmem:[%s7404_s0 + $0x28] sm:$0xff]  ;;  %v203_v13 = vld [vmem:[%s7404_s0 + $0x18] sm:$0xff]  ;;  %v202_v14 = vld [vmem:[%s7404_s0 + $0x10] sm:$0xff]  ;;  %vm2118_vm14 = vcmask 523264  }
  0x32   :  { %v200_v15 = vld [vmem:[%s7404_s0] sm:$0xff]  ;;  %v201_v16 = vld [vmem:[%s7404_s0 + $0x8] sm:$0xff]  ;;  %s5982_s0 = smov 96  }
  0x33   :  { %v6156_v18 = vld [vmem:[#allocation10] ss:$0 sm:$0xff] }
  0x37   :  { %284 = vperm.xlu1 %5697, %v213_v5  }
  0x38   :  { %294 = vperm.xlu0 %5696, %v215_v4   ;;  %274 = vperm.xlu2 %5698, %v211_v6  }
  0x3f   :  { %264 = vperm.xlu1 %5697, %v209_v7  }
  0x40   :  { %259 = vperm.xlu0 %5696, %v208_v8   ;;  %249 = vperm.xlu2 %5698, %v206_v9  }
  0x47   :  { %239 = vperm.xlu1 %5697, %v204_v11  }
  0x48   :  { %254 = vperm.xlu0 %5696, %v207_v10   ;;  %244 = vperm.xlu2 %5698, %v205_v12  }
  0x4f   :  { %234 = vperm.xlu1 %5697, %v203_v13  }
  0x50   :  { %229 = vperm.xlu0 %5696, %v202_v14   ;;  %219 = vperm.xlu2 %5698, %v200_v15  }
  0x58   :  { %224 = vperm.xlu0 %5696, %v201_v16  }
  0x8a   :  { %v270_v17 = vpop.permute.xlu2 %269 }
  0x8b   :  { %v310_v19 = vmul.f32 %v6156_v18, %v270_v17 }
  0x8d   :  { %v326_v20 = vpack.c.bf16 %v310_v19, %v310_v19 }
  0x8f   :  { %v419_v23 = vunpack.c.l.b16 %v326_v20 }
  0x92   :  { %v275_v21 = vpop.permute.xlu2 %274 }
  0x93   :  { %v311_v22 = vmul.f32 %v6156_v18, %v275_v21 }
  0x95   :  { %v327_v24 = vpack.c.bf16 %v311_v22, %v311_v22 }
  0x97   :  { %v420_v25 = vunpack.c.l.b16 %v327_v24 }
  0x99   :  { %v6160_v26 = vpack.c.b16 %v420_v25, %v419_v23 }
  0x9a   :  { %v250_v37 = vpop.permute.xlu2 %249 }
  0x9b   :  { %443 = vrot.lane.b32.xlu0 %v6160_v26, %s5981_s30  ;;  %v306_v52 = vmul.f32 %v6156_v18, %v250_v37 }
  0x9d   :  { %v322_v58 = vpack.c.bf16 %v306_v52, %v306_v52 }
  0x9f   :  { %v415_v2 = vunpack.c.l.b16 %v322_v58 }
  0xa1   :  { %v280_v28 = vpop.permute.xlu1 %279 }
  0xa2   :  { %v290_v27 = vpop.permute.xlu0 %289  ;;  %v312_v30 = vmul.f32 %v6156_v18, %v280_v28  ;;  %v245_v53 = vpop.permute.xlu2 %244 }
  0xa3   :  { %v314_v29 = vmul.f32 %v6156_v18, %v290_v27  ;;  %v305_v54 = vmul.f32 %v6156_v18, %v245_v53 }
  0xa4   :  { %v328_v34 = vpack.c.bf16 %v312_v30, %v312_v30 }
  0xa5   :  { %v330_v33 = vpack.c.bf16 %v314_v29, %v314_v29  ;;  %v321_v61 = vpack.c.bf16 %v305_v54, %v305_v54 }
  0xa6   :  { %v421_v41 = vunpack.c.l.b16 %v328_v34 }
  0xa7   :  { %v423_v40 = vunpack.c.l.b16 %v330_v33  ;;  %v414_v3 = vunpack.c.l.b16 %v321_v61  ;;  %v5503_v33 = vld [vmem:[#allocation2 + $0x8] sm:$0xff] }
  0xa9   :  { %v285_v32 = vpop.permute.xlu1 %284 }
  0xaa   :  { %v295_v31 = vpop.permute.xlu0 %294  ;;  %v313_v36 = vmul.f32 %v6156_v18, %v285_v32  ;;  %v220_v12 = vpop.permute.xlu2 %219 }
  0xab   :  { %v315_v35 = vmul.f32 %v6156_v18, %v295_v31  ;;  %v300_v15 = vmul.f32 %v6156_v18, %v220_v12  ;;  %v4734_v12 = vld [vmem:[#allocation2 + $0x58] sm:$0xf] }
  0xac   :  { %v329_v39 = vpack.c.bf16 %v313_v36, %v313_v36 }
  0xad   :  { %v331_v38 = vpack.c.bf16 %v315_v35, %v315_v35  ;;  %v316_v21 = vpack.c.bf16 %v300_v15, %v300_v15  ;;  %v5516_v15 = vld [vmem:[#allocation2 + $0x70] sm:$0xff] }
  0xae   :  { %v422_v43 = vunpack.c.l.b16 %v329_v39  ;;  %v5508_v39 = vld [vmem:[#allocation2 + $0x30] sm:$0xff] }
  0xaf   :  { %v424_v42 = vunpack.c.l.b16 %v331_v38  ;;  %v409_v24 = vunpack.c.l.b16 %v316_v21  ;;  %v5527_v21 = vld [vmem:[#allocation2 + $0xc8] sm:$0xff] }
  0xb0   :  { %v6170_v45 = vpack.c.b16 %v422_v43, %v421_v41 }
  0xb1   :  { %v6168_v44 = vpack.c.b16 %v424_v42, %v423_v40  ;;  %v265_v46 = vpop.permute.xlu1 %264  ;;  %v5504_v40 = vld [vmem:[#allocation2 + $0x10] sm:$0xff] }
  0xb2   :  { %v260_v47 = vpop.permute.xlu0 %259  ;;  %v309_v48 = vmul.f32 %v6156_v18, %v265_v46  ;;  %445 = vrot.lane.b32.xlu2 %v6170_v45, %s5981_s30 }
  0xb3   :  { %v308_v49 = vmul.f32 %v6156_v18, %v260_v47  ;;  %540 = vmatpush.bf16.msra.mxu1 %v6168_v44  ;;  %447 = vrot.lane.b32.xlu1 %v6168_v44, %s5981_s30  ;;  %v5509_v47 = vld [vmem:[#allocation2 + $0x38] sm:$0xff] }
  0xb4   :  { %v325_v50 = vpack.c.bf16 %v309_v48, %v309_v48  ;;  %v5505_v48 = vld [vmem:[#allocation2 + $0x18] sm:$0xff] }
  0xb5   :  { %v324_v51 = vpack.c.bf16 %v308_v49, %v308_v49 }
  0xb6   :  { %v418_v55 = vunpack.c.l.b16 %v325_v50 }
  0xb7   :  { %v417_v56 = vunpack.c.l.b16 %v324_v51  ;;  %541 = vmatpush.bf16.msra.mxu1 %v6170_v45 }
  0xb9   :  { %v429_v57 = vpack.c.b16 %v418_v55, %v417_v56  ;;  %v240_v60 = vpop.permute.xlu1 %239  ;;  %v5510_v55 = vld [vmem:[#allocation2 + $0x40] sm:$0xff] }
  0xba   :  { %v255_v59 = vpop.permute.xlu0 %254  ;;  %v304_v63 = vmul.f32 %v6156_v18, %v240_v60  ;;  %v5506_v56 = vld [vmem:[#allocation2 + $0x20] sm:$0xff] }
  0xbb   :  { %v307_v62 = vmul.f32 %v6156_v18, %v255_v59  ;;  %542 = vmatpush.bf16.msra.mxu1 %v6160_v26  ;;  %441 = vrot.lane.b32.xlu1 %v429_v57, %s5981_s30  ;;  %v5520_v59 = vld [vmem:[#allocation2 + $0x90] sm:$0xff] }
  0xbc   :  { %v320_v1 = vpack.c.bf16 %v304_v63, %v304_v63  ;;  %v5511_v63 = vld [vmem:[#allocation2 + $0x48] sm:$0xff] }
  0xbd   :  { %v323_v0 = vpack.c.bf16 %v307_v62, %v307_v62 }
  0xbe   :  { %v413_v5 = vunpack.c.l.b16 %v320_v1  ;;  %v5507_v1 = vld [vmem:[#allocation2 + $0x28] sm:$0x30] }
  0xbf   :  { %v416_v4 = vunpack.c.l.b16 %v323_v0  ;;  %543 = vmatpush.bf16.msra.mxu1 %v429_v57  ;;  %v4758_v0 = vld [vmem:[#allocation2 + $0x28] sm:$0xf] }
  0xc0   :  { %v427_v7 = vpack.c.b16 %v414_v3, %v413_v5  ;;  %v5521_v5 = vld [vmem:[#allocation2 + $0x98] sm:$0xff] }
  0xc1   :  { %v428_v6 = vpack.c.b16 %v416_v4, %v415_v2  ;;  %v235_v8 = vpop.permute.xlu1 %234  ;;  %v4759_v2 = vor.u32 %v5507_v1, %v4758_v0  ;;  %v5514_v4 = vld [vmem:[#allocation2 + $0x60] sm:$0xff] }
  0xc2   :  { %v230_v9 = vpop.permute.xlu0 %229  ;;  %v303_v10 = vmul.f32 %v6156_v18, %v235_v8  ;;  %437 = vrot.lane.b32.xlu0 %v427_v7, %s5981_s30 }
  0xc3   :  { %v302_v11 = vmul.f32 %v6156_v18, %v230_v9  ;;  %544 = vmatpush.bf16.msra.mxu1 %v428_v6  ;;  %439 = vrot.lane.b32.xlu2 %v428_v6, %s5981_s30  ;;  %v5512_v9 = vld [vmem:[#allocation2 + $0x50] sm:$0xff] }
  0xc4   :  { %v319_v13 = vpack.c.bf16 %v303_v10, %v303_v10  ;;  %v5515_v10 = vld [vmem:[#allocation2 + $0x68] sm:$0xff] }
  0xc5   :  { %v318_v14 = vpack.c.bf16 %v302_v11, %v302_v11  ;;  %v5522_v11 = vld [vmem:[#allocation2 + $0xa0] sm:$0xff] }
  0xc6   :  { %v412_v16 = vunpack.c.l.b16 %v319_v13  ;;  %v5513_v13 = vld [vmem:[#allocation2 + $0x58] sm:$0x30] }
  0xc7   :  { %v411_v17 = vunpack.c.l.b16 %v318_v14  ;;  %545 = vmatpush.bf16.msra.mxu1 %v427_v7  ;;  %v4735_v14 = vor.u32 %v5513_v13, %v4734_v12 }
  0xc9   :  { %v426_v19 = vpack.c.b16 %v412_v16, %v411_v17  ;;  %v5523_v16 = vld [vmem:[#allocation2 + $0xa8] sm:$0xff]  ;;  %v5526_v17 = vld [vmem:[#allocation2 + $0xc0] sm:$0xff] }
  0xca   :  { %v225_v20 = vpop.permute.xlu0 %224  ;;  %642 = vrot.lane.b32.xlu0 %v6168_v44, %s5982_s0 }
  0xcb   :  { %v301_v22 = vmul.f32 %v6156_v18, %v225_v20  ;;  %435 = vrot.lane.b32.xlu1 %v426_v19, %s5981_s30  ;;  %546 = vmatpush.bf16.msra.mxu1 %v426_v19  ;;  %v5524_v20 = vld [vmem:[#allocation2 + $0xb0] sm:$0xff] }
  0xcd   :  { %v317_v23 = vpack.c.bf16 %v301_v22, %v301_v22  ;;  %v4806_v22 = vld [vmem:[#allocation2 + $0xb8] sm:$0xf] }
  0xcf   :  { %v410_v25 = vunpack.c.l.b16 %v317_v23  ;;  %v5525_v23 = vld [vmem:[#allocation2 + $0xb8] sm:$0x30] }
  0xd1   :  { %v425_v27 = vpack.c.b16 %v410_v25, %v409_v24  ;;  %v5518_v24 = vld [vmem:[#allocation2 + $0x80] sm:$0xff]  ;;  %v4807_v25 = vor.u32 %v5525_v23, %v4806_v22 }
  0xd2   :  { %764 = vrot.lane.b32.xlu0 %v6170_v45, %s5983_s3 }
  0xd3   :  { %766 = vrot.lane.b32.xlu1 %v6168_v44, %s5983_s3  ;;  %433 = vrot.lane.b32.xlu2 %v425_v27, %s5981_s30 }
  0xd4   :  { %547 = vmatpush.bf16.msra.mxu1 %v425_v27 }
  0xda   :  { %890 = vrot.lane.b32.xlu0 %v6168_v44, %s5965_s21 }
  0xdb   :  { %638 = vrot.lane.b32.xlu1 %v6160_v26, %s5982_s0  ;;  %640 = vrot.lane.b32.xlu2 %v6170_v45, %s5982_s0 }
  0xe2   :  { %888 = vrot.lane.b32.xlu0 %v6170_v45, %s5965_s21 }
  0xe3   :  { %636 = vrot.lane.b32.xlu1 %v429_v57, %s5982_s0  ;;  %762 = vrot.lane.b32.xlu2 %v6160_v26, %s5983_s3 }
  0xea   :  { %886 = vrot.lane.b32.xlu0 %v6160_v26, %s5965_s21  ;;  %v5502_v26 = vld [vmem:[#allocation2] sm:$0xff] }
  0xeb   :  { %634 = vrot.lane.b32.xlu1 %v428_v6, %s5982_s0  ;;  %760 = vrot.lane.b32.xlu2 %v429_v57, %s5983_s3 }
  0xec   :  { %548 = vmatmul.bf16.vlgmr.msra.gmra.mxu1 %v5502_v26 }
  0xf2   :  { %884 = vrot.lane.b32.xlu0 %v429_v57, %s5965_s21 }
  0xf3   :  { %632 = vrot.lane.b32.xlu1 %v427_v7, %s5982_s0  ;;  %758 = vrot.lane.b32.xlu2 %v428_v6, %s5983_s3 }
  0xfa   :  { %882 = vrot.lane.b32.xlu0 %v428_v6, %s5965_s21 }
  0xfb   :  { %630 = vrot.lane.b32.xlu1 %v426_v19, %s5982_s0  ;;  %756 = vrot.lane.b32.xlu2 %v427_v7, %s5983_s3 }
  0xfc   :  { %553 = vmatmul.bf16.gmra.mxu1 %v5503_v33  ;;  %v5529_v33 = vld [vmem:[#allocation2 + $0xd8] sm:$0xff] }
 0x102   :  { %880 = vrot.lane.b32.xlu0 %v427_v7, %s5965_s21 }
 0x103   :  { %628 = vrot.lane.b32.xlu1 %v425_v27, %s5982_s0  ;;  %754 = vrot.lane.b32.xlu2 %v426_v19, %s5983_s3 }
 0x10b   :  { %878 = vrot.lane.b32.xlu1 %v426_v19, %s5965_s21  ;;  %752 = vrot.lane.b32.xlu2 %v425_v27, %s5983_s3  ;;  %v5517_v19 = vld [vmem:[#allocation2 + $0x78] sm:$0xff] }
 0x10c   :  { %v446_v18 = vpop.permute.xlu2 %445  ;;  %558 = vmatmul.bf16.gmra.mxu1 %v5504_v40  ;;  %v5531_v40 = vld [vmem:[#allocation2 + $0xe8] sm:$0x30] }
 0x10d   :  { %v444_v30 = vpop.permute.xlu0 %443 }
 0x113   :  { %876 = vrot.lane.b32.xlu2 %v425_v27, %s5965_s21 }
 0x11c   :  { %563 = vmatmul.bf16.gmra.mxu1 %v5505_v48 }
 0x11d   :  { %v440_v28 = vpop.permute.xlu2 %439 }
 0x125   :  { %v448_v29 = vpop.permute.xlu1 %447 }
 0x126   :  { %457 = vmatpush.bf16.msra.mxu0 %v448_v29  ;;  %v5519_v29 = vld [vmem:[#allocation2 + $0x88] sm:$0x30] }
 0x12a   :  { %458 = vmatpush.bf16.msra.mxu0 %v446_v18  ;;  %v5528_v18 = vld [vmem:[#allocation2 + $0xd0] sm:$0xff] }
 0x12c   :  { %568 = vmatmul.bf16.gmra.mxu1 %v5506_v56 }
 0x12d   :  { %v434_v31 = vpop.permute.xlu2 %433  ;;  %v442_v32 = vpop.permute.xlu1 %441 }
 0x12e   :  { %459 = vmatpush.bf16.msra.mxu0 %v444_v30 }
 0x132   :  { %460 = vmatpush.bf16.msra.mxu0 %v442_v32 }
 0x134   :  { %v438_v34 = vpop.permute.xlu0 %437 }
 0x135   :  { %v641_v35 = vpop.permute.xlu2 %640 }
 0x136   :  { %461 = vmatpush.bf16.msra.mxu0 %v440_v28  ;;  %v4782_v28 = vld [vmem:[#allocation2 + $0x88] sm:$0xf] }
 0x13a   :  { %462 = vmatpush.bf16.msra.mxu0 %v438_v34 }
 0x13c   :  { %v643_v38 = vpop.permute.xlu0 %642  ;;  %573 = vmatmul.bf16.gmra.mxu1 %v4759_v2 }
 0x13d   :  { %v436_v36 = vpop.permute.xlu1 %435  ;;  %v763_v37 = vpop.permute.xlu2 %762  ;;  %652 = vmatpush.bf16.msra.mxu2 %v643_v38 }
 0x13e   :  { %463 = vmatpush.bf16.msra.mxu0 %v436_v36  ;;  %v5530_v36 = vld [vmem:[#allocation2 + $0xe0] sm:$0xff] }
 0x141   :  { %653 = vmatpush.bf16.msra.mxu2 %v641_v35 }
 0x142   :  { %464 = vmatpush.bf16.msra.mxu0 %v434_v31  ;;  %v4783_v31 = vor.u32 %v5519_v29, %v4782_v28 }
 0x144   :  { %v765_v43 = vpop.permute.xlu0 %764 }
 0x145   :  { %v767_v41 = vpop.permute.xlu1 %766  ;;  %465 = vmatmul.bf16.vlgmr.msra.gmra.mxu0 %v5508_v39  ;;  %v761_v42 = vpop.permute.xlu2 %760  ;;  %v4830_v39 = vld [vmem:[#allocation2 + $0xe8] sm:$0xf] }
 0x146   :  { %776 = vmatpush.bf16.msra.mxu3 %v767_v41  ;;  %v4831_v41 = vor.u32 %v5531_v40, %v4830_v39 }
 0x14a   :  { %777 = vmatpush.bf16.msra.mxu3 %v765_v43 }
 0x14c   :  { %v891_v46 = vpop.permute.xlu0 %890 }
 0x14d   :  { %v639_v44 = vpop.permute.xlu1 %638  ;;  %v759_v45 = vpop.permute.xlu2 %758  ;;  %900 = vmatpush.bf16.msrb.mxu0 %v891_v46 }
 0x14e   :  { %654 = vmatpush.bf16.msra.mxu2 %v639_v44  ;;  %778 = vmatpush.bf16.msra.mxu3 %v763_v37 }
 0x152   :  { %779 = vmatpush.bf16.msra.mxu3 %v761_v42 }
 0x154   :  { %v889_v51 = vpop.permute.xlu0 %888 }
 0x155   :  { %v637_v49 = vpop.permute.xlu1 %636  ;;  %470 = vmatmul.bf16.gmra.mxu0 %v5509_v47  ;;  %v757_v50 = vpop.permute.xlu2 %756 }
 0x156   :  { %655 = vmatpush.bf16.msra.mxu2 %v637_v49  ;;  %780 = vmatpush.bf16.msra.mxu3 %v759_v45 }
 0x157   :  { %901 = vmatpush.bf16.msrb.mxu0 %v889_v51 }
 0x15a   :  { %781 = vmatpush.bf16.msra.mxu3 %v757_v50 }
 0x15c   :  { %v887_v54 = vpop.permute.xlu0 %886 }
 0x15d   :  { %v635_v52 = vpop.permute.xlu1 %634  ;;  %v755_v53 = vpop.permute.xlu2 %754  ;;  %902 = vmatpush.bf16.msrb.mxu0 %v887_v54 }
 0x15e   :  { %656 = vmatpush.bf16.msra.mxu2 %v635_v52  ;;  %782 = vmatpush.bf16.msra.mxu3 %v755_v53 }
 0x164   :  { %v885_v60 = vpop.permute.xlu0 %884 }
 0x165   :  { %v633_v57 = vpop.permute.xlu1 %632  ;;  %475 = vmatmul.bf16.gmra.mxu0 %v5510_v55  ;;  %v753_v58 = vpop.permute.xlu2 %752 }
 0x166   :  { %657 = vmatpush.bf16.msra.mxu2 %v633_v57  ;;  %783 = vmatpush.bf16.msra.mxu3 %v753_v58 }
 0x167   :  { %903 = vmatpush.bf16.msrb.mxu0 %v885_v60 }
 0x169   :  { %784 = vmatmul.bf16.vlgmr.msra.gmra.mxu3 %v5520_v59  ;;  %v549_v27 = vpop.f32.mrf.mxu1 }
 0x16c   :  { %v883_v62 = vpop.permute.xlu0 %882 }
 0x16d   :  { %v631_v61 = vpop.permute.xlu1 %630  ;;  %904 = vmatpush.bf16.msrb.mxu0 %v883_v62  ;;  %v877_v8 = vpop.permute.xlu2 %876 }
 0x16e   :  { %658 = vmatpush.bf16.msra.mxu2 %v631_v61 }
 0x171   :  { %v551_v50 = vpop.f32.mrf.mxu1 }
 0x174   :  { %v881_v6 = vpop.permute.xlu0 %880 }
 0x175   :  { %v629_v3 = vpop.permute.xlu1 %628  ;;  %480 = vmatmul.bf16.gmra.mxu0 %v5511_v63 }
 0x176   :  { %659 = vmatpush.bf16.msra.mxu2 %v629_v3  ;;  %905 = vmatpush.bf16.msrb.mxu0 %v881_v6 }
 0x179   :  { %660 = vmatmul.bf16.vlgmr.msra.gmra.mxu2 %v5514_v4  ;;  %789 = vmatmul.bf16.gmra.mxu3 %v5521_v5  ;;  %v554_v54 = vpop.f32.mrf.mxu1 }
 0x17d   :  { %v879_v7 = vpop.permute.xlu1 %878 }
 0x17e   :  { %906 = vmatpush.bf16.msrb.mxu0 %v879_v7 }
 0x181   :  { %v556_v58 = vpop.f32.mrf.mxu1 }
 0x182   :  { %907 = vmatpush.bf16.msrb.mxu0 %v877_v8 }
 0x185   :  { %485 = vmatmul.bf16.gmra.mxu0 %v5512_v9 }
 0x189   :  { %665 = vmatmul.bf16.gmra.mxu2 %v5515_v10  ;;  %794 = vmatmul.bf16.gmra.mxu3 %v5522_v11  ;;  %v559_v63 = vpop.f32.mrf.mxu1 }
 0x191   :  { %v561_v4 = vpop.f32.mrf.mxu1 }
 0x195   :  { %490 = vmatmul.bf16.gmra.mxu0 %v4735_v14 }
 0x199   :  { %670 = vmatmul.bf16.gmra.mxu2 %v5516_v15  ;;  %799 = vmatmul.bf16.gmra.mxu3 %v5523_v16  ;;  %v564_v8 = vpop.f32.mrf.mxu1 }
 0x1a1   :  { %v566_v12 = vpop.f32.mrf.mxu1 }
 0x1a5   :  { %908 = vmatmul.bf16.vlgmr.msrb.gmra.mxu0 %v5526_v17 }
 0x1a9   :  { %675 = vmatmul.bf16.gmra.mxu2 %v5517_v19  ;;  %804 = vmatmul.bf16.gmra.mxu3 %v5524_v20  ;;  %v569_v16 = vpop.f32.mrf.mxu1 }
 0x1b5   :  { %913 = vmatmul.bf16.gmra.mxu0 %v5527_v21 }
 0x1b9   :  { %680 = vmatmul.bf16.gmra.mxu2 %v5518_v24  ;;  %809 = vmatmul.bf16.gmra.mxu3 %v4807_v25  ;;  %v571_v25 = vpop.f32.mrf.mxu1 }
 0x1c2   :  { %v466_v26 = vpop.f32.mrf.mxu0 }
 0x1c3   :  { %v550_v30 = vadd.f32 %v549_v27, %v466_v26 }
 0x1c5   :  { %918 = vmatmul.bf16.gmra.mxu0 %v5528_v18 }
 0x1c9   :  { %685 = vmatmul.bf16.gmra.mxu2 %v4783_v31 }
 0x1ca   :  { %v468_v32 = vpop.f32.mrf.mxu0 }
 0x1cb   :  { %v552_v21 = vadd.f32 %v551_v50, %v468_v32 }
 0x1d2   :  { %v471_v34 = vpop.f32.mrf.mxu0 }
 0x1d3   :  { %v555_v22 = vadd.f32 %v554_v54, %v471_v34 }
 0x1d5   :  { %923 = vmatmul.bf16.gmra.mxu0 %v5529_v33 }
 0x1da   :  { %v473_v35 = vpop.f32.mrf.mxu0 }
 0x1db   :  { %v557_v27 = vadd.f32 %v556_v58, %v473_v35 }
 0x1e2   :  { %v476_v37 = vpop.f32.mrf.mxu0 }
 0x1e3   :  { %v560_v26 = vadd.f32 %v559_v63, %v476_v37 }
 0x1e5   :  { %928 = vmatmul.bf16.gmra.mxu0 %v5530_v36 }
 0x1ea   :  { %v478_v38 = vpop.f32.mrf.mxu0 }
 0x1eb   :  { %v562_v31 = vadd.f32 %v561_v4, %v478_v38 }
 0x1ec   :  { %v785_v45 = vpop.f32.mrf.mxu3 }
 0x1f2   :  { %v6227_v42 = vpop.f32.mrf.mxu0 }
 0x1f4   :  { %v787_v52 = vpop.f32.mrf.mxu3 }
 0x1f5   :  { %933 = vmatmul.bf16.gmra.mxu0 %v4831_v41 }
 0x1fa   :  { %v6229_v43 = vpop.f32.mrf.mxu0 }
 0x1fb   :  { %v567_v37 = vadd.f32 %v566_v12, %v6229_v43 }
 0x1fc   :  { %v661_v44 = vpop.f32.mrf.mxu2  ;;  %v790_v57 = vpop.f32.mrf.mxu3 }
 0x1fd   :  { %v691_v46 = vadd.f32 %v661_v44, %v550_v30 }
 0x1ff   :  { %v815_v47 = vadd.f32 %v785_v45, %v691_v46  ;;  %v565_v45 = vadd.f32 %v564_v8, %v6227_v42 }
 0x202   :  { %v6231_v48 = vpop.f32.mrf.mxu0 }
 0x203   :  { %v570_v42 = vadd.f32 %v569_v16, %v6231_v48 }
 0x204   :  { %v663_v51 = vpop.f32.mrf.mxu2  ;;  %v792_v62 = vpop.f32.mrf.mxu3 }
 0x205   :  { %v692_v24 = vadd.f32 %v663_v51, %v552_v21 }
 0x207   :  { %v816_v30 = vadd.f32 %v787_v52, %v692_v24 }
 0x20a   :  { %v6233_v49 = vpop.f32.mrf.mxu0 }
 0x20c   :  { %v666_v55 = vpop.f32.mrf.mxu2  ;;  %v795_v2 = vpop.f32.mrf.mxu3 }
 0x20d   :  { %v693_v18 = vadd.f32 %v666_v55, %v555_v22 }
 0x20f   :  { %v817_v33 = vadd.f32 %v790_v57, %v693_v18  ;;  %v572_v57 = vadd.f32 %v571_v25, %v6233_v49 }
 0x212   :  { %v6235_v53 = vpop.f32.mrf.mxu0 }
 0x214   :  { %v668_v59 = vpop.f32.mrf.mxu2  ;;  %v797_v6 = vpop.f32.mrf.mxu3 }
 0x215   :  { %v694_v28 = vadd.f32 %v668_v59, %v557_v27 }
 0x217   :  { %v818_v40 = vadd.f32 %v792_v62, %v694_v28 }
 0x21a   :  { %v6237_v56 = vpop.f32.mrf.mxu0 }
 0x21c   :  { %v671_v1 = vpop.f32.mrf.mxu2  ;;  %v800_v11 = vpop.f32.mrf.mxu3 }
 0x21d   :  { %v695_v36 = vadd.f32 %v671_v1, %v560_v26 }
 0x21f   :  { %v819_v46 = vadd.f32 %v795_v2, %v695_v36 }
 0x222   :  { %v909_v60 = vpop.f32.mrf.mxu0 }
 0x223   :  { %v6239_v61 = vadd.f32 %v909_v60, %v815_v47  ;;  %v574_v47 = vpop.f32.mrf.mxu1 }
 0x224   :  { %v673_v5 = vpop.f32.mrf.mxu2  ;;  %v802_v15 = vpop.f32.mrf.mxu3  ;;  %v575_v59 = vadd.f32 %v574_v47, %v6235_v53 }
 0x225   :  { %v696_v41 = vadd.f32 %v673_v5, %v562_v31  ;;  %v983_v51 = vmul.f32 %v6239_v61, %v6239_v61  ;;  %v953_v60 = vsel %vm952_vm0, %v6239_v61, 0.0 }
 0x227   :  { %v820_v52 = vadd.f32 %v797_v6, %v696_v41 }
 0x22a   :  { %v911_v0 = vpop.f32.mrf.mxu0 }
 0x22b   :  { %v6241_v39 = vadd.f32 %v911_v0, %v816_v30  ;;  %v576_v27 = vpop.f32.mrf.mxu1 }
 0x22c   :  { %v676_v9 = vpop.f32.mrf.mxu2  ;;  %v805_v20 = vpop.f32.mrf.mxu3  ;;  %v577_v41 = vadd.f32 %v576_v27, %v6237_v56 }
 0x22d   :  { %v984_v38 = vmul.f32 %v6241_v39, %v6241_v39  ;;  %v697_v50 = vadd.f32 %v676_v9, %v565_v45  ;;  %v954_v43 = vsel %vm952_vm0, %v6241_v39, 0.0 }
 0x22e   :  { %v955_v4 = vadd.f32 %v954_v43, %v953_v60 }
 0x22f   :  { %v996_v1 = vsel %vm952_vm0, %v984_v38, 0.0  ;;  %v821_v48 = vadd.f32 %v800_v11, %v697_v50 }
 0x232   :  { %v914_v3 = vpop.f32.mrf.mxu0 }
 0x233   :  { %v6243_v44 = vadd.f32 %v914_v3, %v817_v33  ;;  %v995_v3 = vsel %vm952_vm0, %v983_v51, 0.0 }
 0x234   :  { %v678_v13 = vpop.f32.mrf.mxu2  ;;  %v807_v32 = vpop.f32.mrf.mxu3  ;;  %v997_v11 = vadd.f32 %v996_v1, %v995_v3 }
 0x235   :  { %v985_v54 = vmul.f32 %v6243_v44, %v6243_v44  ;;  %v698_v58 = vadd.f32 %v678_v13, %v567_v37  ;;  %v956_v49 = vsel %vm952_vm0, %v6243_v44, 0.0 }
 0x236   :  { %v957_v12 = vadd.f32 %v956_v49, %v955_v4 }
 0x237   :  { %v998_v53 = vsel %vm952_vm0, %v985_v54, 0.0 }
 0x238   :  { %v999_v24 = vadd.f32 %v998_v53, %v997_v11 }
 0x23a   :  { %v916_v7 = vpop.f32.mrf.mxu0 }
 0x23b   :  { %v6246_v35 = vadd.f32 %v916_v7, %v818_v40  ;;  %v822_v7 = vadd.f32 %v802_v15, %v698_v58 }
 0x23c   :  { %v681_v19 = vpop.f32.mrf.mxu2  ;;  %v810_v16 = vpop.f32.mrf.mxu3 }
 0x23d   :  { %v986_v62 = vmul.f32 %v6246_v35, %v6246_v35  ;;  %v699_v2 = vadd.f32 %v681_v19, %v570_v42  ;;  %v958_v8 = vsel %vm952_vm0, %v6246_v35, 0.0 }
 0x23e   :  { %v959_v25 = vadd.f32 %v958_v8, %v957_v12 }
 0x23f   :  { %v1000_v13 = vsel %vm952_vm0, %v986_v62, 0.0  ;;  %v823_v19 = vadd.f32 %v805_v20, %v699_v2 }
 0x240   :  { %v1001_v20 = vadd.f32 %v1000_v13, %v999_v24 }
 0x242   :  { %v919_v10 = vpop.f32.mrf.mxu0 }
 0x243   :  { %v6255_v55 = vadd.f32 %v919_v10, %v819_v46 }
 0x244   :  { %v683_v29 = vpop.f32.mrf.mxu2  ;;  %v812_v58 = vpop.f32.mrf.mxu3 }
 0x245   :  { %v987_v5 = vmul.f32 %v6255_v55, %v6255_v55  ;;  %v700_v9 = vadd.f32 %v683_v29, %v572_v57  ;;  %v960_v21 = vsel %vm952_vm0, %v6255_v55, 0.0 }
 0x246   :  { %v961_v30 = vadd.f32 %v960_v21, %v959_v25 }
 0x247   :  { %v824_v18 = vadd.f32 %v807_v32, %v700_v9 }
 0x24a   :  { %v921_v14 = vpop.f32.mrf.mxu0 }
 0x24b   :  { %v6266_v63 = vadd.f32 %v921_v14, %v820_v52 }
 0x24c   :  { %v686_v0 = vpop.f32.mrf.mxu2 }
 0x24d   :  { %v988_v14 = vmul.f32 %v6266_v63, %v6266_v63  ;;  %v701_v22 = vadd.f32 %v686_v0, %v575_v59  ;;  %v962_v26 = vsel %vm952_vm0, %v6266_v63, 0.0 }
 0x24e   :  { %v963_v45 = vadd.f32 %v962_v26, %v961_v30 }
 0x24f   :  { %v1004_v31 = vsel %vm952_vm0, %v988_v14, 0.0 }
 0x252   :  { %v924_v17 = vpop.f32.mrf.mxu0 }
 0x253   :  { %v6277_v10 = vadd.f32 %v924_v17, %v821_v48  ;;  %v1002_v17 = vsel %vm952_vm0, %v987_v5, 0.0 }
 0x254   :  { %v1003_v32 = vadd.f32 %v1002_v17, %v1001_v20  ;;  %v688_v46 = vpop.f32.mrf.mxu2 }
 0x255   :  { %v989_v28 = vmul.f32 %v6277_v10, %v6277_v10  ;;  %v964_v33 = vsel %vm952_vm0, %v6277_v10, 0.0  ;;  %v702_v54 = vadd.f32 %v688_v46, %v577_v41  ;;  %v4834_v46 = vld [vmem:[%s7412_s8] sm:$0xf] }
 0x256   :  { %v1005_v51 = vadd.f32 %v1004_v31, %v1003_v32  ;;  %v965_v52 = vadd.f32 %v964_v33, %v963_v45  ;;  %v5532_v32 = vld [vmem:[%s7412_s8 + $0x4] sm:$0xf]  ;;  %v4836_v45 = vld [vmem:[%s7412_s8 + $0x8] sm:$0xf0] }
 0x257   :  { %v1006_v37 = vsel %vm952_vm0, %v989_v28, 0.0  ;;  %v826_v49 = vadd.f32 %v812_v58, %v702_v54 }
 0x258   :  { %v1007_v43 = vadd.f32 %v1006_v37, %v1005_v51  ;;  %v5533_v37 = vld [vmem:[%s7412_s8 + $0x4] sm:$0xf0]  ;;  %s5984_s8 = smov 32  }
 0x25a   :  { %v926_v23 = vpop.f32.mrf.mxu0 }
 0x25b   :  { %v6284_v15 = vadd.f32 %v926_v23, %v822_v7  ;;  %v825_v23 = vadd.f32 %v810_v16, %v701_v22 }
 0x25d   :  { %v990_v36 = vmul.f32 %v6284_v15, %v6284_v15  ;;  %v966_v47 = vsel %vm952_vm0, %v6284_v15, 0.0 }
 0x25e   :  { %v967_v59 = vadd.f32 %v966_v47, %v965_v52 }
 0x25f   :  { %v1008_v42 = vsel %vm952_vm0, %v990_v36, 0.0 }
 0x260   :  { %v1009_v1 = vadd.f32 %v1008_v42, %v1007_v43  ;;  %v951_v43 = vld [vmem:[%s7417_s13] sm:$0x3] }
 0x262   :  { %v929_v34 = vpop.f32.mrf.mxu0 }
 0x263   :  { %v6291_v29 = vadd.f32 %v929_v34, %v823_v19 }
 0x265   :  { %v991_v38 = vmul.f32 %v6291_v29, %v6291_v29  ;;  %v968_v56 = vsel %vm952_vm0, %v6291_v29, 0.0 }
 0x266   :  { %v969_v48 = vadd.f32 %v968_v56, %v967_v59 }
 0x267   :  { %v1010_v60 = vsel %vm952_vm0, %v991_v38, 0.0  ;;  %v4835_v38 = vor.u32 %v5533_v37, %v4834_v46 }
 0x268   :  { %v1011_v4 = vadd.f32 %v1010_v60, %v1009_v1 }
 0x269   :  { %1127 = vmatpush.bf16.msrb.mxu1 %v4835_v38 }
 0x26a   :  { %v931_v6 = vpop.f32.mrf.mxu0 }
 0x26b   :  { %v6298_v40 = vadd.f32 %v931_v6, %v824_v18 }
 0x26d   :  { %v992_v57 = vmul.f32 %v6298_v40, %v6298_v40  ;;  %v970_v62 = vsel %vm952_vm0, %v6298_v40, 0.0 }
 0x26e   :  { %v971_v53 = vadd.f32 %v970_v62, %v969_v48 }
 0x26f   :  { %v1012_v2 = vsel %vm952_vm0, %v992_v57, 0.0 }
 0x270   :  { %v1013_v8 = vadd.f32 %v1012_v2, %v1011_v4 }
 0x272   :  { %v934_v34 = vpop.f32.mrf.mxu0 }
 0x273   :  { %v6306_v50 = vadd.f32 %v934_v34, %v825_v23  ;;  %v4839_v34 = vor.u32 %v5532_v32, %v4836_v45 }
 0x275   :  { %v993_v0 = vmul.f32 %v6306_v50, %v6306_v50  ;;  %v972_v3 = vsel %vm952_vm0, %v6306_v50, 0.0  ;;  %1166 = vmatpush.bf16.msrb.mxu2 %v4839_v34 }
 0x276   :  { %v973_v9 = vadd.f32 %v972_v3, %v971_v53 }
 0x277   :  { %v1014_v6 = vsel %vm952_vm0, %v993_v0, 0.0 }
 0x278   :  { %v1015_v13 = vadd.f32 %v1014_v6, %v1013_v8 }
 0x27a   :  { %v936_v5 = vpop.f32.mrf.mxu0 }
 0x27b   :  { %v950_v7 = vadd.f32 %v936_v5, %v826_v49 }
 0x27d   :  { %v975_v11 = vsel %vm974_vm1, %v950_v7, 0.0  ;;  %v994_v12 = vmul.f32 %v950_v7, %v950_v7 }
 0x27e   :  { %v976_v14 = vadd.f32 %v975_v11, %v973_v9 }
 0x27f   :  { %v1016_v16 = vsel %vm974_vm1, %v994_v12, 0.0 }
 0x280   :  { %v977_v19 = vrot.slane %v976_v14, 4  ;;  %v1017_v21 = vadd.f32 %v1016_v16, %v1015_v13 }
 0x282   :  { %v978_v22 = vadd.f32 %v977_v19, %v976_v14  ;;  %v1018_v24 = vrot.slane %v1017_v21, 4 }
 0x284   :  { %v979_v25 = vrot.slane %v978_v22, 2  ;;  %v1019_v17 = vadd.f32 %v1018_v24, %v1017_v21 }
 0x286   :  { %v980_v27 = vadd.f32 %v979_v25, %v978_v22  ;;  %v1020_v18 = vrot.slane %v1019_v17, 2 }
 0x288   :  { %v981_v26 = vrot.slane %v980_v27, 1  ;;  %v1021_v28 = vadd.f32 %v1020_v18, %v1019_v17 }
 0x28a   :  { %v982_v20 = vadd.f32 %v981_v26, %v980_v27  ;;  %v1022_v30 = vrot.slane %v1021_v28, 1 }
 0x28c   :  { %v1023_v31 = vadd.f32 %v1022_v30, %v1021_v28  ;;  %v1024_v23 = vmul.f32 0.010869565, %v982_v20 }
 0x28e   :  { %v1025_v33 = vmul.f32 0.010869565, %v1023_v31  ;;  %v1026_v36 = vmul.f32 %v1024_v23, %v1024_v23 }
 0x290   :  { %v1027_v41 = vsub.f32 %v1025_v33, %v1026_v36 }
 0x292   :  { %v1028_v47 = vmax.f32 %v1027_v41, 0.0 }
 0x294   :  { %v1029_v51 = vadd.f32 1e-05, %v1028_v47 }
 0x296   :  { %5700 = vrsqrt.f32 %v1029_v51  ;;  %vm1036_vm3 = vweird.f32 %v1029_v51 }
 0x29c   :  { %v5701_v52 = vpop.eup %5700 }
 0x29d   :  { %v1031_v54 = vmul.f32 %v5701_v52, %v1029_v51  ;;  %vm1037_vm2 = vweird.f32 %v5701_v52 }
 0x29e   :  { %vm1038_vm4 = vmor %vm1036_vm3, %vm1037_vm2  ;;  %vm2323_vm3 = vcmask 1043456  }
 0x29f   :  { %v1032_v42 = vmul.f32 %v5701_v52, %v1031_v54 }
 0x2a1   :  { %v1033_v56 = vmul.f32 0.5, %v1032_v42 }
 0x2a3   :  { %v1034_v57 = vsub.f32 1.5, %v1033_v56 }
 0x2a5   :  { %v1035_v58 = vmul.f32 %v5701_v52, %v1034_v57 }
 0x2a7   :  { %v1039_v59 = vsel %vm1038_vm4, %v5701_v52, %v1035_v58  ;;  %vm2313_vm4 = vcmask 195584  }
 0x2a8   :  { %v1040_v60 = vmul.f32 %v1039_v59, %v951_v43 }
 0x2aa   :  { %v1041_v62 = vmul.f32 %v1040_v60, %v1024_v23  ;;  %v1046_v0 = vperm.slane %v1040_v60, 0 }
 0x2ac   :  { %v1043_v1 = vrot.slane %v1041_v62, 7  ;;  %v1058_v48 = vmul.f32 %v1046_v0, %v950_v7  ;;  %v1057_v2 = vmul.f32 %v1046_v0, %v6306_v50  ;;  %v1047_v4 = vmul.f32 %v1046_v0, %v6239_v61 }
 0x2ad   :  { %v1048_v53 = vmul.f32 %v1046_v0, %v6241_v39  ;;  %v1055_v11 = vmul.f32 %v1046_v0, %v6291_v29  ;;  %v1056_v12 = vmul.f32 %v1046_v0, %v6298_v40  ;;  %v1049_v25 = vmul.f32 %v1046_v0, %v6243_v44 }
 0x2ae   :  { %v1045_v49 = vsub.f32 %v951_v43, %v1043_v1  ;;  %v1050_v29 = vmul.f32 %v1046_v0, %v6246_v35  ;;  %v1051_v28 = vmul.f32 %v1046_v0, %v6255_v55  ;;  %v1052_v20 = vmul.f32 %v1046_v0, %v6266_v63 }
 0x2af   :  { %v1053_v35 = vmul.f32 %v1046_v0, %v6277_v10  ;;  %v1054_v36 = vmul.f32 %v1046_v0, %v6284_v15 }
 0x2b0   :  { %v1059_v3 = vperm.slane %v1045_v49, 1 }
 0x2b2   :  { %v1060_v5 = vadd.f32 %v1059_v3, %v1047_v4  ;;  %v1061_v6 = vadd.f32 %v1059_v3, %v1048_v53  ;;  %v1068_v14 = vadd.f32 %v1059_v3, %v1055_v11  ;;  %v1069_v16 = vadd.f32 %v1059_v3, %v1056_v12 }
 0x2b3   :  { %v1070_v7 = vadd.f32 %v1059_v3, %v1057_v2  ;;  %v1071_v19 = vadd.f32 %v1059_v3, %v1058_v48  ;;  %v1062_v40 = vadd.f32 %v1059_v3, %v1049_v25  ;;  %v1063_v17 = vadd.f32 %v1059_v3, %v1050_v29 }
 0x2b4   :  { %v1072_v8 = vmax.f32 %v1060_v5, 0.0  ;;  %v1073_v9 = vmax.f32 %v1061_v6, 0.0  ;;  %v1080_v61 = vmax.f32 %v1068_v14, 0.0  ;;  %v1081_v50 = vmax.f32 %v1069_v16, 0.0 }
 0x2b5   :  { %v1082_v39 = vmax.f32 %v1070_v7, 0.0  ;;  %v1083_v21 = vmax.f32 %v1071_v19, 0.0  ;;  %v1074_v27 = vmax.f32 %v1062_v40, 0.0  ;;  %v1075_v18 = vmax.f32 %v1063_v17, 0.0 }
 0x2b6   :  { %v1084_v13 = vpack.c.bf16 %v1073_v9, %v1072_v8  ;;  %v1088_v22 = vpack.c.bf16 %v1081_v50, %v1080_v61  ;;  %v1064_v30 = vadd.f32 %v1059_v3, %v1051_v28  ;;  %v1065_v31 = vadd.f32 %v1059_v3, %v1052_v20 }
 0x2b7   :  { %v1089_v24 = vpack.c.bf16 %v1083_v21, %v1082_v39  ;;  %v1085_v26 = vpack.c.bf16 %v1075_v18, %v1074_v27  ;;  %v1066_v41 = vadd.f32 %v1059_v3, %v1053_v35  ;;  %v1067_v32 = vadd.f32 %v1059_v3, %v1054_v36 }
 0x2b8   :  { %4840 = vmatmul.msk.bf16.vlgmr.msrb.gmra.mxu1 %vm952_vm0, %v1084_v13  ;;  %4846 = vmatmul.msk.bf16.vlgmr.msrb.gmra.mxu2 %vm952_vm0, %v1084_v13  ;;  %v1076_v23 = vmax.f32 %v1064_v30, 0.0  ;;  %v1077_v33 = vmax.f32 %v1065_v31, 0.0 }
 0x2b9   :  { %v1078_v45 = vmax.f32 %v1066_v41, 0.0  ;;  %v1079_v46 = vmax.f32 %v1067_v32, 0.0 }
 0x2ba   :  { %v1086_v44 = vpack.c.bf16 %v1077_v33, %v1076_v23 }
 0x2bb   :  { %v1087_v55 = vpack.c.bf16 %v1079_v46, %v1078_v45 }
 0x2c8   :  { %4841 = vmatmul.msk.bf16.gmra.mxu1 %vm952_vm0, %v1085_v26  ;;  %4847 = vmatmul.msk.bf16.gmra.mxu2 %vm952_vm0, %v1085_v26 }
 0x2d8   :  { %4842 = vmatmul.msk.bf16.gmra.mxu1 %vm952_vm0, %v1086_v44  ;;  %4848 = vmatmul.msk.bf16.gmra.mxu2 %vm952_vm0, %v1086_v44 }
 0x2e8   :  { %4843 = vmatmul.msk.bf16.gmra.mxu1 %vm952_vm0, %v1087_v55  ;;  %4849 = vmatmul.msk.bf16.gmra.mxu2 %vm952_vm0, %v1087_v55 }
 0x2f8   :  { %4844 = vmatmul.msk.bf16.gmra.mxu1 %vm952_vm0, %v1088_v22  ;;  %4850 = vmatmul.msk.bf16.gmra.mxu2 %vm952_vm0, %v1088_v22 }
 0x308   :  { %4845 = vmatmul.msk.bf16.gmra.mxu1 %vm952_vm0, %v1089_v24  ;;  %4851 = vmatmul.msk.bf16.gmra.mxu2 %vm952_vm0, %v1089_v24 }
 0x335   :  { %v1129_v63 = vpop.f32.mrf.mxu1 }
 0x33b   :  { %v1168_v10 = vpop.f32.mrf.mxu2 }
 0x33c   :  { %v6360_v15 = vpack.c.bf16 %v1168_v10, %v1129_v63 }
 0x33d   :  { %v1131_v34 = vpop.f32.mrf.mxu1 }
 0x33e   :  { %v1250_v8 = vunpack.c.l.b16 %v6360_v15 }
 0x343   :  { %v1170_v37 = vpop.f32.mrf.mxu2 }
 0x344   :  { %v6366_v4 = vpack.c.bf16 %v1170_v37, %v1131_v34 }
 0x345   :  { %v1134_v47 = vpop.f32.mrf.mxu1 }
 0x346   :  { %v1251_v6 = vunpack.c.l.b16 %v6366_v4 }
 0x348   :  { %v6374_v11 = vpack.c.b16 %v1251_v6, %v1250_v8  ;;  %v5546_v6 = vld [vmem:[#allocation4 + $0x60] sm:$0xff] }
 0x34b   :  { %v1173_v38 = vpop.f32.mrf.mxu2 }
 0x34c   :  { %v6362_v51 = vpack.c.bf16 %v1173_v38, %v1134_v47  ;;  %v1564_v38 = vunpack.c.h.b16 %v6366_v4 }
 0x34d   :  { %v1136_v52 = vpop.f32.mrf.mxu1 }
 0x34e   :  { %v1252_v22 = vunpack.c.l.b16 %v6362_v51  ;;  %v1565_v47 = vunpack.c.h.b16 %v6362_v51 }
 0x353   :  { %v1175_v54 = vpop.f32.mrf.mxu2 }
 0x354   :  { %v1201_v19 = vpack.c.bf16 %v1175_v54, %v1136_v52  ;;  %v1563_v54 = vunpack.c.h.b16 %v6360_v15 }
 0x355   :  { %v1139_v42 = vpop.f32.mrf.mxu1 }
 0x356   :  { %v1253_v21 = vunpack.c.l.b16 %v1201_v19  ;;  %v1566_v34 = vunpack.c.h.b16 %v1201_v19  ;;  %v5547_v19 = vld [vmem:[#allocation4 + $0x68] sm:$0xff] }
 0x358   :  { %v6385_v24 = vpack.c.b16 %v1253_v21, %v1252_v22  ;;  %v1576_v52 = vpack.c.b16 %v1566_v34, %v1565_v47  ;;  %v5541_v22 = vld [vmem:[#allocation4 + $0x38] sm:$0xff] }
 0x35b   :  { %v1178_v56 = vpop.f32.mrf.mxu2 }
 0x35c   :  { %v6364_v57 = vpack.c.bf16 %v1178_v56, %v1139_v42  ;;  %v1575_v42 = vpack.c.b16 %v1564_v38, %v1563_v54 }
 0x35d   :  { %v1141_v43 = vpop.f32.mrf.mxu1 }
 0x35e   :  { %v1254_v32 = vunpack.c.l.b16 %v6364_v57  ;;  %v1567_v10 = vunpack.c.h.b16 %v6364_v57 }
 0x363   :  { %v1180_v58 = vpop.f32.mrf.mxu2 }
 0x364   :  { %v1203_v31 = vpack.c.bf16 %v1180_v58, %v1141_v43 }
 0x365   :  { %v1144_v59 = vpop.f32.mrf.mxu1 }
 0x366   :  { %v1255_v35 = vunpack.c.l.b16 %v1203_v31  ;;  %v1568_v55 = vunpack.c.h.b16 %v1203_v31  ;;  %v4877_v31 = vld [vmem:[#allocation4 + $0x10] sm:$0xf] }
 0x368   :  { %v6401_v46 = vpack.c.b16 %v1255_v35, %v1254_v32  ;;  %v1577_v37 = vpack.c.b16 %v1568_v55, %v1567_v10 }
 0x36b   :  { %v1183_v60 = vpop.f32.mrf.mxu2 }
 0x36c   :  { %v1204_v0 = vpack.c.bf16 %v1183_v60, %v1144_v59 }
 0x36d   :  { %v1146_v62 = vpop.f32.mrf.mxu1 }
 0x36e   :  { %v1256_v2 = vunpack.c.l.b16 %v1204_v0  ;;  %v1569_v45 = vunpack.c.h.b16 %v1204_v0 }
 0x373   :  { %v1185_v1 = vpop.f32.mrf.mxu2 }
 0x374   :  { %v1205_v48 = vpack.c.bf16 %v1185_v1, %v1146_v62 }
 0x375   :  { %v1149_v49 = vpop.f32.mrf.mxu1 }
 0x376   :  { %v1257_v3 = vunpack.c.l.b16 %v1205_v48  ;;  %v1570_v36 = vunpack.c.h.b16 %v1205_v48 }
 0x378   :  { %v6368_v53 = vpack.c.b16 %v1257_v3, %v1256_v2  ;;  %v1578_v63 = vpack.c.b16 %v1570_v36, %v1569_v45  ;;  %v5537_v2 = vld [vmem:[#allocation4 + $0x18] sm:$0xff] }
 0x37a   :  { %1274 = vrot.lane.b32.xlu2 %v6368_v53, %s5982_s0 }
 0x37b   :  { %v1188_v5 = vpop.f32.mrf.mxu2 }
 0x37c   :  { %v1206_v12 = vpack.c.bf16 %v1188_v5, %v1149_v49 }
 0x37d   :  { %v1151_v9 = vpop.f32.mrf.mxu1 }
 0x37e   :  { %v1258_v16 = vunpack.c.l.b16 %v1206_v12  ;;  %v1571_v44 = vunpack.c.h.b16 %v1206_v12 }
 0x382   :  { %1268 = vrot.lane.b32.xlu2 %v6374_v11, %s5982_s0 }
 0x383   :  { %v1190_v13 = vpop.f32.mrf.mxu2 }
 0x384   :  { %v1207_v14 = vpack.c.bf16 %v1190_v13, %v1151_v9  ;;  %v5538_v13 = vld [vmem:[#allocation4 + $0x20] sm:$0xff] }
 0x385   :  { %v1154_v50 = vpop.f32.mrf.mxu1 }
 0x386   :  { %v1259_v7 = vunpack.c.l.b16 %v1207_v14  ;;  %v1572_v23 = vunpack.c.h.b16 %v1207_v14 }
 0x388   :  { %v6378_v61 = vpack.c.b16 %v1259_v7, %v1258_v16  ;;  %v1579_v41 = vpack.c.b16 %v1572_v23, %v1571_v44  ;;  %v5540_v7 = vld [vmem:[#allocation4 + $0x30] sm:$0xff] }
 0x389   :  { %v5536_v23 = vld [vmem:[#allocation4 + $0x10] sm:$0x70] }
 0x38a   :  { %1409 = vrot.lane.b32.xlu2 %v6378_v61, %s5965_s21  ;;  %1276 = vrot.lane.b32.xlu1 %v6378_v61, %s5982_s0 }
 0x38b   :  { %v1193_v39 = vpop.f32.mrf.mxu2 }
 0x38c   :  { %v1208_v25 = vpack.c.bf16 %v1193_v39, %v1154_v50  ;;  %v4862_v50 = vld [vmem:[#allocation4 + $0x28] sm:$0xf]  ;;  %v5539_v39 = vld [vmem:[#allocation4 + $0x28] sm:$0x70] }
 0x38d   :  { %v1156_v29 = vpop.f32.mrf.mxu1  ;;  %v4863_v21 = vor.u32 %v5539_v39, %v4862_v50 }
 0x38e   :  { %v1260_v27 = vunpack.c.l.b16 %v1208_v25  ;;  %v1573_v18 = vunpack.c.h.b16 %v1208_v25  ;;  %v5548_v25 = vld [vmem:[#allocation4 + $0x70] sm:$0x70] }
 0x392   :  { %1488 = vrot.lane.b32.xlu2 %v6368_v53, %s5984_s8  ;;  %1270 = vrot.lane.b32.xlu1 %v6385_v24, %s5982_s0 }
 0x393   :  { %v1195_v40 = vpop.f32.mrf.mxu2 }
 0x394   :  { %v1209_v17 = vpack.c.bf16 %v1195_v40, %v1156_v29  ;;  %v5534_v40 = vld [vmem:[#allocation4] sm:$0xff] }
 0x396   :  { %v1261_v26 = vunpack.c.l.b16 %v1209_v17  ;;  %v1574_v28 = vunpack.c.h.b16 %v1209_v17  ;;  %v4892_v17 = vld [vmem:[#allocation4 + $0x40] sm:$0xf] }
 0x398   :  { %v6391_v20 = vpack.c.b16 %v1261_v26, %v1260_v27  ;;  %v1580_v30 = vpack.c.b16 %v1574_v28, %v1573_v18  ;;  %v5542_v27 = vld [vmem:[#allocation4 + $0x40] sm:$0x70]  ;;  %v4907_v26 = vld [vmem:[#allocation4 + $0x58] sm:$0xf]  ;;  %v5545_v28 = vld [vmem:[#allocation4 + $0x58] sm:$0x70] }
 0x399   :  { %v4893_v18 = vor.u32 %v5542_v27, %v4892_v17 }
 0x39a   :  { %1403 = vrot.lane.b32.xlu2 %v6385_v24, %s5965_s21  ;;  %1492 = vrot.lane.b32.xlu1 %v6391_v20, %s5984_s8  ;;  %v1596_v33 = vsel %vm1295_vm5, %v1580_v30, 0  ;;  %v1353_v3 = vsel %vm1295_vm5, %v6391_v20, 0  ;;  %v5535_v30 = vld [vmem:[#allocation4 + $0x8] sm:$0xff] }
 0x39b   :  { %1278 = vrot.lane.b32.xlu0 %v6391_v20, %s5982_s0  ;;  %1600 = vmatpush.bf16.msra.mxu2 %v1596_v33  ;;  %v4878_v33 = vor.u32 %v5536_v23, %v4877_v31 }
 0x39f   :  { %1601 = vmatpush.bf16.msra.mxu2 %v1579_v41 }
 0x3a2   :  { %1482 = vrot.lane.b32.xlu2 %v6374_v11, %s5984_s8  ;;  %1407 = vrot.lane.b32.xlu1 %v6368_v53, %s5965_s21 }
 0x3a3   :  { %1272 = vrot.lane.b32.xlu0 %v6401_v46, %s5982_s0  ;;  %1602 = vmatpush.bf16.msra.mxu2 %v1578_v63 }
 0x3a7   :  { %1603 = vmatpush.bf16.msra.mxu2 %v1577_v37 }
 0x3aa   :  { %1486 = vrot.lane.b32.xlu1 %v6401_v46, %s5984_s8 }
 0x3ab   :  { %1411 = vrot.lane.b32.xlu0 %v6391_v20, %s5965_s21  ;;  %1604 = vmatpush.bf16.msra.mxu2 %v1576_v52  ;;  %v4908_v20 = vor.u32 %v5545_v28, %v4907_v26 }
 0x3af   :  { %1605 = vmatpush.bf16.msra.mxu2 %v1575_v42 }
 0x3b2   :  { %1401 = vrot.lane.b32.xlu1 %v6374_v11, %s5965_s21  ;;  %4924 = vmatmul.msk.bf16.vlgmr.msra.gmra.mxu2 %vm1285_vm6, %v5546_v6 }
 0x3b3   :  { %1490 = vrot.lane.b32.xlu0 %v6378_v61, %s5984_s8 }
 0x3bb   :  { %1405 = vrot.lane.b32.xlu0 %v6401_v46, %s5965_s21 }
 0x3c2   :  { %4925 = vmatmul.msk.bf16.gmra.mxu2 %vm1285_vm6, %v5547_v19 }
 0x3c3   :  { %1484 = vrot.lane.b32.xlu0 %v6385_v24, %s5984_s8 }
 0x3d4   :  { %v1275_v56 = vpop.permute.xlu2 %1274 }
 0x3dc   :  { %v1269_v60 = vpop.permute.xlu2 %1268 }
 0x3e4   :  { %v1410_v0 = vpop.permute.xlu2 %1409 }
 0x3ec   :  { %v1489_v5 = vpop.permute.xlu2 %1488 }
 0x3f4   :  { %v1404_v12 = vpop.permute.xlu2 %1403 }
 0x3fc   :  { %v1277_v51 = vpop.permute.xlu1 %1276 }
 0x404   :  { %v1271_v15 = vpop.permute.xlu1 %1270 }
 0x40c   :  { %v1493_v57 = vpop.permute.xlu1 %1492 }
 0x40d   :  { %v1509_v43 = vsel %vm1295_vm5, %v1493_v57, 0  ;;  %v1279_v58 = vpop.permute.xlu0 %1278 }
 0x40e   :  { %v1297_v59 = vsel %vm1295_vm5, %v1279_v58, 0  ;;  %1513 = vmatpush.bf16.msra.mxu1 %v1509_v43 }
 0x40f   :  { %1301 = vmatpush.bf16.msrb.mxu3 %v1297_v59 }
 0x413   :  { %1302 = vmatpush.bf16.msrb.mxu3 %v1277_v51 }
 0x414   :  { %v1408_v49 = vpop.permute.xlu1 %1407 }
 0x415   :  { %v1273_v62 = vpop.permute.xlu0 %1272 }
 0x417   :  { %1303 = vmatpush.bf16.msrb.mxu3 %v1275_v56 }
 0x41b   :  { %1304 = vmatpush.bf16.msrb.mxu3 %v1273_v62 }
 0x41c   :  { %v1487_v8 = vpop.permute.xlu1 %1486 }
 0x41d   :  { %v1412_v1 = vpop.permute.xlu0 %1411 }
 0x41e   :  { %v1428_v48 = vsel %vm1295_vm5, %v1412_v1, 0 }
 0x41f   :  { %1305 = vmatpush.bf16.msrb.mxu3 %v1271_v15  ;;  %1432 = vmatpush.bf16.msra.mxu0 %v1428_v48 }
 0x423   :  { %1306 = vmatpush.bf16.msrb.mxu3 %v1269_v60  ;;  %1433 = vmatpush.bf16.msra.mxu0 %v1410_v0 }
 0x424   :  { %v1402_v14 = vpop.permute.xlu1 %1401 }
 0x425   :  { %v1491_v4 = vpop.permute.xlu0 %1490 }
 0x426   :  { %4864 = vmatmul.msk.bf16.vlgmr.msrb.gmra.mxu3 %vm1285_vm6, %v5537_v2  ;;  %1514 = vmatpush.bf16.msra.mxu1 %v1491_v4 }
 0x427   :  { %1357 = vmatpush.bf16.msra.mxu3 %v1353_v3  ;;  %1434 = vmatpush.bf16.msra.mxu0 %v1408_v49 }
 0x42a   :  { %1515 = vmatpush.bf16.msra.mxu1 %v1489_v5 }
 0x42b   :  { %1358 = vmatpush.bf16.msra.mxu3 %v6378_v61  ;;  %v5543_v61 = vld [vmem:[#allocation4 + $0x48] sm:$0xff] }
 0x42d   :  { %v1406_v9 = vpop.permute.xlu0 %1405 }
 0x42e   :  { %1435 = vmatpush.bf16.msra.mxu0 %v1406_v9  ;;  %1516 = vmatpush.bf16.msra.mxu1 %v1487_v8 }
 0x42f   :  { %1359 = vmatpush.bf16.msra.mxu3 %v6368_v53  ;;  %v1483_v53 = vpop.permute.xlu2 %1482 }
 0x432   :  { %1436 = vmatpush.bf16.msra.mxu0 %v1404_v12 }
 0x433   :  { %1360 = vmatpush.bf16.msra.mxu3 %v6401_v46 }
 0x435   :  { %v1485_v16 = vpop.permute.xlu0 %1484  ;;  %v1607_v63 = vpop.f32.mrf.mxu2 }
 0x436   :  { %4865 = vmatmul.msk.bf16.gmra.mxu3 %vm1285_vm6, %v5538_v13  ;;  %1437 = vmatpush.bf16.msra.mxu0 %v1402_v14 }
 0x437   :  { %1361 = vmatpush.bf16.msra.mxu3 %v6385_v24  ;;  %1517 = vmatpush.bf16.msra.mxu1 %v1485_v16  ;;  %v4922_v24 = vld [vmem:[#allocation4 + $0x70] sm:$0xf] }
 0x438   :  { %v4923_v29 = vor.u32 %v5548_v25, %v4922_v24 }
 0x439   :  { %4894 = vmatmul.msk.bf16.vlgmr.msra.gmra.mxu0 %vm1285_vm6, %v5540_v7 }
 0x43a   :  { %4926 = vmatmul.msk.bf16.gmra.mxu2 %vm1285_vm6, %v4923_v29 }
 0x43b   :  { %1362 = vmatpush.bf16.msra.mxu3 %v6374_v11  ;;  %1518 = vmatpush.bf16.msra.mxu1 %v1483_v53  ;;  %v5544_v11 = vld [vmem:[#allocation4 + $0x50] sm:$0xff] }
 0x43d   :  { %v1609_v47 = vpop.f32.mrf.mxu2 }
 0x43e   :  { %4909 = vmatmul.msk.bf16.vlgmr.msra.gmra.mxu1 %vm1285_vm6, %v5543_v61 }
 0x445   :  { %v1612_v42 = vpop.f32.mrf.mxu2 }
 0x446   :  { %4866 = vmatmul.msk.bf16.gmra.mxu3 %vm1285_vm6, %v4863_v21 }
 0x449   :  { %4895 = vmatmul.msk.bf16.gmra.mxu0 %vm1285_vm6, %v5541_v22 }
 0x44d   :  { %v1614_v1 = vpop.f32.mrf.mxu2 }
 0x44e   :  { %4910 = vmatmul.msk.bf16.gmra.mxu1 %vm1285_vm6, %v5544_v11 }
 0x456   :  { %4879 = vmatmul.msk.bf16.vlgmr.msra.gmra.mxu3 %vm1285_vm6, %v5534_v40 }
 0x459   :  { %4896 = vmatmul.msk.bf16.gmra.mxu0 %vm1285_vm6, %v4893_v18 }
 0x45e   :  { %4911 = vmatmul.msk.bf16.gmra.mxu1 %vm1285_vm6, %v4908_v20 }
 0x466   :  { %4880 = vmatmul.msk.bf16.gmra.mxu3 %vm1285_vm6, %v5535_v30 }
 0x476   :  { %4881 = vmatmul.msk.bf16.gmra.mxu3 %vm1285_vm6, %v4878_v33 }
 0x4a9   :  { %v1308_v44 = vpop.f32.mrf.mxu3 }
 0x4b1   :  { %v1310_v35 = vpop.f32.mrf.mxu3 }
 0x4b6   :  { %v1439_v46 = vpop.f32.mrf.mxu0 }
 0x4b9   :  { %v1313_v36 = vpop.f32.mrf.mxu3 }
 0x4bb   :  { %v1520_v55 = vpop.f32.mrf.mxu1 }
 0x4bd   :  { %v1617_v19 = vpop.f32.mrf.mxu2 }
 0x4be   :  { %v1441_v34 = vpop.f32.mrf.mxu0 }
 0x4c1   :  { %v1315_v41 = vpop.f32.mrf.mxu3 }
 0x4c3   :  { %v1522_v37 = vpop.f32.mrf.mxu1 }
 0x4c6   :  { %v1444_v52 = vpop.f32.mrf.mxu0 }
 0x4c9   :  { %v1318_v32 = vpop.f32.mrf.mxu3 }
 0x4cb   :  { %v1525_v54 = vpop.f32.mrf.mxu1 }
 0x4ce   :  { %v1446_v57 = vpop.f32.mrf.mxu0 }
 0x4d1   :  { %v1320_v45 = vpop.f32.mrf.mxu3 }
 0x4d3   :  { %v1527_v58 = vpop.f32.mrf.mxu1 }
 0x4d6   :  { %v1449_v5 = vpop.f32.mrf.mxu0 }
 0x4d9   :  { %v1364_v10 = vpop.f32.mrf.mxu3 }
 0x4da   :  { %v1365_v56 = vadd.f32 %v1364_v10, %v1308_v44 }
 0x4db   :  { %v1530_v14 = vpop.f32.mrf.mxu1 }
 0x4dc   :  { %v1454_v0 = vadd.f32 %v1439_v46, %v1365_v56 }
 0x4de   :  { %v1535_v3 = vadd.f32 %v1520_v55, %v1454_v0  ;;  %v1451_v28 = vpop.f32.mrf.mxu0  ;;  %v1619_v55 = vpop.f32.mrf.mxu2 }
 0x4e0   :  { %v6452_v13 = vadd.f32 %v1607_v63, %v1535_v3 }
 0x4e1   :  { %v1366_v38 = vpop.f32.mrf.mxu3 }
 0x4e2   :  { %v1367_v15 = vadd.f32 %v1366_v38, %v1310_v35  ;;  %v1649_v39 = vmul.f32 %v6452_v13, %v6452_v13  ;;  %v1631_v25 = vsel %vm1630_vm7, %v6452_v13, 0.0 }
 0x4e3   :  { %v1532_v35 = vpop.f32.mrf.mxu1 }
 0x4e4   :  { %v1455_v60 = vadd.f32 %v1441_v34, %v1367_v15  ;;  %v1655_v18 = vsel %vm1630_vm7, %v1649_v39, 0.0 }
 0x4e6   :  { %v1536_v49 = vadd.f32 %v1522_v37, %v1455_v60 }
 0x4e8   :  { %v6450_v8 = vadd.f32 %v1609_v47, %v1536_v49 }
 0x4e9   :  { %v1369_v51 = vpop.f32.mrf.mxu3 }
 0x4ea   :  { %v1370_v43 = vadd.f32 %v1369_v51, %v1313_v36  ;;  %v1650_v53 = vmul.f32 %v6450_v8, %v6450_v8  ;;  %v1632_v21 = vsel %vm1630_vm7, %v6450_v8, 0.0 }
 0x4eb   :  { %v1633_v26 = vadd.f32 %v1632_v21, %v1631_v25  ;;  %v5550_v25 = vld [vmem:[#allocation12 + $0x8] sm:$0xf0] }
 0x4ec   :  { %v1456_v48 = vadd.f32 %v1444_v52, %v1370_v43  ;;  %v1656_v11 = vsel %vm1630_vm7, %v1650_v53, 0.0  ;;  %v5554_v53 = vld [vmem:[#allocation12 + $0x28] sm:$0xf0] }
 0x4ed   :  { %v1657_v33 = vadd.f32 %v1656_v11, %v1655_v18  ;;  %v5549_v11 = vld [vmem:[#allocation12 + $0x4] sm:$0xf] }
 0x4ee   :  { %v1537_v4 = vadd.f32 %v1525_v54, %v1456_v48 }
 0x4f0   :  { %v6454_v16 = vadd.f32 %v1612_v42, %v1537_v4 }
 0x4f1   :  { %v1371_v59 = vpop.f32.mrf.mxu3 }
 0x4f2   :  { %v1372_v62 = vadd.f32 %v1371_v59, %v1315_v41  ;;  %v1651_v22 = vmul.f32 %v6454_v16, %v6454_v16  ;;  %v1634_v40 = vsel %vm1630_vm7, %v6454_v16, 0.0 }
 0x4f3   :  { %v1635_v44 = vadd.f32 %v1634_v40, %v1633_v26  ;;  %v4932_v40 = vld [vmem:[#allocation12 + $0xc] sm:$0xf0]  ;;  %v5551_v26 = vld [vmem:[#allocation12 + $0x10] sm:$0xf0] }
 0x4f4   :  { %v1457_v2 = vadd.f32 %v1446_v57, %v1372_v62  ;;  %v1658_v20 = vsel %vm1630_vm7, %v1651_v22, 0.0  ;;  %v4930_v22 = vld [vmem:[#allocation12] sm:$0xf]  ;;  %v4935_v18 = vor.u32 %v5549_v11, %v4932_v40 }
 0x4f6   :  { %v1538_v9 = vadd.f32 %v1527_v58, %v1457_v2 }
 0x4f8   :  { %v6458_v61 = vadd.f32 %v1614_v1, %v1538_v9  ;;  %v5553_v9 = vld [vmem:[#allocation12 + $0x20] sm:$0xf0] }
 0x4f9   :  { %v1374_v6 = vpop.f32.mrf.mxu3 }
 0x4fa   :  { %v1375_v12 = vadd.f32 %v1374_v6, %v1318_v32  ;;  %v1652_v17 = vmul.f32 %v6458_v61, %v6458_v61  ;;  %v1636_v30 = vsel %vm1630_vm7, %v6458_v61, 0.0  ;;  %v4942_v6 = vld [vmem:[#allocation12 + $0x18] sm:$0xf] }
 0x4fb   :  { %v1637_v46 = vadd.f32 %v1636_v30, %v1635_v44  ;;  %v4927_v44 = vld [vmem:[%s7417_s13 + $0x2] sm:$0x3] }
 0x4fc   :  { %v1458_v7 = vadd.f32 %v1449_v5, %v1375_v12  ;;  %v1660_v36 = vsel %vm1630_vm7, %v1652_v17, 0.0  ;;  %v5552_v12 = vld [vmem:[#allocation12 + $0x1c] sm:$0xf]  ;;  %v4938_v17 = vld [vmem:[#allocation12 + $0x8] sm:$0xf] }
 0x4fe   :  { %v1539_v50 = vadd.f32 %v1530_v14, %v1458_v7  ;;  %v4943_v14 = vor.u32 %v5553_v9, %v4942_v6  ;;  %v4944_v7 = vld [vmem:[#allocation12 + $0x24] sm:$0xf0] }
 0x4ff   :  { %v4947_v39 = vor.u32 %v5552_v12, %v4944_v7 }
 0x500   :  { %v6466_v24 = vadd.f32 %v1617_v19, %v1539_v50  ;;  %v4950_v19 = vld [vmem:[#allocation12 + $0x20] sm:$0xf]  ;;  %1772 = vmatpush.bf16.msrb.mxu3 %v4943_v14 }
 0x501   :  { %v1376_v29 = vpop.f32.mrf.mxu3  ;;  %v4951_v21 = vor.u32 %v5554_v53, %v4950_v19  ;;  %1796 = vmatpush.bf16.msrb.mxu0 %v4947_v39 }
 0x502   :  { %v1377_v27 = vadd.f32 %v1376_v29, %v1320_v45  ;;  %v1653_v31 = vmul.f32 %v6466_v24, %v6466_v24  ;;  %v1638_v41 = vsel %vm1630_vm7, %v6466_v24, 0.0  ;;  %v1659_v45 = vadd.f32 %v1658_v20, %v1657_v33 }
 0x503   :  { %v1639_v37 = vadd.f32 %v1638_v41, %v1637_v46  ;;  %v4931_v29 = vor.u32 %v5550_v25, %v4930_v22  ;;  %1820 = vmatpush.bf16.msrb.mxu1 %v4951_v21 }
 0x504   :  { %v1459_v23 = vadd.f32 %v1451_v28, %v1377_v27  ;;  %v1662_v63 = vsel %vm1630_vm7, %v1653_v31, 0.0  ;;  %v1661_v34 = vadd.f32 %v1660_v36, %v1659_v45  ;;  %v4939_v28 = vor.u32 %v5551_v26, %v4938_v17 }
 0x505   :  { %1773 = vmatpush.bf16.msrb.mxu3 %v4931_v29  ;;  %1797 = vmatpush.bf16.msrb.mxu0 %v4935_v18 }
 0x506   :  { %v1540_v32 = vadd.f32 %v1532_v35, %v1459_v23  ;;  %v1663_v52 = vadd.f32 %v1662_v63, %v1661_v34 }
 0x507   :  { %1821 = vmatpush.bf16.msrb.mxu1 %v4939_v28 }
 0x508   :  { %v6485_v10 = vadd.f32 %v1619_v55, %v1540_v32 }
 0x50a   :  { %v1641_v47 = vsel %vm1640_vm8, %v6485_v10, 0.0  ;;  %v1654_v38 = vmul.f32 %v6485_v10, %v6485_v10 }
 0x50b   :  { %v1642_v54 = vadd.f32 %v1641_v47, %v1639_v37 }
 0x50c   :  { %v1664_v42 = vsel %vm1640_vm8, %v1654_v38, 0.0 }
 0x50d   :  { %v1643_v51 = vrot.slane %v1642_v54, 4  ;;  %v1665_v15 = vadd.f32 %v1664_v42, %v1663_v52 }
 0x50f   :  { %v1644_v56 = vadd.f32 %v1643_v51, %v1642_v54  ;;  %v1666_v57 = vrot.slane %v1665_v15, 4 }
 0x511   :  { %v1645_v43 = vrot.slane %v1644_v56, 2  ;;  %v1667_v58 = vadd.f32 %v1666_v57, %v1665_v15 }
 0x513   :  { %v1646_v59 = vadd.f32 %v1645_v43, %v1644_v56  ;;  %v1668_v60 = vrot.slane %v1667_v58, 2 }
 0x515   :  { %v1647_v62 = vrot.slane %v1646_v59, 1  ;;  %v1669_v0 = vadd.f32 %v1668_v60, %v1667_v58 }
 0x517   :  { %v1648_v1 = vadd.f32 %v1647_v62, %v1646_v59  ;;  %v1670_v48 = vrot.slane %v1669_v0, 1 }
 0x519   :  { %v1671_v49 = vadd.f32 %v1670_v48, %v1669_v0  ;;  %v1672_v2 = vmul.f32 0.02173913, %v1648_v1 }
 0x51b   :  { %v1673_v3 = vmul.f32 0.02173913, %v1671_v49  ;;  %v1674_v4 = vmul.f32 %v1672_v2, %v1672_v2 }
 0x51d   :  { %v1675_v5 = vsub.f32 %v1673_v3, %v1674_v4 }
 0x51f   :  { %v1676_v50 = vmax.f32 %v1675_v5, 0.0 }
 0x521   :  { %v1677_v27 = vadd.f32 1e-05, %v1676_v50 }
 0x523   :  { %5702 = vrsqrt.f32 %v1677_v27  ;;  %vm1684_vm10 = vweird.f32 %v1677_v27 }
 0x529   :  { %v5703_v20 = vpop.eup %5702 }
 0x52a   :  { %v1679_v30 = vmul.f32 %v5703_v20, %v1677_v27  ;;  %vm1685_vm9 = vweird.f32 %v5703_v20 }
 0x52b   :  { %vm1686_vm11 = vmor %vm1684_vm10, %vm1685_vm9 }
 0x52c   :  { %v1680_v31 = vmul.f32 %v5703_v20, %v1679_v30 }
 0x52e   :  { %v1681_v23 = vmul.f32 0.5, %v1680_v31 }
 0x530   :  { %v1682_v33 = vsub.f32 1.5, %v1681_v23 }
 0x532   :  { %v1683_v35 = vmul.f32 %v5703_v20, %v1682_v33 }
 0x534   :  { %v1687_v36 = vsel %vm1686_vm11, %v5703_v20, %v1683_v35 }
 0x535   :  { %v1688_v41 = vmul.f32 %v4927_v44, %v1687_v36 }
 0x537   :  { %v1689_v32 = vmul.f32 %v1688_v41, %v1672_v2  ;;  %v1694_v45 = vperm.slane %v1688_v41, 0 }
 0x539   :  { %v1691_v46 = vrot.slane %v1689_v32, 7  ;;  %v1698_v55 = vmul.f32 %v1694_v45, %v6458_v61  ;;  %v1699_v63 = vmul.f32 %v1694_v45, %v6466_v24  ;;  %v1700_v34 = vmul.f32 %v1694_v45, %v6485_v10 }
 0x53a   :  { %v1695_v38 = vmul.f32 %v1694_v45, %v6452_v13  ;;  %v1696_v52 = vmul.f32 %v1694_v45, %v6450_v8  ;;  %v1697_v54 = vmul.f32 %v1694_v45, %v6454_v16 }
 0x53b   :  { %v1693_v37 = vsub.f32 %v4927_v44, %v1691_v46 }
 0x53d   :  { %v1701_v47 = vperm.slane %v1693_v37, 1 }
 0x53f   :  { %v1702_v42 = vadd.f32 %v1701_v47, %v1695_v38  ;;  %v1703_v51 = vadd.f32 %v1701_v47, %v1696_v52  ;;  %v1704_v15 = vadd.f32 %v1701_v47, %v1697_v54  ;;  %v1705_v56 = vadd.f32 %v1701_v47, %v1698_v55 }
 0x540   :  { %v1706_v57 = vadd.f32 %v1701_v47, %v1699_v63  ;;  %v1707_v43 = vadd.f32 %v1701_v47, %v1700_v34 }
 0x541   :  { %v1708_v58 = vmax.f32 %v1702_v42, 0.0  ;;  %v1709_v61 = vmax.f32 %v1703_v51, 0.0  ;;  %v1710_v59 = vmax.f32 %v1704_v15, 0.0  ;;  %v1711_v24 = vmax.f32 %v1705_v56, 0.0 }
 0x542   :  { %v1712_v60 = vmax.f32 %v1706_v57, 0.0  ;;  %v1713_v10 = vmax.f32 %v1707_v43, 0.0 }
 0x543   :  { %v1714_v62 = vpack.c.bf16 %v1709_v61, %v1708_v58  ;;  %v1715_v0 = vpack.c.bf16 %v1711_v24, %v1710_v59 }
 0x544   :  { %v1716_v1 = vpack.c.bf16 %v1713_v10, %v1712_v60  ;;  %v5555_v60 = vld [vmem:[#allocation6] sm:$0xff]  ;;  %v1852_v10 = vld [vmem:[#allocation6 + $0x8] sm:$0xf] }
 0x545   :  { %4952 = vmatmul.msk.bf16.vlgmr.msrb.gmra.mxu3 %vm1630_vm7, %v1714_v62  ;;  %4955 = vmatmul.msk.bf16.vlgmr.msrb.gmra.mxu0 %vm1630_vm7, %v1714_v62 }
 0x546   :  { %4958 = vmatmul.msk.bf16.vlgmr.msrb.gmra.mxu1 %vm1630_vm7, %v1714_v62  ;;  %v1922_v62 = vunpack.c.l.b16 %v1852_v10 }
 0x555   :  { %4953 = vmatmul.msk.bf16.gmra.mxu3 %vm1630_vm7, %v1715_v0  ;;  %4956 = vmatmul.msk.bf16.gmra.mxu0 %vm1630_vm7, %v1715_v0 }
 0x556   :  { %4959 = vmatmul.msk.bf16.gmra.mxu1 %vm1630_vm7, %v1715_v0  ;;  %v1924_v0 = vpack.c.b16 %v1922_v62, %v1922_v62 }
 0x565   :  { %4954 = vmatmul.msk.bf16.gmra.mxu3 %vm1630_vm7, %v1716_v1  ;;  %4957 = vmatmul.msk.bf16.gmra.mxu0 %vm1630_vm7, %v1716_v1 }
 0x566   :  { %4960 = vmatmul.msk.bf16.gmra.mxu1 %vm1630_vm7, %v1716_v1 }
 0x5c2   :  { %v1799_v8 = vpop.f32.mrf.mxu0 }
 0x5c3   :  { %v1823_v13 = vpop.f32.mrf.mxu1 }
 0x5c4   :  { %v1839_v38 = vpack.c.bf16 %v1823_v13, %v1823_v13 }
 0x5c6   :  { %v2075_v57 = vunpack.c.l.b16 %v1839_v38 }
 0x5c8   :  { %v1775_v16 = vpop.f32.mrf.mxu3 }
 0x5c9   :  { %v1838_v2 = vpack.c.bf16 %v1799_v8, %v1775_v16 }
 0x5ca   :  { %v1801_v48 = vpop.f32.mrf.mxu0 }
 0x5cb   :  { %v1825_v49 = vpop.f32.mrf.mxu1  ;;  %v1871_v6 = vunpack.c.l.b16 %v1838_v2  ;;  %v1966_v53 = vunpack.c.h.b16 %v1838_v2  ;;  %v5556_v2 = vld [vmem:[#allocation6 + $0xc] sm:$0xff] }
 0x5cc   :  { %v1841_v63 = vpack.c.bf16 %v1825_v49, %v1825_v49 }
 0x5ce   :  { %v2076_v51 = vunpack.c.l.b16 %v1841_v63 }
 0x5d0   :  { %v1777_v3 = vpop.f32.mrf.mxu3  ;;  %v2081_v58 = vpack.c.b16 %v2076_v51, %v2075_v57 }
 0x5d1   :  { %v1840_v4 = vpack.c.bf16 %v1801_v48, %v1777_v3 }
 0x5d2   :  { %v1804_v5 = vpop.f32.mrf.mxu0 }
 0x5d3   :  { %v1828_v9 = vpop.f32.mrf.mxu1  ;;  %v1872_v12 = vunpack.c.l.b16 %v1840_v4  ;;  %v1967_v19 = vunpack.c.h.b16 %v1840_v4 }
 0x5d4   :  { %v1843_v41 = vpack.c.bf16 %v1828_v9, %v1828_v9  ;;  %v5558_v9 = vld [vmem:[#allocation6 + $0x24] sm:$0xff] }
 0x5d5   :  { %v1877_v14 = vpack.c.b16 %v1872_v12, %v1871_v6  ;;  %v6509_v21 = vpack.c.b16 %v1967_v19, %v1966_v53  ;;  %v1856_v12 = vld [vmem:[#allocation6 + $0x14] sm:$0xf]  ;;  %v2010_v19 = vld [vmem:[#allocation6 + $0x2c] sm:$0xf] }
 0x5d6   :  { %v2077_v52 = vunpack.c.l.b16 %v1843_v41  ;;  %v2016_v53 = vunpack.c.l.b16 %v2010_v19 }
 0x5d7   :  { %1880 = vrot.lane.b32.xlu2 %v1877_v14, %s5965_s21 }
 0x5d8   :  { %v1780_v7 = vpop.f32.mrf.mxu3 }
 0x5d9   :  { %v1842_v22 = vpack.c.bf16 %v1804_v5, %v1780_v7  ;;  %v5559_v5 = vld [vmem:[#allocation6 + $0x30] sm:$0xff] }
 0x5da   :  { %v1806_v39 = vpop.f32.mrf.mxu0 }
 0x5db   :  { %v1830_v50 = vpop.f32.mrf.mxu1  ;;  %v1873_v11 = vunpack.c.l.b16 %v1842_v22  ;;  %v1968_v30 = vunpack.c.h.b16 %v1842_v22 }
 0x5dc   :  { %v1845_v33 = vpack.c.bf16 %v1830_v50, %v1830_v50  ;;  %v2060_v50 = vld [vmem:[#allocation6 + $0x38] sm:$0xf] }
 0x5de   :  { %v2078_v34 = vunpack.c.l.b16 %v1845_v33 }
 0x5df   :  { %2019 = vrot.lane.b32.xlu2 %v6509_v21, %s5965_s21 }
 0x5e0   :  { %v1782_v25 = vpop.f32.mrf.mxu3  ;;  %v2082_v15 = vpack.c.b16 %v2078_v34, %v2077_v52 }
 0x5e1   :  { %v1844_v29 = vpack.c.bf16 %v1806_v39, %v1782_v25  ;;  %v2066_v39 = vunpack.c.l.b16 %v2060_v50  ;;  %v2018_v25 = vpack.c.b16 %v2016_v53, %v2016_v53  ;;  %v5018_v50 = vld [vmem:[#allocation13 + $0x30] sm:$0xf] }
 0x5e2   :  { %v1809_v18 = vpop.f32.mrf.mxu0 }
 0x5e3   :  { %v1833_v40 = vpop.f32.mrf.mxu1  ;;  %v1874_v17 = vunpack.c.l.b16 %v1844_v29  ;;  %v1969_v28 = vunpack.c.h.b16 %v1844_v29  ;;  %v2068_v22 = vpack.c.b16 %v2066_v39, %v2066_v39  ;;  %v5557_v29 = vld [vmem:[#allocation6 + $0x18] sm:$0xff]  ;;  %v5567_v39 = vld [vmem:[#allocation13 + $0x34] sm:$0xf0] }
 0x5e4   :  { %v1847_v20 = vpack.c.bf16 %v1833_v40, %v1833_v40 }
 0x5e5   :  { %v1878_v27 = vpack.c.b16 %v1874_v17, %v1873_v11  ;;  %v1973_v44 = vpack.c.b16 %v1969_v28, %v1968_v30 }
 0x5e6   :  { %v2079_v35 = vunpack.c.l.b16 %v1847_v20 }
 0x5e7   :  { %1882 = vrot.lane.b32.xlu1 %v1878_v27, %s5965_s21 }
 0x5e8   :  { %v1785_v26 = vpop.f32.mrf.mxu3 }
 0x5e9   :  { %v1846_v32 = vpack.c.bf16 %v1809_v18, %v1785_v26 }
 0x5ea   :  { %v1811_v45 = vpop.f32.mrf.mxu0 }
 0x5eb   :  { %v1835_v31 = vpop.f32.mrf.mxu1  ;;  %v1875_v54 = vunpack.c.l.b16 %v1846_v32  ;;  %v1970_v59 = vunpack.c.h.b16 %v1846_v32 }
 0x5ec   :  { %v1849_v23 = vpack.c.bf16 %v1835_v31, %v1835_v31 }
 0x5ee   :  { %v2080_v36 = vunpack.c.l.b16 %v1849_v23 }
 0x5ef   :  { %2021 = vrot.lane.b32.xlu1 %v1973_v44, %s5965_s21 }
 0x5f0   :  { %v2083_v46 = vpack.c.b16 %v2080_v36, %v2079_v35  ;;  %v1787_v55 = vpop.f32.mrf.mxu3 }
 0x5f1   :  { %v1848_v37 = vpack.c.bf16 %v1811_v45, %v1787_v55 }
 0x5f2   :  { %v2093_v47 = vsel %vm1895_vm12, %v2083_v46, 0 }
 0x5f3   :  { %2100 = vmatpush.bf16.msra.mxu0 %v2093_v47  ;;  %v1876_v42 = vunpack.c.l.b16 %v1848_v37  ;;  %v1971_v61 = vunpack.c.h.b16 %v1848_v37 }
 0x5f5   :  { %v1879_v56 = vpack.c.b16 %v1876_v42, %v1875_v54  ;;  %v1974_v24 = vpack.c.b16 %v1971_v61, %v1970_v59 }
 0x5f7   :  { %2101 = vmatpush.bf16.msra.mxu0 %v2082_v15  ;;  %1884 = vrot.lane.b32.xlu0 %v1879_v56, %s5965_s21  ;;  %v1934_v43 = vsel %vm1895_vm12, %v1879_v56, 0  ;;  %v1984_v3 = vsel %vm1895_vm12, %v1974_v24, 0 }
 0x5f8   :  { %1941 = vmatpush.bf16.msra.mxu3 %v1934_v43 }
 0x5fb   :  { %2102 = vmatpush.bf16.msra.mxu0 %v2081_v58 }
 0x5fc   :  { %1942 = vmatpush.bf16.msra.mxu3 %v1878_v27 }
 0x5fe   :  { %4989 = vmatmul.msk.bf16.vlgmr.msra.gmra.mxu0 %vm1888_vm13, %v5559_v5 }
 0x5ff   :  { %2023 = vrot.lane.b32.xlu0 %v1974_v24, %s5965_s21 }
 0x600   :  { %1943 = vmatpush.bf16.msra.mxu3 %v1877_v14  ;;  %v1862_v14 = vunpack.c.l.b16 %v1856_v12 }
 0x602   :  { %v1864_v7 = vpack.c.b16 %v1862_v14, %v1862_v14 }
 0x603   :  { %4971 = vmatmul.msk.bf16.vlgmr.msra.gmra.mxu3 %vm1888_vm13, %v5555_v60 }
 0x60e   :  { %4990 = vmatmul.msk.bf16.gmra.mxu0 %vm1888_vm13, %v2068_v22  ;;  %v5019_v22 = vor.u32 %v5567_v39, %v5018_v50 }
 0x610   :  { %2237 = vmatpush.bf16.msra.mxu1 %v5019_v22 }
 0x613   :  { %4972 = vmatmul.msk.bf16.gmra.mxu3 %vm1888_vm13, %v1924_v0 }
 0x631   :  { %v1881_v16 = vpop.permute.xlu2 %1880 }
 0x639   :  { %v2020_v6 = vpop.permute.xlu2 %2019 }
 0x659   :  { %v1883_v13 = vpop.permute.xlu1 %1882 }
 0x661   :  { %v2022_v4 = vpop.permute.xlu1 %2021 }
 0x669   :  { %v1885_v1 = vpop.permute.xlu0 %1884 }
 0x66a   :  { %v1897_v8 = vsel %vm1895_vm12, %v1885_v1, 0 }
 0x66b   :  { %1904 = vmatpush.bf16.msrb.mxu2 %v1897_v8 }
 0x66f   :  { %1905 = vmatpush.bf16.msrb.mxu2 %v1883_v13 }
 0x671   :  { %v2024_v48 = vpop.permute.xlu0 %2023 }
 0x672   :  { %v2034_v49 = vsel %vm1895_vm12, %v2024_v48, 0  ;;  %vm3779_vm12 = vcmask 785408  }
 0x673   :  { %1906 = vmatpush.bf16.msrb.mxu2 %v1881_v16  ;;  %2041 = vmatpush.bf16.msrb.mxu3 %v2034_v49 }
 0x676   :  { %4965 = vmatmul.msk.bf16.vlgmr.msrb.gmra.mxu2 %vm1888_vm13, %v5556_v2 }
 0x677   :  { %1991 = vmatpush.bf16.msra.mxu2 %v1984_v3  ;;  %2042 = vmatpush.bf16.msrb.mxu3 %v2022_v4 }
 0x67b   :  { %1992 = vmatpush.bf16.msra.mxu2 %v1973_v44  ;;  %2043 = vmatpush.bf16.msrb.mxu3 %v2020_v6  ;;  %v2104_v28 = vpop.f32.mrf.mxu0 }
 0x67e   :  { %4983 = vmatmul.msk.bf16.vlgmr.msrb.gmra.mxu3 %vm1888_vm13, %v5558_v9 }
 0x67f   :  { %1993 = vmatpush.bf16.msra.mxu2 %v6509_v21  ;;  %v1957_v21 = vld [vmem:[#allocation6 + $0x20] sm:$0xf] }
 0x680   :  { %v1963_v11 = vunpack.c.l.b16 %v1957_v21 }
 0x682   :  { %v1965_v40 = vpack.c.b16 %v1963_v11, %v1963_v11 }
 0x683   :  { %v2106_v23 = vpop.f32.mrf.mxu0 }
 0x686   :  { %4966 = vmatmul.msk.bf16.gmra.mxu2 %vm1888_vm13, %v1864_v7  ;;  %v1945_v17 = vpop.f32.mrf.mxu3 }
 0x68b   :  { %v2109_v35 = vpop.f32.mrf.mxu0 }
 0x68e   :  { %4984 = vmatmul.msk.bf16.gmra.mxu3 %vm1888_vm13, %v2018_v25  ;;  %v1947_v27 = vpop.f32.mrf.mxu3  ;;  %v5566_v25 = vld [vmem:[#allocation13 + $0x34] sm:$0xf] }
 0x693   :  { %v2111_v32 = vpop.f32.mrf.mxu0 }
 0x696   :  { %4977 = vmatmul.msk.bf16.vlgmr.msra.gmra.mxu2 %vm1888_vm13, %v5557_v29  ;;  %v1950_v18 = vpop.f32.mrf.mxu3  ;;  %v5020_v29 = vld [vmem:[#allocation13 + $0x38] sm:$0xf0] }
 0x69e   :  { %v1952_v26 = vpop.f32.mrf.mxu3 }
 0x69f   :  { %v5565_v26 = vld [vmem:[#allocation13 + $0x24] sm:$0xf0] }
 0x6a6   :  { %4978 = vmatmul.msk.bf16.gmra.mxu2 %vm1888_vm13, %v1965_v40  ;;  %v5023_v40 = vor.u32 %v5566_v25, %v5020_v29 }
 0x6a8   :  { %2255 = vmatpush.bf16.msrb.mxu2 %v5023_v40 }
 0x6f9   :  { %v1908_v20 = vpop.f32.mrf.mxu2 }
 0x6fa   :  { %v1946_v55 = vadd.f32 %v1945_v17, %v1908_v20  ;;  %v5564_v20 = vld [vmem:[#allocation13 + $0x24] sm:$0xf] }
 0x701   :  { %v1910_v30 = vpop.f32.mrf.mxu2  ;;  %v2045_v31 = vpop.f32.mrf.mxu3 }
 0x702   :  { %v1948_v63 = vadd.f32 %v1947_v27, %v1910_v30  ;;  %v5012_v30 = vld [vmem:[#allocation13 + $0x28] sm:$0xf0] }
 0x709   :  { %v1913_v33 = vpop.f32.mrf.mxu2  ;;  %v2047_v44 = vpop.f32.mrf.mxu3 }
 0x70a   :  { %v1951_v42 = vadd.f32 %v1950_v18, %v1913_v33  ;;  %v5010_v18 = vld [vmem:[#allocation13 + $0x20] sm:$0xf]  ;;  %v5002_v33 = vld [vmem:[#allocation13 + $0x10] sm:$0xf] }
 0x711   :  { %v1915_v36 = vpop.f32.mrf.mxu2  ;;  %v2050_v41 = vpop.f32.mrf.mxu3 }
 0x719   :  { %v1995_v45 = vpop.f32.mrf.mxu2  ;;  %v2052_v46 = vpop.f32.mrf.mxu3 }
 0x71a   :  { %v2004_v34 = vadd.f32 %v1995_v45, %v1946_v55  ;;  %v4994_v46 = vld [vmem:[#allocation13] sm:$0xf]  ;;  %v5561_v55 = vld [vmem:[#allocation13 + $0x4] sm:$0xf0] }
 0x71c   :  { %v2054_v38 = vadd.f32 %v2045_v31, %v2004_v34  ;;  %v4996_v34 = vld [vmem:[#allocation13 + $0x8] sm:$0xf0] }
 0x71e   :  { %v6535_v51 = vadd.f32 %v2104_v28, %v2054_v38  ;;  %v5011_v28 = vor.u32 %v5565_v26, %v5010_v18 }
 0x720   :  { %v2130_v43 = vmul.f32 %v6535_v51, %v6535_v51  ;;  %v2119_v59 = vsel %vm2118_vm14, %v6535_v51, 0.0  ;;  %2238 = vmatpush.bf16.msra.mxu1 %v5011_v28 }
 0x721   :  { %v1997_v37 = vpop.f32.mrf.mxu2 }
 0x722   :  { %v2005_v47 = vadd.f32 %v1997_v37, %v1948_v63  ;;  %v2133_v62 = vsel %vm2118_vm14, %v2130_v43, 0.0  ;;  %v5560_v63 = vld [vmem:[#allocation13 + $0x4] sm:$0xf]  ;;  %v4991_v43 = vld [vmem:[%s7417_s13 + $0x4] sm:$0x3] }
 0x723   :  { %v4999_v38 = vor.u32 %v5560_v63, %v4996_v34  ;;  %v5570_v34 = vld [vmem:[%s7408_s4 + $0x10] sm:$0xff] }
 0x724   :  { %v2055_v52 = vadd.f32 %v2047_v44, %v2005_v47  ;;  %v5563_v44 = vld [vmem:[#allocation13 + $0x14] sm:$0xf0]  ;;  %v4995_v47 = vor.u32 %v5561_v55, %v4994_v46 }
 0x725   :  { %v5003_v36 = vor.u32 %v5563_v44, %v5002_v33 }
 0x726   :  { %v6533_v54 = vadd.f32 %v2106_v23, %v2055_v52  ;;  %v5015_v23 = vor.u32 %v5564_v20, %v5012_v30  ;;  %v5568_v30 = vld [vmem:[%s7408_s4] sm:$0xff] }
 0x727   :  { %2239 = vmatpush.bf16.msra.mxu1 %v5003_v36 }
 0x728   :  { %v2131_v56 = vmul.f32 %v6533_v54, %v6533_v54  ;;  %v2120_v58 = vsel %vm2118_vm14, %v6533_v54, 0.0  ;;  %2256 = vmatpush.bf16.msrb.mxu2 %v5015_v23  ;;  %v5569_v23 = vld [vmem:[%s7408_s4 + $0x8] sm:$0xff] }
 0x729   :  { %v2000_v15 = vpop.f32.mrf.mxu2  ;;  %v2121_v10 = vadd.f32 %v2120_v58, %v2119_v59 }
 0x72a   :  { %v2006_v57 = vadd.f32 %v2000_v15, %v1951_v42  ;;  %v2134_v24 = vsel %vm2118_vm14, %v2131_v56, 0.0 }
 0x72b   :  { %v2135_v8 = vadd.f32 %v2134_v24, %v2133_v62  ;;  %2240 = vmatpush.bf16.msra.mxu1 %v4995_v47  ;;  %v5574_v47 = vld [vmem:[%s7408_s4 + $0x30] sm:$0xff] }
 0x72c   :  { %v2056_v61 = vadd.f32 %v2050_v41, %v2006_v57  ;;  %v5004_v41 = vld [vmem:[#allocation13 + $0x18] sm:$0xf0] }
 0x72e   :  { %v6546_v60 = vadd.f32 %v2109_v35, %v2056_v61  ;;  %v5562_v35 = vld [vmem:[#allocation13 + $0x14] sm:$0xf] }
 0x72f   :  { %v5007_v45 = vor.u32 %v5562_v35, %v5004_v41  ;;  %v5577_v35 = vld [vmem:[%s7408_s4 + $0x48] sm:$0xff] }
 0x730   :  { %v2122_v0 = vsel %vm2118_vm14, %v6546_v60, 0.0  ;;  %v2132_v1 = vmul.f32 %v6546_v60, %v6546_v60 }
 0x731   :  { %v2123_v13 = vadd.f32 %v2122_v0, %v2121_v10  ;;  %v2002_v16 = vpop.f32.mrf.mxu2  ;;  %2257 = vmatpush.bf16.msrb.mxu2 %v5007_v45  ;;  %v5571_v45 = vld [vmem:[%s7408_s4 + $0x18] sm:$0xff] }
 0x732   :  { %v2136_v48 = vsel %vm2118_vm14, %v2132_v1, 0.0 }
 0x733   :  { %v2124_v49 = vrot.slane %v2123_v13, 4  ;;  %v2137_v2 = vadd.f32 %v2136_v48, %v2135_v8 }
 0x735   :  { %v2125_v3 = vadd.f32 %v2124_v49, %v2123_v13  ;;  %v2138_v4 = vrot.slane %v2137_v2, 4  ;;  %2258 = vmatpush.bf16.msrb.mxu2 %v4999_v38  ;;  %v5578_v38 = vld [vmem:[%s7408_s4 + $0x50] sm:$0xff] }
 0x737   :  { %v2126_v5 = vrot.slane %v2125_v3, 2  ;;  %v2139_v6 = vadd.f32 %v2138_v4, %v2137_v2 }
 0x739   :  { %v2127_v9 = vadd.f32 %v2126_v5, %v2125_v3  ;;  %v2140_v12 = vrot.slane %v2139_v6, 2 }
 0x73b   :  { %v2128_v14 = vrot.slane %v2127_v9, 1  ;;  %v2141_v7 = vadd.f32 %v2140_v12, %v2139_v6 }
 0x73d   :  { %v2129_v19 = vadd.f32 %v2128_v14, %v2127_v9  ;;  %v2142_v53 = vrot.slane %v2141_v7, 1 }
 0x73f   :  { %v2143_v21 = vadd.f32 %v2142_v53, %v2141_v7  ;;  %v2144_v11 = vmul.f32 0.041666668, %v2129_v19 }
 0x741   :  { %v2145_v17 = vmul.f32 0.041666668, %v2143_v21  ;;  %v2146_v27 = vmul.f32 %v2144_v11, %v2144_v11 }
 0x743   :  { %v2147_v31 = vsub.f32 %v2145_v17, %v2146_v27 }
 0x745   :  { %v2148_v32 = vmax.f32 %v2147_v31, 0.0 }
 0x747   :  { %v2149_v37 = vadd.f32 1e-05, %v2148_v32 }
 0x749   :  { %5704 = vrsqrt.f32 %v2149_v37  ;;  %vm2156_vm1 = vweird.f32 %v2149_v37 }
 0x74f   :  { %v5705_v52 = vpop.eup %5704 }
 0x750   :  { %v2151_v42 = vmul.f32 %v5705_v52, %v2149_v37  ;;  %vm2157_vm15 = vweird.f32 %v5705_v52 }
 0x751   :  { %vm2158_vm2 = vmor %vm2156_vm1, %vm2157_vm15  ;;  %vm4684_vm15 = vcmask 7168  }
 0x752   :  { %v2152_v15 = vmul.f32 %v5705_v52, %v2151_v42  ;;  %v5575_v42 = vld [vmem:[%s7408_s4 + $0x38] sm:$0xff] }
 0x754   :  { %v2153_v56 = vmul.f32 0.5, %v2152_v15  ;;  %v5579_v15 = vld [vmem:[%s7408_s4 + $0x58] sm:$0xff] }
 0x756   :  { %v2154_v57 = vsub.f32 1.5, %v2153_v56  ;;  %v5573_v56 = vld [vmem:[%s7408_s4 + $0x28] sm:$0xff] }
 0x758   :  { %v2155_v58 = vmul.f32 %v5705_v52, %v2154_v57  ;;  %v5576_v57 = vld [vmem:[%s7408_s4 + $0x40] sm:$0xff] }
 0x75a   :  { %v2159_v61 = vsel %vm2158_vm2, %v5705_v52, %v2155_v58  ;;  %v5572_v52 = vld [vmem:[%s7408_s4 + $0x20] sm:$0xff]  ;;  %v5581_v58 = vld [vmem:[%s7408_s4 + $0x68] sm:$0xff] }
 0x75b   :  { %v2160_v59 = vmul.f32 %v4991_v43, %v2159_v61  ;;  %v5582_v61 = vld [vmem:[%s7408_s4 + $0x70] sm:$0xff] }
 0x75d   :  { %v2161_v24 = vmul.f32 %v2160_v59, %v2144_v11  ;;  %v2166_v10 = vperm.slane %v2160_v59, 0 }
 0x75f   :  { %v2163_v62 = vrot.slane %v2161_v24, 7  ;;  %v2167_v0 = vmul.f32 %v2166_v10, %v6535_v51  ;;  %v2169_v1 = vmul.f32 %v2166_v10, %v6546_v60  ;;  %v2168_v13 = vmul.f32 %v2166_v10, %v6533_v54 }
 0x761   :  { %v2165_v8 = vsub.f32 %v4991_v43, %v2163_v62  ;;  %v5580_v43 = vld [vmem:[%s7408_s4 + $0x60] sm:$0xff] }
 0x763   :  { %v2170_v16 = vperm.slane %v2165_v8, 1 }
 0x765   :  { %v2171_v48 = vadd.f32 %v2170_v16, %v2167_v0  ;;  %v2172_v49 = vadd.f32 %v2170_v16, %v2168_v13  ;;  %v2173_v2 = vadd.f32 %v2170_v16, %v2169_v1 }
 0x767   :  { %v2174_v3 = vmax.f32 %v2171_v48, 0.0  ;;  %v2175_v4 = vmax.f32 %v2172_v49, 0.0  ;;  %v2176_v6 = vmax.f32 %v2173_v2, 0.0 }
 0x769   :  { %v2177_v5 = vpack.c.bf16 %v2175_v4, %v2174_v3  ;;  %v2178_v9 = vpack.c.bf16 %v2176_v6, %v2176_v6 }
 0x76b   :  { %5024 = vmatmul.msk.bf16.vlgmr.msra.gmra.mxu1 %vm2118_vm14, %v2177_v5  ;;  %5026 = vmatmul.msk.bf16.vlgmr.msrb.gmra.mxu2 %vm2118_vm14, %v2177_v5 }
 0x77b   :  { %5025 = vmatmul.msk.bf16.gmra.mxu1 %vm2118_vm14, %v2178_v9  ;;  %5027 = vmatmul.msk.bf16.gmra.mxu2 %vm2118_vm14, %v2178_v9 }
 0x7e8   :  { %v2242_v51 = vpop.f32.mrf.mxu1 }
 0x7ee   :  { %v2260_v60 = vpop.f32.mrf.mxu2 }
 0x7ef   :  { %v2269_v12 = vpack.c.bf16 %v2260_v60, %v2242_v51 }
 0x7f0   :  { %v2244_v54 = vpop.f32.mrf.mxu1 }
 0x7f1   :  { %v2303_v53 = vunpack.c.l.b16 %v2269_v12  ;;  %v2563_v50 = vunpack.c.h.b16 %v2269_v12 }
 0x7f6   :  { %v2262_v14 = vpop.f32.mrf.mxu2 }
 0x7f7   :  { %v2270_v7 = vpack.c.bf16 %v2262_v14, %v2244_v54 }
 0x7f8   :  { %v2247_v19 = vpop.f32.mrf.mxu1 }
 0x7f9   :  { %v2304_v39 = vunpack.c.l.b16 %v2270_v7  ;;  %v2564_v22 = vunpack.c.h.b16 %v2270_v7 }
 0x7fb   :  { %v2306_v25 = vpack.c.b16 %v2304_v39, %v2303_v53  ;;  %v2566_v29 = vpack.c.b16 %v2564_v22, %v2563_v50 }
 0x7fd   :  { %2308 = vrot.lane.b32.xlu1 %v2306_v25, %s5982_s0 }
 0x7fe   :  { %v2265_v21 = vpop.f32.mrf.mxu2 }
 0x7ff   :  { %v2271_v11 = vpack.c.bf16 %v2265_v21, %v2247_v19 }
 0x800   :  { %v2249_v40 = vpop.f32.mrf.mxu1 }
 0x801   :  { %v2305_v17 = vunpack.c.l.b16 %v2271_v11  ;;  %v2565_v33 = vunpack.c.h.b16 %v2271_v11 }
 0x803   :  { %v2307_v27 = vpack.c.b16 %v2305_v17, %v2305_v17  ;;  %v2567_v32 = vpack.c.b16 %v2565_v33, %v2565_v33 }
 0x805   :  { %2494 = vrot.lane.b32.xlu1 %v2306_v25, %s5984_s8  ;;  %2496 = vrot.lane.b32.xlu2 %v2307_v27, %s5984_s8  ;;  %v2377_v18 = vsel %vm2323_vm3, %v2307_v27, 0  ;;  %v2579_v46 = vsel %vm2323_vm3, %v2567_v32, 0 }
 0x806   :  { %2310 = vrot.lane.b32.xlu0 %v2307_v27, %s5982_s0  ;;  %v2267_v26 = vpop.f32.mrf.mxu2  ;;  %2385 = vmatpush.bf16.msrb.mxu0 %v2377_v18 }
 0x80a   :  { %2386 = vmatpush.bf16.msrb.mxu0 %v2306_v25 }
 0x80d   :  { %2425 = vrot.lane.b32.xlu2 %v2306_v25, %s5965_s21  ;;  %5061 = vmatmul.msk.bf16.vlgmr.msrb.gmra.mxu0 %vm2313_vm4, %v5568_v30 }
 0x80e   :  { %2427 = vrot.lane.b32.xlu0 %v2307_v27, %s5965_s21 }
 0x81d   :  { %5062 = vmatmul.msk.bf16.gmra.mxu0 %vm2313_vm4, %v5569_v23 }
 0x82d   :  { %5063 = vmatmul.msk.bf16.gmra.mxu0 %vm2313_vm4, %v5570_v34 }
 0x85f   :  { %v2497_v28 = vpop.permute.xlu2 %2496 }
 0x860   :  { %v2509_v20 = vsel %vm2323_vm3, %v2497_v28, 0 }
 0x861   :  { %2517 = vmatpush.bf16.msra.mxu2 %v2509_v20 }
 0x867   :  { %v2426_v37 = vpop.permute.xlu2 %2425 }
 0x86f   :  { %v2309_v31 = vpop.permute.xlu1 %2308 }
 0x877   :  { %v2495_v44 = vpop.permute.xlu1 %2494 }
 0x878   :  { %v2311_v36 = vpop.permute.xlu0 %2310  ;;  %2518 = vmatpush.bf16.msra.mxu2 %v2495_v44 }
 0x879   :  { %v2325_v41 = vsel %vm2323_vm3, %v2311_v36, 0 }
 0x87a   :  { %2333 = vmatpush.bf16.msra.mxu3 %v2325_v41 }
 0x87b   :  { %5103 = vmatmul.msk.bf16.vlgmr.msra.gmra.mxu2 %vm2313_vm4, %v5577_v35 }
 0x87e   :  { %2334 = vmatpush.bf16.msra.mxu3 %v2309_v31 }
 0x880   :  { %v2428_v55 = vpop.permute.xlu0 %2427 }
 0x881   :  { %v2440_v63 = vsel %vm2323_vm3, %v2428_v55, 0  ;;  %5046 = vmatmul.msk.bf16.vlgmr.msra.gmra.mxu3 %vm2313_vm4, %v5571_v45 }
 0x882   :  { %2587 = vmatpush.bf16.msrb.mxu3 %v2579_v46  ;;  %2448 = vmatpush.bf16.msrb.mxu1 %v2440_v63 }
 0x886   :  { %2588 = vmatpush.bf16.msrb.mxu3 %v2566_v29  ;;  %2449 = vmatpush.bf16.msrb.mxu1 %v2426_v37 }
 0x889   :  { %5082 = vmatmul.msk.bf16.vlgmr.msrb.gmra.mxu1 %vm2313_vm4, %v5574_v47 }
 0x88a   :  { %v2388_v0 = vpop.f32.mrf.mxu0 }
 0x88b   :  { %5104 = vmatmul.msk.bf16.gmra.mxu2 %vm2313_vm4, %v5578_v38 }
 0x891   :  { %5047 = vmatmul.msk.bf16.gmra.mxu3 %vm2313_vm4, %v5572_v52 }
 0x892   :  { %v2390_v16 = vpop.f32.mrf.mxu0 }
 0x899   :  { %5083 = vmatmul.msk.bf16.gmra.mxu1 %vm2313_vm4, %v5575_v42 }
 0x89a   :  { %v2393_v3 = vpop.f32.mrf.mxu0 }
 0x89b   :  { %5105 = vmatmul.msk.bf16.gmra.mxu2 %vm2313_vm4, %v5579_v15 }
 0x8a1   :  { %5048 = vmatmul.msk.bf16.gmra.mxu3 %vm2313_vm4, %v5573_v56 }
 0x8a2   :  { %v2395_v9 = vpop.f32.mrf.mxu0 }
 0x8a9   :  { %5084 = vmatmul.msk.bf16.gmra.mxu1 %vm2313_vm4, %v5576_v57 }
 0x8aa   :  { %v2398_v7 = vpop.f32.mrf.mxu0 }
 0x8b1   :  { %5124 = vmatmul.msk.bf16.vlgmr.msrb.gmra.mxu3 %vm2313_vm4, %v5580_v43 }
 0x8b2   :  { %v2400_v20 = vpop.f32.mrf.mxu0 }
 0x8c1   :  { %5125 = vmatmul.msk.bf16.gmra.mxu3 %vm2313_vm4, %v5581_v58 }
 0x8d1   :  { %5126 = vmatmul.msk.bf16.gmra.mxu3 %vm2313_vm4, %v5582_v61 }
 0x8fe   :  { %v2520_v13 = vpop.f32.mrf.mxu2 }
 0x904   :  { %v2336_v59 = vpop.f32.mrf.mxu3 }
 0x905   :  { %v2389_v19 = vadd.f32 %v2388_v0, %v2336_v59 }
 0x906   :  { %v2451_v1 = vpop.f32.mrf.mxu1  ;;  %v2522_v2 = vpop.f32.mrf.mxu2 }
 0x907   :  { %v2466_v25 = vadd.f32 %v2451_v1, %v2389_v19 }
 0x909   :  { %v2535_v18 = vadd.f32 %v2520_v13, %v2466_v25 }
 0x90c   :  { %v2338_v24 = vpop.f32.mrf.mxu3 }
 0x90d   :  { %v2391_v14 = vadd.f32 %v2390_v16, %v2338_v24 }
 0x90e   :  { %v2453_v48 = vpop.f32.mrf.mxu1  ;;  %v2525_v6 = vpop.f32.mrf.mxu2 }
 0x90f   :  { %v2467_v50 = vadd.f32 %v2453_v48, %v2391_v14 }
 0x911   :  { %v2536_v40 = vadd.f32 %v2522_v2, %v2467_v50 }
 0x914   :  { %v2341_v10 = vpop.f32.mrf.mxu3 }
 0x915   :  { %v2394_v53 = vadd.f32 %v2393_v3, %v2341_v10 }
 0x916   :  { %v2456_v5 = vpop.f32.mrf.mxu1  ;;  %v2527_v54 = vpop.f32.mrf.mxu2 }
 0x917   :  { %v2468_v29 = vadd.f32 %v2456_v5, %v2394_v53 }
 0x919   :  { %v2537_v26 = vadd.f32 %v2525_v6, %v2468_v29 }
 0x91c   :  { %v2343_v62 = vpop.f32.mrf.mxu3 }
 0x91d   :  { %v2396_v39 = vadd.f32 %v2395_v9, %v2343_v62 }
 0x91e   :  { %v2458_v60 = vpop.f32.mrf.mxu1  ;;  %v2530_v27 = vpop.f32.mrf.mxu2 }
 0x91f   :  { %v2469_v17 = vadd.f32 %v2458_v60, %v2396_v39 }
 0x921   :  { %v2538_v31 = vadd.f32 %v2527_v54, %v2469_v17 }
 0x924   :  { %v2346_v8 = vpop.f32.mrf.mxu3 }
 0x925   :  { %v2399_v21 = vadd.f32 %v2398_v7, %v2346_v8 }
 0x926   :  { %v2461_v22 = vpop.f32.mrf.mxu1  ;;  %v2532_v15 = vpop.f32.mrf.mxu2 }
 0x927   :  { %v2470_v28 = vadd.f32 %v2461_v22, %v2399_v21 }
 0x929   :  { %v2539_v35 = vadd.f32 %v2530_v27, %v2470_v28  ;;  %v5583_v28 = vld [vmem:[#allocation15] sm:$0xff] }
 0x92c   :  { %v2348_v49 = vpop.f32.mrf.mxu3 }
 0x92d   :  { %v2401_v44 = vadd.f32 %v2400_v20, %v2348_v49 }
 0x92e   :  { %v2463_v36 = vpop.f32.mrf.mxu1 }
 0x92f   :  { %v2471_v37 = vadd.f32 %v2463_v36, %v2401_v44 }
 0x931   :  { %v2540_v10 = vadd.f32 %v2532_v15, %v2471_v37 }
 0x934   :  { %v2590_v4 = vpop.f32.mrf.mxu3 }
 0x935   :  { %v6637_v23 = vadd.f32 %v2590_v4, %v2535_v18  ;;  %v5584_v18 = vld [vmem:[#allocation15 + $0x8] sm:$0xff] }
 0x936   :  { %2729 = vmatpush.bf16.msra.mxu0 %v5584_v18 }
 0x937   :  { %v2630_v46 = vmul.f32 %v6637_v23, %v6637_v23  ;;  %v2613_v47 = vsel %vm1630_vm7, %v6637_v23, 0.0 }
 0x939   :  { %v2636_v57 = vsel %vm1630_vm7, %v2630_v46, 0.0 }
 0x93a   :  { %2730 = vmatpush.bf16.msra.mxu0 %v5583_v28 }
 0x93c   :  { %v2592_v51 = vpop.f32.mrf.mxu3 }
 0x93d   :  { %v6635_v30 = vadd.f32 %v2592_v51, %v2536_v40 }
 0x93f   :  { %v2631_v41 = vmul.f32 %v6635_v30, %v6635_v30  ;;  %v2614_v55 = vsel %vm1630_vm7, %v6635_v30, 0.0 }
 0x940   :  { %v2615_v56 = vadd.f32 %v2614_v55, %v2613_v47 }
 0x941   :  { %v2637_v38 = vsel %vm1630_vm7, %v2631_v41, 0.0  ;;  %v5127_v41 = vld [vmem:[%s7417_s13 + $0x6] sm:$0x3] }
 0x942   :  { %v2638_v59 = vadd.f32 %v2637_v38, %v2636_v57 }
 0x944   :  { %v2595_v12 = vpop.f32.mrf.mxu3 }
 0x945   :  { %v6639_v33 = vadd.f32 %v2595_v12, %v2537_v26 }
 0x947   :  { %v2632_v63 = vmul.f32 %v6639_v33, %v6639_v33  ;;  %v2616_v52 = vsel %vm1630_vm7, %v6639_v33, 0.0 }
 0x948   :  { %v2617_v24 = vadd.f32 %v2616_v52, %v2615_v56 }
 0x949   :  { %v2639_v43 = vsel %vm1630_vm7, %v2632_v63, 0.0 }
 0x94a   :  { %v2640_v1 = vadd.f32 %v2639_v43, %v2638_v59 }
 0x94c   :  { %v2597_v11 = vpop.f32.mrf.mxu3 }
 0x94d   :  { %v6643_v32 = vadd.f32 %v2597_v11, %v2538_v31 }
 0x94f   :  { %v2633_v42 = vmul.f32 %v6643_v32, %v6643_v32  ;;  %v2618_v58 = vsel %vm1630_vm7, %v6643_v32, 0.0 }
 0x950   :  { %v2619_v8 = vadd.f32 %v2618_v58, %v2617_v24 }
 0x951   :  { %v2641_v62 = vsel %vm1630_vm7, %v2633_v42, 0.0 }
 0x952   :  { %v2642_v49 = vadd.f32 %v2641_v62, %v2640_v1 }
 0x954   :  { %v2600_v45 = vpop.f32.mrf.mxu3 }
 0x955   :  { %v6651_v34 = vadd.f32 %v2600_v45, %v2539_v35 }
 0x957   :  { %v2634_v61 = vmul.f32 %v6651_v34, %v6651_v34  ;;  %v2620_v0 = vsel %vm1630_vm7, %v6651_v34, 0.0 }
 0x958   :  { %v2621_v2 = vadd.f32 %v2620_v0, %v2619_v8 }
 0x959   :  { %v2643_v16 = vsel %vm1630_vm7, %v2634_v61, 0.0 }
 0x95a   :  { %v2644_v5 = vadd.f32 %v2643_v16, %v2642_v49 }
 0x95c   :  { %v2602_v13 = vpop.f32.mrf.mxu3 }
 0x95d   :  { %v2610_v48 = vadd.f32 %v2602_v13, %v2540_v10 }
 0x95f   :  { %v2622_v3 = vsel %vm1630_vm7, %v2610_v48, 0.0  ;;  %v2635_v4 = vmul.f32 %v2610_v48, %v2610_v48 }
 0x960   :  { %v2623_v6 = vadd.f32 %v2622_v3, %v2621_v2 }
 0x961   :  { %v2645_v9 = vsel %vm1630_vm7, %v2635_v4, 0.0 }
 0x962   :  { %v2624_v51 = vrot.slane %v2623_v6, 4  ;;  %v2646_v60 = vadd.f32 %v2645_v9, %v2644_v5 }
 0x964   :  { %v2625_v54 = vadd.f32 %v2624_v51, %v2623_v6  ;;  %v2647_v12 = vrot.slane %v2646_v60, 4 }
 0x966   :  { %v2626_v14 = vrot.slane %v2625_v54, 2  ;;  %v2648_v7 = vadd.f32 %v2647_v12, %v2646_v60 }
 0x968   :  { %v2627_v19 = vadd.f32 %v2626_v14, %v2625_v54  ;;  %v2649_v53 = vrot.slane %v2648_v7, 2 }
 0x96a   :  { %v2628_v50 = vrot.slane %v2627_v19, 1  ;;  %v2650_v39 = vadd.f32 %v2649_v53, %v2648_v7 }
 0x96c   :  { %v2629_v22 = vadd.f32 %v2628_v50, %v2627_v19  ;;  %v2651_v25 = vrot.slane %v2650_v39, 1 }
 0x96e   :  { %v2652_v29 = vadd.f32 %v2651_v25, %v2650_v39  ;;  %v2653_v21 = vmul.f32 0.020833334, %v2629_v22 }
 0x970   :  { %v2654_v11 = vmul.f32 0.020833334, %v2652_v29  ;;  %v2655_v40 = vmul.f32 %v2653_v21, %v2653_v21 }
 0x972   :  { %v2656_v17 = vsub.f32 %v2654_v11, %v2655_v40  ;;  %v5586_v40 = vld [vmem:[#allocation7 + $0x8] sm:$0xff] }
 0x974   :  { %v2657_v27 = vmax.f32 %v2656_v17, 0.0 }
 0x976   :  { %v2658_v26 = vadd.f32 1e-05, %v2657_v27 }
 0x978   :  { %5706 = vrsqrt.f32 %v2658_v26  ;;  %vm2665_vm6 = vweird.f32 %v2658_v26 }
 0x97e   :  { %v5707_v20 = vpop.eup %5706 }
 0x97f   :  { %v2660_v31 = vmul.f32 %v5707_v20, %v2658_v26  ;;  %vm2666_vm5 = vweird.f32 %v5707_v20  ;;  %v5587_v26 = vld [vmem:[#allocation7 + $0x10] sm:$0xff] }
 0x980   :  { %vm2667_vm8 = vmor %vm2665_vm6, %vm2666_vm5 }
 0x981   :  { %v2661_v44 = vmul.f32 %v5707_v20, %v2660_v31  ;;  %v5591_v31 = vld [vmem:[#allocation7 + $0x30] sm:$0xff] }
 0x983   :  { %v2662_v35 = vmul.f32 0.5, %v2661_v44 }
 0x985   :  { %v2663_v36 = vsub.f32 1.5, %v2662_v35 }
 0x987   :  { %v2664_v45 = vmul.f32 %v5707_v20, %v2663_v36  ;;  %v5597_v36 = vld [vmem:[#allocation7 + $0x60] sm:$0xff] }
 0x989   :  { %v2668_v46 = vsel %vm2667_vm8, %v5707_v20, %v2664_v45  ;;  %v5588_v45 = vld [vmem:[#allocation7 + $0x18] sm:$0xff] }
 0x98a   :  { %v2669_v55 = vmul.f32 %v5127_v41, %v2668_v46 }
 0x98c   :  { %v2670_v63 = vmul.f32 %v2669_v55, %v2653_v21  ;;  %v2675_v37 = vperm.slane %v2669_v55, 0  ;;  %v5585_v21 = vld [vmem:[#allocation7] sm:$0xff] }
 0x98e   :  { %v2672_v47 = vrot.slane %v2670_v63, 7  ;;  %v2681_v38 = vmul.f32 %v2675_v37, %v2610_v48  ;;  %v2679_v52 = vmul.f32 %v2675_v37, %v6643_v32  ;;  %v2680_v42 = vmul.f32 %v2675_v37, %v6651_v34  ;;  %v5592_v63 = vld [vmem:[#allocation7 + $0x38] sm:$0xff] }
 0x98f   :  { %v2676_v57 = vmul.f32 %v2675_v37, %v6637_v23  ;;  %v2677_v43 = vmul.f32 %v2675_v37, %v6635_v30  ;;  %v2678_v58 = vmul.f32 %v2675_v37, %v6639_v33  ;;  %v5603_v37 = vld [vmem:[#allocation7 + $0x90] sm:$0xff] }
 0x990   :  { %v2674_v15 = vsub.f32 %v5127_v41, %v2672_v47 }
 0x992   :  { %v2682_v56 = vperm.slane %v2674_v15, 1  ;;  %v5604_v15 = vld [vmem:[#allocation7 + $0x98] sm:$0xff] }
 0x994   :  { %v2688_v61 = vadd.f32 %v2682_v56, %v2681_v38  ;;  %v2683_v59 = vadd.f32 %v2682_v56, %v2676_v57  ;;  %v2684_v24 = vadd.f32 %v2682_v56, %v2677_v43  ;;  %v2685_v10 = vadd.f32 %v2682_v56, %v2678_v58  ;;  %v5598_v38 = vld [vmem:[#allocation7 + $0x68] sm:$0xff]  ;;  %v5605_v58 = vld [vmem:[#allocation7 + $0xa0] sm:$0xff] }
 0x995   :  { %v2686_v62 = vadd.f32 %v2682_v56, %v2679_v52  ;;  %v2687_v0 = vadd.f32 %v2682_v56, %v2680_v42  ;;  %v5589_v52 = vld [vmem:[#allocation7 + $0x20] sm:$0xff]  ;;  %v5599_v56 = vld [vmem:[#allocation7 + $0x70] sm:$0xff]  ;;  %v5590_v57 = vld [vmem:[#allocation7 + $0x28] sm:$0xff] }
 0x996   :  { %v2694_v1 = vmax.f32 %v2688_v61, 0.0  ;;  %v2689_v8 = vmax.f32 %v2683_v59, 0.0  ;;  %v2690_v13 = vmax.f32 %v2684_v24, 0.0  ;;  %v2691_v32 = vmax.f32 %v2685_v10, 0.0  ;;  %v5593_v42 = vld [vmem:[#allocation7 + $0x40] sm:$0xff]  ;;  %v5594_v43 = vld [vmem:[#allocation7 + $0x48] sm:$0xff] }
 0x997   :  { %v2692_v16 = vmax.f32 %v2686_v62, 0.0  ;;  %v2693_v34 = vmax.f32 %v2687_v0, 0.0  ;;  %v5600_v61 = vld [vmem:[#allocation7 + $0x78] sm:$0xff]  ;;  %v5595_v59 = vld [vmem:[#allocation7 + $0x50] sm:$0xff]  ;;  %v5606_v24 = vld [vmem:[#allocation7 + $0xa8] sm:$0xff] }
 0x998   :  { %v2695_v48 = vpack.c.bf16 %v2690_v13, %v2689_v8  ;;  %v5601_v10 = vld [vmem:[#allocation7 + $0x80] sm:$0xff]  ;;  %v5596_v62 = vld [vmem:[#allocation7 + $0x58] sm:$0xff]  ;;  %v5607_v0 = vld [vmem:[#allocation7 + $0xb0] sm:$0xff] }
 0x999   :  { %v2696_v49 = vpack.c.bf16 %v2692_v16, %v2691_v32  ;;  %v2697_v2 = vpack.c.bf16 %v2694_v1, %v2693_v34  ;;  %v5602_v1 = vld [vmem:[#allocation7 + $0x88] sm:$0xff]  ;;  %v5608_v8 = vld [vmem:[#allocation7 + $0xb8] sm:$0xff]  ;;  %v5609_v13 = vld [vmem:[#allocation7 + $0xc0] sm:$0xff] }
 0x99a   :  { %5136 = vmatmul.msk.bf16.vlgmr.msra.gmra.mxu0 %vm1630_vm7, %v2695_v48  ;;  %v5610_v32 = vld [vmem:[#allocation7 + $0xc8] sm:$0xff]  ;;  %v5611_v34 = vld [vmem:[#allocation7 + $0xd0] sm:$0xff] }
 0x9aa   :  { %5137 = vmatmul.msk.bf16.gmra.mxu0 %vm1630_vm7, %v2696_v49 }
 0x9ba   :  { %5138 = vmatmul.msk.bf16.gmra.mxu0 %vm1630_vm7, %v2697_v2  ;;  %vm2832_vm7 = vcmask 392192  }
 0xa17   :  { %v2732_v30 = vpop.f32.mrf.mxu0 }
 0xa18   :  { %v2747_v23 = vpack.c.bf16 %v2732_v30, %v2732_v30 }
 0xa1a   :  { %v2814_v4 = vunpack.c.l.b16 %v2747_v23 }
 0xa1f   :  { %v2734_v33 = vpop.f32.mrf.mxu0 }
 0xa20   :  { %v2748_v3 = vpack.c.bf16 %v2734_v33, %v2734_v33  ;;  %v5612_v33 = vld [vmem:[#allocation7 + $0xd8] sm:$0xff] }
 0xa22   :  { %v2815_v5 = vunpack.c.l.b16 %v2748_v3 }
 0xa24   :  { %v2820_v6 = vpack.c.b16 %v2815_v5, %v2814_v4 }
 0xa26   :  { %2823 = vrot.lane.b32.xlu2 %v2820_v6, %s5981_s30 }
 0xa27   :  { %v2737_v9 = vpop.f32.mrf.mxu0 }
 0xa28   :  { %v2749_v51 = vpack.c.bf16 %v2737_v9, %v2737_v9  ;;  %v5613_v9 = vld [vmem:[#allocation7 + $0xe0] sm:$0xff] }
 0xa2a   :  { %v2816_v12 = vunpack.c.l.b16 %v2749_v51 }
 0xa2e   :  { %3023 = vrot.lane.b32.xlu2 %v2820_v6, %s5982_s0 }
 0xa2f   :  { %v2739_v60 = vpop.f32.mrf.mxu0 }
 0xa30   :  { %v2750_v54 = vpack.c.bf16 %v2739_v60, %v2739_v60 }
 0xa32   :  { %v2817_v14 = vunpack.c.l.b16 %v2750_v54  ;;  %v5614_v54 = vld [vmem:[#allocation7 + $0xe8] sm:$0xff] }
 0xa34   :  { %v2821_v7 = vpack.c.b16 %v2817_v14, %v2816_v12 }
 0xa36   :  { %3146 = vrot.lane.b32.xlu2 %v2821_v7, %s5983_s3  ;;  %2825 = vrot.lane.b32.xlu1 %v2821_v7, %s5981_s30 }
 0xa37   :  { %v2742_v19 = vpop.f32.mrf.mxu0 }
 0xa38   :  { %v2751_v53 = vpack.c.bf16 %v2742_v19, %v2742_v19 }
 0xa3a   :  { %v2818_v22 = vunpack.c.l.b16 %v2751_v53 }
 0xa3e   :  { %3265 = vrot.lane.b32.xlu2 %v2820_v6, %s5965_s21  ;;  %3025 = vrot.lane.b32.xlu1 %v2821_v7, %s5982_s0 }
 0xa3f   :  { %v2744_v50 = vpop.f32.mrf.mxu0 }
 0xa40   :  { %v2752_v39 = vpack.c.bf16 %v2744_v50, %v2744_v50 }
 0xa42   :  { %v2819_v25 = vunpack.c.l.b16 %v2752_v39 }
 0xa44   :  { %v2822_v29 = vpack.c.b16 %v2819_v25, %v2818_v22 }
 0xa46   :  { %3269 = vrot.lane.b32.xlu1 %v2822_v29, %s5965_s21  ;;  %2827 = vrot.lane.b32.xlu0 %v2822_v29, %s5981_s30 }
 0xa47   :  { %2946 = vmatpush.bf16.msrb.mxu2 %v2822_v29 }
 0xa4b   :  { %2947 = vmatpush.bf16.msrb.mxu2 %v2821_v7 }
 0xa4e   :  { %3144 = vrot.lane.b32.xlu1 %v2820_v6, %s5983_s3  ;;  %3027 = vrot.lane.b32.xlu0 %v2822_v29, %s5982_s0 }
 0xa4f   :  { %2948 = vmatpush.bf16.msrb.mxu2 %v2820_v6 }
 0xa52   :  { %5193 = vmatmul.msk.bf16.vlgmr.msrb.gmra.mxu2 %vm2832_vm7, %v5585_v21 }
 0xa56   :  { %3148 = vrot.lane.b32.xlu0 %v2822_v29, %s5983_s3 }
 0xa5e   :  { %3267 = vrot.lane.b32.xlu0 %v2821_v7, %s5965_s21 }
 0xa62   :  { %5194 = vmatmul.msk.bf16.gmra.mxu2 %vm2832_vm7, %v5586_v40 }
 0xa72   :  { %5195 = vmatmul.msk.bf16.gmra.mxu2 %vm2832_vm7, %v5587_v26 }
 0xa80   :  { %v2824_v17 = vpop.permute.xlu2 %2823 }
 0xa82   :  { %5196 = vmatmul.msk.bf16.gmra.mxu2 %vm2832_vm7, %v5588_v45 }
 0xa88   :  { %v3024_v28 = vpop.permute.xlu2 %3023 }
 0xa90   :  { %v3147_v41 = vpop.permute.xlu2 %3146 }
 0xa92   :  { %5197 = vmatmul.msk.bf16.gmra.mxu2 %vm2832_vm7, %v5589_v52 }
 0xa98   :  { %v3266_v47 = vpop.permute.xlu2 %3265 }
 0xaa2   :  { %5198 = vmatmul.msk.bf16.gmra.mxu2 %vm2832_vm7, %v5590_v57 }
 0xaa8   :  { %v2826_v11 = vpop.permute.xlu1 %2825 }
 0xab0   :  { %v3026_v27 = vpop.permute.xlu1 %3025 }
 0xab8   :  { %v2828_v18 = vpop.permute.xlu0 %2827  ;;  %v3270_v44 = vpop.permute.xlu1 %3269 }
 0xab9   :  { %2856 = vmatpush.bf16.msra.mxu1 %v2828_v18 }
 0xabd   :  { %2857 = vmatpush.bf16.msra.mxu1 %v2826_v11 }
 0xac0   :  { %v3028_v20 = vpop.permute.xlu0 %3027  ;;  %v3145_v46 = vpop.permute.xlu1 %3144 }
 0xac1   :  { %2858 = vmatpush.bf16.msra.mxu1 %v2824_v17  ;;  %3055 = vmatpush.bf16.msra.mxu3 %v3028_v20 }
 0xac4   :  { %5163 = vmatmul.msk.bf16.vlgmr.msra.gmra.mxu1 %vm2832_vm7, %v5591_v31 }
 0xac5   :  { %3297 = vmatpush.bf16.msrb.mxu1 %v3270_v44  ;;  %3056 = vmatpush.bf16.msra.mxu3 %v3026_v27 }
 0xac8   :  { %v3149_v35 = vpop.permute.xlu0 %3148 }
 0xac9   :  { %3057 = vmatpush.bf16.msra.mxu3 %v3024_v28  ;;  %3176 = vmatpush.bf16.msrb.mxu0 %v3149_v35 }
 0xacc   :  { %5223 = vmatmul.msk.bf16.vlgmr.msra.gmra.mxu3 %vm2832_vm7, %v5597_v36 }
 0xacd   :  { %3177 = vmatpush.bf16.msrb.mxu0 %v3147_v41 }
 0xad0   :  { %v3268_v55 = vpop.permute.xlu0 %3267 }
 0xad1   :  { %3178 = vmatpush.bf16.msrb.mxu0 %v3145_v46  ;;  %3298 = vmatpush.bf16.msrb.mxu1 %v3268_v55 }
 0xad4   :  { %5164 = vmatmul.msk.bf16.gmra.mxu1 %vm2832_vm7, %v5592_v63  ;;  %5253 = vmatmul.msk.bf16.vlgmr.msrb.gmra.mxu0 %vm2832_vm7, %v5603_v37 }
 0xad5   :  { %3299 = vmatpush.bf16.msrb.mxu1 %v3266_v47  ;;  %v2950_v16 = vpop.f32.mrf.mxu2 }
 0xadc   :  { %5224 = vmatmul.msk.bf16.gmra.mxu3 %vm2832_vm7, %v5598_v38 }
 0xadd   :  { %v2952_v53 = vpop.f32.mrf.mxu2 }
 0xae4   :  { %5165 = vmatmul.msk.bf16.gmra.mxu1 %vm2832_vm7, %v5593_v42  ;;  %5254 = vmatmul.msk.bf16.gmra.mxu0 %vm2832_vm7, %v5604_v15 }
 0xae5   :  { %v2955_v25 = vpop.f32.mrf.mxu2 }
 0xaec   :  { %5225 = vmatmul.msk.bf16.gmra.mxu3 %vm2832_vm7, %v5599_v56 }
 0xaed   :  { %v2957_v40 = vpop.f32.mrf.mxu2 }
 0xaf4   :  { %5166 = vmatmul.msk.bf16.gmra.mxu1 %vm2832_vm7, %v5594_v43  ;;  %5255 = vmatmul.msk.bf16.gmra.mxu0 %vm2832_vm7, %v5605_v58 }
 0xaf5   :  { %v2960_v28 = vpop.f32.mrf.mxu2 }
 0xafc   :  { %5226 = vmatmul.msk.bf16.gmra.mxu3 %vm2832_vm7, %v5600_v61 }
 0xafd   :  { %v2962_v36 = vpop.f32.mrf.mxu2 }
 0xb04   :  { %5167 = vmatmul.msk.bf16.gmra.mxu1 %vm2832_vm7, %v5595_v59  ;;  %5256 = vmatmul.msk.bf16.gmra.mxu0 %vm2832_vm7, %v5606_v24 }
 0xb05   :  { %v2965_v55 = vpop.f32.mrf.mxu2 }
 0xb0c   :  { %5227 = vmatmul.msk.bf16.gmra.mxu3 %vm2832_vm7, %v5601_v10 }
 0xb0d   :  { %v2967_v38 = vpop.f32.mrf.mxu2 }
 0xb14   :  { %5168 = vmatmul.msk.bf16.gmra.mxu1 %vm2832_vm7, %v5596_v62  ;;  %5257 = vmatmul.msk.bf16.gmra.mxu0 %vm2832_vm7, %v5607_v0 }
 0xb15   :  { %v2970_v56 = vpop.f32.mrf.mxu2 }
 0xb1c   :  { %5228 = vmatmul.msk.bf16.gmra.mxu3 %vm2832_vm7, %v5602_v1 }
 0xb24   :  { %5258 = vmatmul.msk.bf16.gmra.mxu0 %vm2832_vm7, %v5608_v8  ;;  %5283 = vmatmul.msk.bf16.vlgmr.msrb.gmra.mxu1 %vm2832_vm7, %v5609_v13 }
 0xb34   :  { %5284 = vmatmul.msk.bf16.gmra.mxu1 %vm2832_vm7, %v5610_v32 }
 0xb41   :  { %v2860_v48 = vpop.f32.mrf.mxu1 }
 0xb42   :  { %v2951_v49 = vadd.f32 %v2950_v16, %v2860_v48 }
 0xb44   :  { %5285 = vmatmul.msk.bf16.gmra.mxu1 %vm2832_vm7, %v5611_v34 }
 0xb49   :  { %v2862_v2 = vpop.f32.mrf.mxu1 }
 0xb4a   :  { %v2953_v43 = vadd.f32 %v2952_v53, %v2862_v2 }
 0xb4f   :  { %v3059_v30 = vpop.f32.mrf.mxu3 }
 0xb50   :  { %v3089_v23 = vadd.f32 %v3059_v30, %v2951_v49  ;;  %v2972_v30 = vpop.f32.mrf.mxu2 }
 0xb51   :  { %v2865_v3 = vpop.f32.mrf.mxu1  ;;  %v3180_v4 = vpop.f32.mrf.mxu0 }
 0xb52   :  { %v3210_v5 = vadd.f32 %v3180_v4, %v3089_v23  ;;  %v2956_v61 = vadd.f32 %v2955_v25, %v2865_v3 }
 0xb54   :  { %5286 = vmatmul.msk.bf16.gmra.mxu1 %vm2832_vm7, %v5612_v33 }
 0xb57   :  { %v3061_v50 = vpop.f32.mrf.mxu3 }
 0xb58   :  { %v3090_v59 = vadd.f32 %v3061_v50, %v2953_v43 }
 0xb59   :  { %v2867_v6 = vpop.f32.mrf.mxu1  ;;  %v3182_v39 = vpop.f32.mrf.mxu0 }
 0xb5a   :  { %v2958_v24 = vadd.f32 %v2957_v40, %v2867_v6  ;;  %v3211_v0 = vadd.f32 %v3182_v39, %v3090_v59 }
 0xb5f   :  { %v3064_v29 = vpop.f32.mrf.mxu3 }
 0xb60   :  { %v3091_v10 = vadd.f32 %v3064_v29, %v2956_v61 }
 0xb61   :  { %v2870_v51 = vpop.f32.mrf.mxu1  ;;  %v3185_v11 = vpop.f32.mrf.mxu0 }
 0xb62   :  { %v2961_v1 = vadd.f32 %v2960_v28, %v2870_v51  ;;  %v3212_v32 = vadd.f32 %v3185_v11, %v3091_v10 }
 0xb64   :  { %5287 = vmatmul.msk.bf16.gmra.mxu1 %vm2832_vm7, %v5613_v9 }
 0xb67   :  { %v3066_v17 = vpop.f32.mrf.mxu3 }
 0xb68   :  { %v3092_v8 = vadd.f32 %v3066_v17, %v2958_v24 }
 0xb69   :  { %v2872_v60 = vpop.f32.mrf.mxu1  ;;  %v3187_v26 = vpop.f32.mrf.mxu0 }
 0xb6a   :  { %v2963_v16 = vadd.f32 %v2962_v36, %v2872_v60  ;;  %v3213_v23 = vadd.f32 %v3187_v26, %v3092_v8 }
 0xb6f   :  { %v3069_v31 = vpop.f32.mrf.mxu3 }
 0xb70   :  { %v3093_v34 = vadd.f32 %v3069_v31, %v2961_v1 }
 0xb71   :  { %v2875_v12 = vpop.f32.mrf.mxu1  ;;  %v3190_v44 = vpop.f32.mrf.mxu0 }
 0xb72   :  { %v2966_v49 = vadd.f32 %v2965_v55, %v2875_v12  ;;  %v3214_v6 = vadd.f32 %v3190_v44, %v3093_v34  ;;  %v2975_v55 = vpop.f32.mrf.mxu2 }
 0xb74   :  { %5288 = vmatmul.msk.bf16.gmra.mxu1 %vm2832_vm7, %v5614_v54 }
 0xb77   :  { %v3071_v41 = vpop.f32.mrf.mxu3 }
 0xb78   :  { %v3094_v33 = vadd.f32 %v3071_v41, %v2963_v16 }
 0xb79   :  { %v2877_v14 = vpop.f32.mrf.mxu1  ;;  %v3192_v45 = vpop.f32.mrf.mxu0 }
 0xb7a   :  { %v2968_v3 = vadd.f32 %v2967_v38, %v2877_v14  ;;  %v3215_v12 = vadd.f32 %v3192_v45, %v3094_v33 }
 0xb7f   :  { %v3074_v63 = vpop.f32.mrf.mxu3 }
 0xb80   :  { %v3095_v4 = vadd.f32 %v3074_v63, %v2966_v49 }
 0xb81   :  { %v2880_v7 = vpop.f32.mrf.mxu1  ;;  %v3195_v47 = vpop.f32.mrf.mxu0 }
 0xb82   :  { %v2971_v54 = vadd.f32 %v2970_v56, %v2880_v7  ;;  %v3216_v25 = vadd.f32 %v3195_v47, %v3095_v4 }
 0xb87   :  { %v3076_v52 = vpop.f32.mrf.mxu3 }
 0xb88   :  { %v3096_v60 = vadd.f32 %v3076_v52, %v2968_v3 }
 0xb89   :  { %v6725_v19 = vpop.f32.mrf.mxu1  ;;  %v3197_v15 = vpop.f32.mrf.mxu0 }
 0xb8a   :  { %v2973_v29 = vadd.f32 %v2972_v30, %v6725_v19  ;;  %v3217_v31 = vadd.f32 %v3197_v15, %v3096_v60 }
 0xb8f   :  { %v3079_v58 = vpop.f32.mrf.mxu3 }
 0xb90   :  { %v3097_v11 = vadd.f32 %v3079_v58, %v2971_v54 }
 0xb91   :  { %v6727_v22 = vpop.f32.mrf.mxu1  ;;  %v3200_v62 = vpop.f32.mrf.mxu0 }
 0xb92   :  { %v3218_v63 = vadd.f32 %v3200_v62, %v3097_v11  ;;  %v2976_v62 = vadd.f32 %v2975_v55, %v6727_v22 }
 0xb99   :  { %v6729_v21 = vpop.f32.mrf.mxu1  ;;  %v3202_v40 = vpop.f32.mrf.mxu0 }
 0xba1   :  { %v3301_v27 = vpop.f32.mrf.mxu1  ;;  %v3205_v49 = vpop.f32.mrf.mxu0 }
 0xba2   :  { %v6731_v18 = vadd.f32 %v3301_v27, %v3210_v5  ;;  %v3081_v5 = vpop.f32.mrf.mxu3 }
 0xba3   :  { %v3098_v44 = vadd.f32 %v3081_v5, %v2973_v29 }
 0xba4   :  { %v3374_v53 = vmul.f32 %v6731_v18, %v6731_v18  ;;  %v3345_v7 = vsel %vm952_vm0, %v6731_v18, 0.0 }
 0xba5   :  { %v3219_v56 = vadd.f32 %v3202_v40, %v3098_v44 }
 0xba6   :  { %v3386_v19 = vsel %vm952_vm0, %v3374_v53, 0.0  ;;  %v2977_v53 = vpop.f32.mrf.mxu2 }
 0xba9   :  { %v3303_v20 = vpop.f32.mrf.mxu1 }
 0xbaa   :  { %v6733_v48 = vadd.f32 %v3303_v20, %v3211_v0  ;;  %v3084_v43 = vpop.f32.mrf.mxu3 }
 0xbab   :  { %v3099_v33 = vadd.f32 %v3084_v43, %v2976_v62 }
 0xbac   :  { %v3375_v9 = vmul.f32 %v6733_v48, %v6733_v48  ;;  %v3346_v50 = vsel %vm952_vm0, %v6733_v48, 0.0 }
 0xbae   :  { %v3387_v27 = vsel %vm952_vm0, %v3375_v9, 0.0 }
 0xbb1   :  { %v3306_v35 = vpop.f32.mrf.mxu1 }
 0xbb2   :  { %v6735_v2 = vadd.f32 %v3306_v35, %v3212_v32  ;;  %v3347_v35 = vadd.f32 %v3346_v50, %v3345_v7  ;;  %v3086_v11 = vpop.f32.mrf.mxu3 }
 0xbb4   :  { %v3376_v14 = vmul.f32 %v6735_v2, %v6735_v2  ;;  %v3348_v26 = vsel %vm952_vm0, %v6735_v2, 0.0 }
 0xbb5   :  { %v3349_v47 = vadd.f32 %v3348_v26, %v3347_v35 }
 0xbb6   :  { %v3389_v36 = vsel %vm952_vm0, %v3376_v14, 0.0  ;;  %v3220_v14 = vadd.f32 %v3205_v49, %v3099_v33 }
 0xbb9   :  { %v3308_v46 = vpop.f32.mrf.mxu1 }
 0xbba   :  { %v6739_v51 = vadd.f32 %v3308_v46, %v3213_v23 }
 0xbbc   :  { %v3377_v28 = vmul.f32 %v6739_v51, %v6739_v51  ;;  %v3350_v41 = vsel %vm952_vm0, %v6739_v51, 0.0 }
 0xbbd   :  { %v3351_v61 = vadd.f32 %v3350_v41, %v3349_v47  ;;  %v3207_v41 = vpop.f32.mrf.mxu0 }
 0xbbe   :  { %v3391_v38 = vsel %vm952_vm0, %v3377_v28, 0.0 }
 0xbc1   :  { %v3311_v37 = vpop.f32.mrf.mxu1 }
 0xbc2   :  { %v6747_v39 = vadd.f32 %v3311_v37, %v3214_v6  ;;  %v3388_v37 = vadd.f32 %v3387_v27, %v3386_v19  ;;  %v2978_v27 = vadd.f32 %v2977_v53, %v6729_v21  ;;  %v5289_v53 = vld [vmem:[%s7417_s13 + $0x8] sm:$0x3] }
 0xbc4   :  { %v3378_v45 = vmul.f32 %v6747_v39, %v6747_v39  ;;  %v3352_v52 = vsel %vm952_vm0, %v6747_v39, 0.0  ;;  %v3390_v58 = vadd.f32 %v3389_v36, %v3388_v37  ;;  %v3100_v19 = vadd.f32 %v3086_v11, %v2978_v27 }
 0xbc5   :  { %v3353_v1 = vadd.f32 %v3352_v52, %v3351_v61 }
 0xbc6   :  { %v3392_v0 = vadd.f32 %v3391_v38, %v3390_v58  ;;  %v3221_v47 = vadd.f32 %v3207_v41, %v3100_v19 }
 0xbc9   :  { %v3313_v42 = vpop.f32.mrf.mxu1 }
 0xbca   :  { %v6757_v20 = vadd.f32 %v3313_v42, %v3215_v12 }
 0xbcc   :  { %v3379_v42 = vmul.f32 %v6757_v20, %v6757_v20  ;;  %v3354_v59 = vsel %vm952_vm0, %v6757_v20, 0.0 }
 0xbcd   :  { %v3355_v23 = vadd.f32 %v3354_v59, %v3353_v1 }
 0xbd1   :  { %v3316_v57 = vpop.f32.mrf.mxu1 }
 0xbd2   :  { %v6765_v46 = vadd.f32 %v3316_v57, %v3216_v25  ;;  %v3393_v57 = vsel %vm952_vm0, %v3378_v45, 0.0 }
 0xbd3   :  { %v3394_v30 = vadd.f32 %v3393_v57, %v3392_v0 }
 0xbd4   :  { %v3380_v24 = vmul.f32 %v6765_v46, %v6765_v46  ;;  %v3356_v32 = vsel %vm952_vm0, %v6765_v46, 0.0 }
 0xbd5   :  { %v3357_v6 = vadd.f32 %v3356_v32, %v3355_v23 }
 0xbd6   :  { %v3397_v3 = vsel %vm952_vm0, %v3380_v24, 0.0 }
 0xbd9   :  { %v3318_v13 = vpop.f32.mrf.mxu1 }
 0xbda   :  { %v6772_v15 = vadd.f32 %v3318_v13, %v3217_v31  ;;  %v3395_v13 = vsel %vm952_vm0, %v3379_v42, 0.0 }
 0xbdb   :  { %v3396_v5 = vadd.f32 %v3395_v13, %v3394_v30 }
 0xbdc   :  { %v3381_v16 = vmul.f32 %v6772_v15, %v6772_v15  ;;  %v3358_v22 = vsel %vm952_vm0, %v6772_v15, 0.0 }
 0xbdd   :  { %v3398_v12 = vadd.f32 %v3397_v3, %v3396_v5  ;;  %v3359_v50 = vadd.f32 %v3358_v22, %v3357_v6 }
 0xbde   :  { %v3399_v9 = vsel %vm952_vm0, %v3381_v16, 0.0 }
 0xbdf   :  { %v3400_v40 = vadd.f32 %v3399_v9, %v3398_v12 }
 0xbe1   :  { %v3321_v17 = vpop.f32.mrf.mxu1 }
 0xbe2   :  { %v6779_v10 = vadd.f32 %v3321_v17, %v3218_v63 }
 0xbe4   :  { %v3382_v4 = vmul.f32 %v6779_v10, %v6779_v10  ;;  %v3360_v54 = vsel %vm952_vm0, %v6779_v10, 0.0 }
 0xbe5   :  { %v3361_v7 = vadd.f32 %v3360_v54, %v3359_v50 }
 0xbe6   :  { %v3401_v25 = vsel %vm952_vm0, %v3382_v4, 0.0 }
 0xbe7   :  { %v3402_v31 = vadd.f32 %v3401_v25, %v3400_v40 }
 0xbe9   :  { %v3323_v8 = vpop.f32.mrf.mxu1 }
 0xbea   :  { %v6787_v34 = vadd.f32 %v3323_v8, %v3219_v56 }
 0xbec   :  { %v3383_v60 = vmul.f32 %v6787_v34, %v6787_v34  ;;  %v3362_v29 = vsel %vm952_vm0, %v6787_v34, 0.0 }
 0xbed   :  { %v3363_v44 = vadd.f32 %v3362_v29, %v3361_v7 }
 0xbee   :  { %v3403_v26 = vsel %vm952_vm0, %v3383_v60, 0.0 }
 0xbef   :  { %v3404_v45 = vadd.f32 %v3403_v26, %v3402_v31 }
 0xbf1   :  { %v3326_v17 = vpop.f32.mrf.mxu1 }
 0xbf2   :  { %v3341_v28 = vadd.f32 %v3326_v17, %v3220_v14 }
 0xbf4   :  { %v3364_v35 = vsel %vm952_vm0, %v3341_v28, 0.0  ;;  %v3384_v36 = vmul.f32 %v3341_v28, %v3341_v28 }
 0xbf5   :  { %v3365_v55 = vadd.f32 %v3364_v35, %v3363_v44 }
 0xbf6   :  { %v3405_v63 = vsel %vm952_vm0, %v3384_v36, 0.0 }
 0xbf7   :  { %v3406_v37 = vadd.f32 %v3405_v63, %v3404_v45 }
 0xbf9   :  { %v3328_v38 = vpop.f32.mrf.mxu1 }
 0xbfa   :  { %v3342_v52 = vadd.f32 %v3328_v38, %v3221_v47 }
 0xbfc   :  { %v3366_v21 = vsel %vm952_vm0, %v3342_v52, 0.0  ;;  %v3385_v42 = vmul.f32 %v3342_v52, %v3342_v52 }
 0xbfd   :  { %v3367_v56 = vadd.f32 %v3366_v21, %v3365_v55 }
 0xbfe   :  { %v3407_v43 = vsel %vm952_vm0, %v3385_v42, 0.0 }
 0xbff   :  { %v3368_v58 = vrot.slane %v3367_v56, 4  ;;  %v3408_v61 = vadd.f32 %v3407_v43, %v3406_v37 }
 0xc01   :  { %v3369_v57 = vadd.f32 %v3368_v58, %v3367_v56  ;;  %v3409_v59 = vrot.slane %v3408_v61, 4 }
 0xc03   :  { %v3370_v24 = vrot.slane %v3369_v57, 2  ;;  %v3410_v62 = vadd.f32 %v3409_v59, %v3408_v61 }
 0xc05   :  { %v3371_v0 = vadd.f32 %v3370_v24, %v3369_v57  ;;  %v3411_v1 = vrot.slane %v3410_v62, 2 }
 0xc07   :  { %v3372_v8 = vrot.slane %v3371_v0, 1  ;;  %v3412_v13 = vadd.f32 %v3411_v1, %v3410_v62 }
 0xc09   :  { %v3373_v32 = vadd.f32 %v3372_v8, %v3371_v0  ;;  %v3413_v16 = vrot.slane %v3412_v13, 1 }
 0xc0b   :  { %v3414_v49 = vadd.f32 %v3413_v16, %v3412_v13  ;;  %v3415_v30 = vmul.f32 0.010416667, %v3373_v32  ;;  %v5615_v16 = vld [vmem:[#allocation9] sm:$0xff] }
 0xc0d   :  { %v3416_v23 = vmul.f32 0.010416667, %v3414_v49  ;;  %v3417_v33 = vmul.f32 %v3415_v30, %v3415_v30  ;;  %v5626_v49 = vld [vmem:[#allocation9 + $0x58] sm:$0xff] }
 0xc0f   :  { %v3418_v3 = vsub.f32 %v3416_v23, %v3417_v33  ;;  %v5633_v23 = vld [vmem:[#allocation9 + $0x90] sm:$0xff]  ;;  %v5616_v33 = vld [vmem:[#allocation9 + $0x8] sm:$0xff] }
 0xc11   :  { %v3419_v22 = vmax.f32 %v3418_v3, 0.0  ;;  %v5627_v3 = vld [vmem:[#allocation9 + $0x60] sm:$0xff] }
 0xc13   :  { %v3420_v4 = vadd.f32 1e-05, %v3419_v22  ;;  %v5634_v22 = vld [vmem:[#allocation9 + $0x98] sm:$0xff] }
 0xc15   :  { %5708 = vrsqrt.f32 %v3420_v4  ;;  %vm3427_vm10 = vweird.f32 %v3420_v4 }
 0xc1b   :  { %v5709_v5 = vpop.eup %5708 }
 0xc1c   :  { %v3422_v6 = vmul.f32 %v5709_v5, %v3420_v4  ;;  %vm3428_vm9 = vweird.f32 %v5709_v5  ;;  %v5647_v4 = vld [vmem:[#allocation9 + $0x100] sm:$0xff] }
 0xc1d   :  { %vm3429_vm11 = vmor %vm3427_vm10, %vm3428_vm9 }
 0xc1e   :  { %v3423_v9 = vmul.f32 %v5709_v5, %v3422_v6  ;;  %v5628_v6 = vld [vmem:[#allocation9 + $0x68] sm:$0xff] }
 0xc20   :  { %v3424_v54 = vmul.f32 0.5, %v3423_v9  ;;  %v5635_v9 = vld [vmem:[#allocation9 + $0xa0] sm:$0xff] }
 0xc22   :  { %v3425_v60 = vsub.f32 1.5, %v3424_v54  ;;  %v5648_v54 = vld [vmem:[#allocation9 + $0x108] sm:$0xff] }
 0xc24   :  { %v3426_v12 = vmul.f32 %v5709_v5, %v3425_v60  ;;  %v5618_v60 = vld [vmem:[#allocation9 + $0x18] sm:$0xff] }
 0xc26   :  { %v3430_v50 = vsel %vm3429_vm11, %v5709_v5, %v3426_v12  ;;  %v5617_v5 = vld [vmem:[#allocation9 + $0x10] sm:$0xff]  ;;  %v5636_v12 = vld [vmem:[#allocation9 + $0xa8] sm:$0xff] }
 0xc27   :  { %v3431_v14 = vmul.f32 %v5289_v53, %v3430_v50  ;;  %v5649_v50 = vld [vmem:[#allocation9 + $0x110] sm:$0xff] }
 0xc29   :  { %v3432_v25 = vmul.f32 %v3431_v14, %v3415_v30  ;;  %v3437_v29 = vperm.slane %v3431_v14, 0  ;;  %v5646_v30 = vld [vmem:[#allocation9 + $0xf8] sm:$0xff]  ;;  %v5619_v14 = vld [vmem:[#allocation9 + $0x20] sm:$0xff] }
 0xc2b   :  { %v3434_v11 = vrot.slane %v3432_v25, 7  ;;  %v3448_v40 = vmul.f32 %v3437_v29, %v3341_v28  ;;  %v3446_v7 = vmul.f32 %v3437_v29, %v6779_v10  ;;  %v3449_v27 = vmul.f32 %v3437_v29, %v3342_v52  ;;  %v5630_v25 = vld [vmem:[#allocation9 + $0x78] sm:$0xff] }
 0xc2c   :  { %v3447_v26 = vmul.f32 %v3437_v29, %v6787_v34  ;;  %v3444_v31 = vmul.f32 %v3437_v29, %v6765_v46  ;;  %v3445_v19 = vmul.f32 %v3437_v29, %v6772_v15  ;;  %v3442_v35 = vmul.f32 %v3437_v29, %v6747_v39 }
 0xc2d   :  { %v3436_v17 = vsub.f32 %v5289_v53, %v3434_v11  ;;  %v3443_v36 = vmul.f32 %v3437_v29, %v6757_v20  ;;  %v3440_v41 = vmul.f32 %v3437_v29, %v6735_v2  ;;  %v3441_v45 = vmul.f32 %v3437_v29, %v6739_v51  ;;  %v5629_v53 = vld [vmem:[#allocation9 + $0x70] sm:$0xff]  ;;  %v5650_v11 = vld [vmem:[#allocation9 + $0x118] sm:$0xff] }
 0xc2e   :  { %v3438_v28 = vmul.f32 %v3437_v29, %v6731_v18  ;;  %v3439_v10 = vmul.f32 %v3437_v29, %v6733_v48  ;;  %v5637_v29 = vld [vmem:[#allocation9 + $0xb0] sm:$0xff] }
 0xc2f   :  { %v3450_v44 = vperm.slane %v3436_v17, 1  ;;  %v5638_v17 = vld [vmem:[#allocation9 + $0xb8] sm:$0xff] }
 0xc31   :  { %v3462_v55 = vadd.f32 %v3450_v44, %v3449_v27  ;;  %v3461_v63 = vadd.f32 %v3450_v44, %v3448_v40  ;;  %v3459_v34 = vadd.f32 %v3450_v44, %v3446_v7  ;;  %v3460_v37 = vadd.f32 %v3450_v44, %v3447_v26  ;;  %v5620_v40 = vld [vmem:[#allocation9 + $0x28] sm:$0xff]  ;;  %v5631_v7 = vld [vmem:[#allocation9 + $0x80] sm:$0xff]  ;;  %v5621_v26 = vld [vmem:[#allocation9 + $0x30] sm:$0xff] }
 0xc32   :  { %v3457_v46 = vadd.f32 %v3450_v44, %v3444_v31  ;;  %v3458_v47 = vadd.f32 %v3450_v44, %v3445_v19  ;;  %v3455_v38 = vadd.f32 %v3450_v44, %v3442_v35  ;;  %v3456_v15 = vadd.f32 %v3450_v44, %v3443_v36  ;;  %v5651_v27 = vld [vmem:[#allocation9 + $0x120] sm:$0xff]  ;;  %v5632_v31 = vld [vmem:[#allocation9 + $0x88] sm:$0xff]  ;;  %v5622_v35 = vld [vmem:[#allocation9 + $0x38] sm:$0xff] }
 0xc33   :  { %v3474_v52 = vmax.f32 %v3462_v55, 0.0  ;;  %v3473_v39 = vmax.f32 %v3461_v63, 0.0  ;;  %v3471_v21 = vmax.f32 %v3459_v34, 0.0  ;;  %v3472_v20 = vmax.f32 %v3460_v37, 0.0  ;;  %v5652_v19 = vld [vmem:[#allocation9 + $0x128] sm:$0xff]  ;;  %v5641_v34 = vld [vmem:[#allocation9 + $0xd0] sm:$0xff] }
 0xc34   :  { %v3469_v42 = vmax.f32 %v3457_v46, 0.0  ;;  %v3470_v2 = vmax.f32 %v3458_v47, 0.0  ;;  %v3467_v56 = vmax.f32 %v3455_v38, 0.0  ;;  %v3468_v51 = vmax.f32 %v3456_v15, 0.0  ;;  %v5640_v36 = vld [vmem:[#allocation9 + $0xc8] sm:$0xff]  ;;  %v5654_v47 = vld [vmem:[#allocation9 + $0x138] sm:$0xff] }
 0xc35   :  { %v3565_v43 = vpack.c.bf16 %v3474_v52, %v3473_v39  ;;  %v3564_v18 = vpack.c.bf16 %v3472_v20, %v3471_v21  ;;  %v3453_v58 = vadd.f32 %v3450_v44, %v3440_v41  ;;  %v3454_v48 = vadd.f32 %v3450_v44, %v3441_v45  ;;  %v5653_v41 = vld [vmem:[#allocation9 + $0x130] sm:$0xff] }
 0xc36   :  { %v3563_v61 = vpack.c.bf16 %v3470_v2, %v3469_v42  ;;  %v3562_v57 = vpack.c.bf16 %v3468_v51, %v3467_v56  ;;  %v3451_v59 = vadd.f32 %v3450_v44, %v3438_v28  ;;  %v3452_v24 = vadd.f32 %v3450_v44, %v3439_v10  ;;  %v5639_v44 = vld [vmem:[#allocation9 + $0xc0] sm:$0xff]  ;;  %v6852_v45 = vld [vmem:[#allocation16] sm:$0x1f] }
 0xc37   :  { %3911 = vmatpush.bf16.msra.mxu0 %v3565_v43  ;;  %5657 = vmatpush.bf16.msra.mxu1 %v3565_v43  ;;  %v3465_v62 = vmax.f32 %v3453_v58, 0.0  ;;  %v3466_v0 = vmax.f32 %v3454_v48, 0.0  ;;  %v6855_v28 = vperm.slane %v6852_v45, 0  ;;  %v5623_v10 = vld [vmem:[#allocation9 + $0x40] sm:$0xff]  ;;  %v6859_v46 = vperm.slane %v6852_v45, 1 }
 0xc38   :  { %5658 = vmatpush.bf16.msra.mxu2 %v3565_v43  ;;  %5659 = vmatpush.bf16.msrb.mxu3 %v3565_v43  ;;  %v3463_v1 = vmax.f32 %v3451_v59, 0.0  ;;  %v3464_v8 = vmax.f32 %v3452_v24, 0.0  ;;  %v6865_v15 = vperm.slane %v6852_v45, 3  ;;  %v6868_v52 = vperm.slane %v6852_v45, 2 }
 0xc39   :  { %v3561_v13 = vpack.c.bf16 %v3466_v0, %v3465_v62 }
 0xc3a   :  { %v3560_v32 = vpack.c.bf16 %v3464_v8, %v3463_v1  ;;  %v5642_v8 = vld [vmem:[#allocation9 + $0xd8] sm:$0xff] }
 0xc3b   :  { %3912 = vmatpush.bf16.msra.mxu0 %v3564_v18  ;;  %5660 = vmatpush.bf16.msra.mxu1 %v3564_v18 }
 0xc3c   :  { %5661 = vmatpush.bf16.msra.mxu2 %v3564_v18  ;;  %5662 = vmatpush.bf16.msrb.mxu3 %v3564_v18 }
 0xc3f   :  { %3913 = vmatpush.bf16.msra.mxu0 %v3563_v61  ;;  %5663 = vmatpush.bf16.msra.mxu1 %v3563_v61 }
 0xc40   :  { %5664 = vmatpush.bf16.msra.mxu2 %v3563_v61  ;;  %5665 = vmatpush.bf16.msrb.mxu3 %v3563_v61 }
 0xc43   :  { %3914 = vmatpush.bf16.msra.mxu0 %v3562_v57  ;;  %5666 = vmatpush.bf16.msra.mxu1 %v3562_v57 }
 0xc44   :  { %5667 = vmatpush.bf16.msra.mxu2 %v3562_v57  ;;  %5668 = vmatpush.bf16.msrb.mxu3 %v3562_v57  ;;  %v5624_v57 = vld [vmem:[#allocation9 + $0x48] sm:$0xff] }
 0xc47   :  { %3915 = vmatpush.bf16.msra.mxu0 %v3561_v13  ;;  %5669 = vmatpush.bf16.msra.mxu1 %v3561_v13 }
 0xc48   :  { %5670 = vmatpush.bf16.msra.mxu2 %v3561_v13  ;;  %5671 = vmatpush.bf16.msrb.mxu3 %v3561_v13 }
 0xc4b   :  { %3916 = vmatpush.bf16.msra.mxu0 %v3560_v32  ;;  %5672 = vmatpush.bf16.msra.mxu1 %v3560_v32 }
 0xc4c   :  { %5673 = vmatpush.bf16.msra.mxu2 %v3560_v32  ;;  %5674 = vmatpush.bf16.msrb.mxu3 %v3560_v32 }
 0xc4e   :  { %5458 = vmatmul.msk.bf16.vlgmr.msra.gmra.mxu0 %vm3779_vm12, %v5615_v16  ;;  %5469 = vmatmul.msk.bf16.vlgmr.msra.gmra.mxu1 %vm3779_vm12, %v5626_v49 }
 0xc4f   :  { %5489 = vmatmul.msk.bf16.vlgmr.msrb.gmra.mxu3 %vm3779_vm12, %v5646_v30  ;;  %5476 = vmatmul.msk.bf16.vlgmr.msra.gmra.mxu2 %vm3779_vm12, %v5633_v23 }
 0xc5e   :  { %5459 = vmatmul.msk.bf16.gmra.mxu0 %vm3779_vm12, %v5616_v33  ;;  %5470 = vmatmul.msk.bf16.gmra.mxu1 %vm3779_vm12, %v5627_v3 }
 0xc5f   :  { %5477 = vmatmul.msk.bf16.gmra.mxu2 %vm3779_vm12, %v5634_v22  ;;  %5490 = vmatmul.msk.bf16.gmra.mxu3 %vm3779_vm12, %v5647_v4 }
 0xc6e   :  { %5460 = vmatmul.msk.bf16.gmra.mxu0 %vm3779_vm12, %v5617_v5  ;;  %5471 = vmatmul.msk.bf16.gmra.mxu1 %vm3779_vm12, %v5628_v6 }
 0xc6f   :  { %5478 = vmatmul.msk.bf16.gmra.mxu2 %vm3779_vm12, %v5635_v9  ;;  %5491 = vmatmul.msk.bf16.gmra.mxu3 %vm3779_vm12, %v5648_v54 }
 0xc7e   :  { %5461 = vmatmul.msk.bf16.gmra.mxu0 %vm3779_vm12, %v5618_v60  ;;  %5472 = vmatmul.msk.bf16.gmra.mxu1 %vm3779_vm12, %v5629_v53 }
 0xc7f   :  { %5479 = vmatmul.msk.bf16.gmra.mxu2 %vm3779_vm12, %v5636_v12  ;;  %5492 = vmatmul.msk.bf16.gmra.mxu3 %vm3779_vm12, %v5649_v50  ;;  %v5625_v12 = vld [vmem:[#allocation9 + $0x50] sm:$0xff] }
 0xc8e   :  { %5462 = vmatmul.msk.bf16.gmra.mxu0 %vm3779_vm12, %v5619_v14  ;;  %5473 = vmatmul.msk.bf16.gmra.mxu1 %vm3779_vm12, %v5630_v25 }
 0xc8f   :  { %5480 = vmatmul.msk.bf16.gmra.mxu2 %vm3779_vm12, %v5637_v29  ;;  %5493 = vmatmul.msk.bf16.gmra.mxu3 %vm3779_vm12, %v5650_v11  ;;  %v5655_v29 = vld [vmem:[#allocation9 + $0x140] sm:$0xff] }
 0xc9e   :  { %5463 = vmatmul.msk.bf16.gmra.mxu0 %vm3779_vm12, %v5620_v40  ;;  %5474 = vmatmul.msk.bf16.gmra.mxu1 %vm3779_vm12, %v5631_v7  ;;  %v5643_v40 = vld [vmem:[#allocation9 + $0xe0] sm:$0xff] }
 0xc9f   :  { %5481 = vmatmul.msk.bf16.gmra.mxu2 %vm3779_vm12, %v5638_v17  ;;  %5494 = vmatmul.msk.bf16.gmra.mxu3 %vm3779_vm12, %v5651_v27 }
 0xcae   :  { %5464 = vmatmul.msk.bf16.gmra.mxu0 %vm3779_vm12, %v5621_v26  ;;  %5475 = vmatmul.msk.bf16.gmra.mxu1 %vm3779_vm12, %v5632_v31 }
 0xcaf   :  { %5482 = vmatmul.msk.bf16.gmra.mxu2 %vm3779_vm12, %v5639_v44  ;;  %5495 = vmatmul.msk.bf16.gmra.mxu3 %vm3779_vm12, %v5652_v19 }
 0xcbe   :  { %5465 = vmatmul.msk.bf16.gmra.mxu0 %vm3779_vm12, %v5622_v35 }
 0xcbf   :  { %5483 = vmatmul.msk.bf16.gmra.mxu2 %vm3779_vm12, %v5640_v36  ;;  %5496 = vmatmul.msk.bf16.gmra.mxu3 %vm3779_vm12, %v5653_v41 }
 0xccb   :  { %v3918_v55 = vpop.f32.mrf.mxu0  ;;  %v3973_v63 = vpop.f32.mrf.mxu1 }
 0xccc   :  { %v4134_v37 = vmul.f32 %v6855_v28, %v3918_v55  ;;  %v4208_v39 = vmul.f32 %v6859_v46, %v3973_v63 }
 0xcce   :  { %5466 = vmatmul.msk.bf16.gmra.mxu0 %vm3779_vm12, %v5623_v10  ;;  %v4151_v38 = vsel %vm952_vm0, %v4134_v37, 0.0  ;;  %v4235_v43 = vsel %vm952_vm0, %v4208_v39, 0.0 }
 0xccf   :  { %4152 = vadd.xlane.f32.xlu0 %v4151_v38  ;;  %5484 = vmatmul.msk.bf16.gmra.mxu2 %vm3779_vm12, %v5641_v34 }
 0xcd0   :  { %5497 = vmatmul.msk.bf16.gmra.mxu3 %vm3779_vm12, %v5654_v47 }
 0xcd2   :  { %v4073_v21 = vpop.f32.mrf.mxu3  ;;  %v4008_v20 = vpop.f32.mrf.mxu2 }
 0xcd3   :  { %v4386_v42 = vmul.f32 %v6865_v15, %v4073_v21  ;;  %v3920_v2 = vpop.f32.mrf.mxu0  ;;  %v3975_v56 = vpop.f32.mrf.mxu1  ;;  %v4291_v51 = vmul.f32 %v6868_v52, %v4008_v20  ;;  %v5656_v20 = vld [vmem:[#allocation9 + $0x148] sm:$0xff] }
 0xcd4   :  { %v4135_v48 = vmul.f32 %v6855_v28, %v3920_v2  ;;  %v4209_v30 = vmul.f32 %v6859_v46, %v3975_v56  ;;  %v5644_v2 = vld [vmem:[#allocation9 + $0xe8] sm:$0xff] }
 0xcd5   :  { %v4425_v18 = vsel %vm952_vm0, %v4386_v42, 0.0  ;;  %v4312_v58 = vsel %vm952_vm0, %v4291_v51, 0.0 }
 0xcd6   :  { %4426 = vadd.xlane.f32.xlu1 %v4425_v18  ;;  %4313 = vadd.xlane.f32.xlu2 %v4312_v58  ;;  %v4154_v13 = vsel %vm952_vm0, %v4135_v48, 0.0  ;;  %v4238_v6 = vsel %vm952_vm0, %v4209_v30, 0.0 }
 0xcd7   :  { %4236 = vadd.xlane.f32.xlu0 %v4235_v43 }
 0xcda   :  { %v4010_v61 = vpop.f32.mrf.mxu2  ;;  %v4075_v59 = vpop.f32.mrf.mxu3 }
 0xcdb   :  { %v3923_v24 = vpop.f32.mrf.mxu0  ;;  %v3978_v62 = vpop.f32.mrf.mxu1  ;;  %v4292_v0 = vmul.f32 %v6868_v52, %v4010_v61  ;;  %v4387_v54 = vmul.f32 %v6865_v15, %v4075_v59 }
 0xcdc   :  { %v4136_v1 = vmul.f32 %v6855_v28, %v3923_v24  ;;  %v4210_v49 = vmul.f32 %v6859_v46, %v3978_v62  ;;  %v6924_v62 = vperm.slane %v6852_v45, 4 }
 0xcdd   :  { %v4315_v32 = vsel %vm952_vm0, %v4292_v0, 0.0  ;;  %v4428_v7 = vsel %vm952_vm0, %v4387_v54, 0.0 }
 0xcde   :  { %4155 = vadd.xlane.f32.xlu1 %v4154_v13  ;;  %5467 = vmatmul.msk.bf16.gmra.mxu0 %vm3779_vm12, %v5624_v57  ;;  %v4157_v16 = vsel %vm952_vm0, %v4136_v1, 0.0  ;;  %v4241_v5 = vsel %vm952_vm0, %v4210_v49, 0.0 }
 0xcdf   :  { %4316 = vadd.xlane.f32.xlu0 %v4315_v32  ;;  %4158 = vadd.xlane.f32.xlu2 %v4157_v16  ;;  %v3559_v32 = vld [vmem:[#allocation9 + $0x150] sm:$0xf] }
 0xce0   :  { %5485 = vmatmul.msk.bf16.gmra.mxu2 %vm3779_vm12, %v5642_v8  ;;  %5498 = vmatmul.msk.bf16.gmra.mxu3 %vm3779_vm12, %v5655_v29  ;;  %v3735_v49 = vunpack.c.l.b16 %v3559_v32 }
 0xce2   :  { %v4013_v23 = vpop.f32.mrf.mxu2  ;;  %v4078_v33 = vpop.f32.mrf.mxu3 }
 0xce3   :  { %v3925_v3 = vpop.f32.mrf.mxu0  ;;  %v3980_v22 = vpop.f32.mrf.mxu1  ;;  %v4293_v26 = vmul.f32 %v6868_v52, %v4013_v23  ;;  %v4388_v34 = vmul.f32 %v6865_v15, %v4078_v33 }
 0xce4   :  { %v4211_v4 = vmul.f32 %v6859_v46, %v3980_v22  ;;  %v4137_v60 = vmul.f32 %v6855_v28, %v3925_v3  ;;  %v3778_v22 = vpack.c.b16 %v3735_v49, %v3735_v49 }
 0xce5   :  { %v4318_v10 = vsel %vm952_vm0, %v4293_v26, 0.0  ;;  %v4431_v56 = vsel %vm952_vm0, %v4388_v34, 0.0 }
 0xce6   :  { %4239 = vadd.xlane.f32.xlu1 %v4238_v6  ;;  %v4244_v9 = vsel %vm952_vm0, %v4211_v4, 0.0  ;;  %v4160_v17 = vsel %vm952_vm0, %v4137_v60, 0.0 }
 0xce7   :  { %4245 = vadd.xlane.f32.xlu0 %v4244_v9  ;;  %4242 = vadd.xlane.f32.xlu2 %v4241_v5  ;;  %v5645_v5 = vld [vmem:[#allocation9 + $0xf0] sm:$0xff] }
 0xcea   :  { %v4015_v53 = vpop.f32.mrf.mxu2  ;;  %v6893_v50 = vpop.f32.mrf.mxu3 }
 0xceb   :  { %v3928_v14 = vpop.f32.mrf.mxu0  ;;  %v3983_v25 = vpop.f32.mrf.mxu1  ;;  %v4294_v31 = vmul.f32 %v6868_v52, %v4015_v53 }
 0xcec   :  { %v4138_v11 = vmul.f32 %v6855_v28, %v3928_v14  ;;  %v4212_v18 = vmul.f32 %v6859_v46, %v3983_v25 }
 0xced   :  { %v4321_v63 = vsel %vm952_vm0, %v4294_v31, 0.0 }
 0xcee   :  { %4429 = vadd.xlane.f32.xlu1 %v4428_v7  ;;  %5468 = vmatmul.msk.bf16.gmra.mxu0 %vm3779_vm12, %v5625_v12  ;;  %v4163_v27 = vsel %vm952_vm0, %v4138_v11, 0.0  ;;  %v4247_v0 = vsel %vm952_vm0, %v4212_v18, 0.0 }
 0xcef   :  { %4161 = vadd.xlane.f32.xlu2 %v4160_v17  ;;  %4164 = vadd.xlane.f32.xlu0 %v4163_v27 }
 0xcf0   :  { %5486 = vmatmul.msk.bf16.gmra.mxu2 %vm3779_vm12, %v5643_v40  ;;  %5499 = vmatmul.msk.bf16.gmra.mxu3 %vm3779_vm12, %v5656_v20 }
 0xcf2   :  { %v4018_v44 = vpop.f32.mrf.mxu2  ;;  %v6904_v19 = vpop.f32.mrf.mxu3 }
 0xcf3   :  { %v3930_v35 = vpop.f32.mrf.mxu0  ;;  %v3985_v36 = vpop.f32.mrf.mxu1  ;;  %v4295_v41 = vmul.f32 %v6868_v52, %v4018_v44 }
 0xcf4   :  { %v4213_v37 = vmul.f32 %v6859_v46, %v3985_v36  ;;  %v4139_v16 = vmul.f32 %v6855_v28, %v3930_v35 }
 0xcf5   :  { %v4324_v55 = vsel %vm952_vm0, %v4295_v41, 0.0 }
 0xcf6   :  { %4319 = vadd.xlane.f32.xlu1 %v4318_v10  ;;  %v4250_v51 = vsel %vm952_vm0, %v4213_v37, 0.0  ;;  %v4166_v6 = vsel %vm952_vm0, %v4139_v16, 0.0 }
 0xcf7   :  { %4322 = vadd.xlane.f32.xlu2 %v4321_v63  ;;  %4325 = vadd.xlane.f32.xlu0 %v4324_v55 }
 0xcfa   :  { %v4020_v47 = vpop.f32.mrf.mxu2  ;;  %v6912_v38 = vpop.f32.mrf.mxu3 }
 0xcfb   :  { %v3933_v39 = vpop.f32.mrf.mxu0  ;;  %v3988_v21 = vpop.f32.mrf.mxu1  ;;  %v4296_v60 = vmul.f32 %v6868_v52, %v4020_v47 }
 0xcfc   :  { %v4214_v42 = vmul.f32 %v6859_v46, %v3988_v21  ;;  %v4140_v58 = vmul.f32 %v6855_v28, %v3933_v39 }
 0xcfd   :  { %v4327_v40 = vsel %vm952_vm0, %v4296_v60, 0.0 }
 0xcfe   :  { %4432 = vadd.xlane.f32.xlu1 %v4431_v56  ;;  %v4253_v43 = vsel %vm952_vm0, %v4214_v42, 0.0  ;;  %v4169_v8 = vsel %vm952_vm0, %v4140_v58, 0.0 }
 0xcff   :  { %4251 = vadd.xlane.f32.xlu2 %v4250_v51  ;;  %4254 = vadd.xlane.f32.xlu0 %v4253_v43 }
 0xd00   :  { %5487 = vmatmul.msk.bf16.gmra.mxu2 %vm3779_vm12, %v5644_v2  ;;  %5500 = vmatmul.msk.bf16.gmra.mxu3 %vm3779_vm12, %v3778_v22 }
 0xd02   :  { %v4023_v48 = vpop.f32.mrf.mxu2  ;;  %v4088_v61 = vpop.f32.mrf.mxu3 }
 0xd03   :  { %v3935_v57 = vpop.f32.mrf.mxu0  ;;  %v4297_v59 = vmul.f32 %v6868_v52, %v4023_v48  ;;  %v3990_v24 = vpop.f32.mrf.mxu1  ;;  %v4461_v13 = vmul.f32 %v6924_v62, %v4088_v61 }
 0xd04   :  { %v4141_v30 = vmul.f32 %v6855_v28, %v3935_v57  ;;  %v4215_v27 = vmul.f32 %v6859_v46, %v3990_v24 }
 0xd05   :  { %v4330_v1 = vsel %vm952_vm0, %v4297_v59, 0.0  ;;  %v4478_v4 = vsel %vm952_vm0, %v4461_v13, 0.0 }
 0xd06   :  { %4248 = vadd.xlane.f32.xlu1 %v4247_v0  ;;  %v4172_v9 = vsel %vm952_vm0, %v4141_v30, 0.0  ;;  %v4256_v41 = vsel %vm952_vm0, %v4215_v27, 0.0 }
 0xd07   :  { %4331 = vadd.xlane.f32.xlu0 %v4330_v1  ;;  %4170 = vadd.xlane.f32.xlu2 %v4169_v8 }
 0xd0a   :  { %v4025_v23 = vpop.f32.mrf.mxu2  ;;  %v4090_v45 = vpop.f32.mrf.mxu3 }
 0xd0b   :  { %v3938_v33 = vpop.f32.mrf.mxu0  ;;  %v3993_v3 = vpop.f32.mrf.mxu1  ;;  %v4462_v12 = vmul.f32 %v6924_v62, %v4090_v45  ;;  %v4298_v26 = vmul.f32 %v6868_v52, %v4025_v23 }
 0xd0c   :  { %v4216_v54 = vmul.f32 %v6859_v46, %v3993_v3  ;;  %v4142_v63 = vmul.f32 %v6855_v28, %v3938_v33 }
 0xd0d   :  { %v4481_v7 = vsel %vm952_vm0, %v4462_v12, 0.0  ;;  %v4333_v55 = vsel %vm952_vm0, %v4298_v26, 0.0 }
 0xd0e   :  { %4167 = vadd.xlane.f32.xlu1 %v4166_v6  ;;  %v4259_v11 = vsel %vm952_vm0, %v4216_v54, 0.0  ;;  %v4175_v21 = vsel %vm952_vm0, %v4142_v63, 0.0 }
 0xd0f   :  { %4479 = vadd.xlane.f32.xlu2 %v4478_v4  ;;  %4173 = vadd.xlane.f32.xlu0 %v4172_v9 }
 0xd10   :  { %5488 = vmatmul.msk.bf16.gmra.mxu2 %vm3779_vm12, %v5645_v5 }
 0xd12   :  { %v4028_v53 = vpop.f32.mrf.mxu2  ;;  %v4093_v14 = vpop.f32.mrf.mxu3 }
 0xd13   :  { %v3940_v25 = vpop.f32.mrf.mxu0  ;;  %v3995_v29 = vpop.f32.mrf.mxu1  ;;  %v4463_v17 = vmul.f32 %v6924_v62, %v4093_v14  ;;  %v4299_v37 = vmul.f32 %v6868_v52, %v4028_v53 }
 0xd14   :  { %v4143_v34 = vmul.f32 %v6855_v28, %v3940_v25  ;;  %v4217_v43 = vmul.f32 %v6859_v46, %v3995_v29 }
 0xd15   :  { %v4484_v36 = vsel %vm952_vm0, %v4463_v17, 0.0  ;;  %v4336_v42 = vsel %vm952_vm0, %v4299_v37, 0.0 }
 0xd16   :  { %4328 = vadd.xlane.f32.xlu1 %v4327_v40  ;;  %v4178_v2 = vsel %vm952_vm0, %v4143_v34, 0.0  ;;  %v4262_v57 = vsel %vm952_vm0, %v4217_v43, 0.0 }
 0xd17   :  { %4260 = vadd.xlane.f32.xlu2 %v4259_v11  ;;  %4482 = vadd.xlane.f32.xlu0 %v4481_v7 }
 0xd1a   :  { %v4030_v31 = vpop.f32.mrf.mxu2  ;;  %v4095_v35 = vpop.f32.mrf.mxu3 }
 0xd1b   :  { %v3943_v44 = vpop.f32.mrf.mxu0  ;;  %v3998_v10 = vpop.f32.mrf.mxu1  ;;  %v4464_v51 = vmul.f32 %v6924_v62, %v4095_v35  ;;  %v4300_v1 = vmul.f32 %v6868_v52, %v4030_v31 }
 0xd1c   :  { %v4218_v0 = vmul.f32 %v6859_v46, %v3998_v10  ;;  %v4144_v3 = vmul.f32 %v6855_v28, %v3943_v44 }
 0xd1d   :  { %v4487_v61 = vsel %vm952_vm0, %v4464_v51, 0.0  ;;  %v4339_v30 = vsel %vm952_vm0, %v4300_v1, 0.0 }
 0xd1e   :  { %4257 = vadd.xlane.f32.xlu1 %v4256_v41  ;;  %v4265_v49 = vsel %vm952_vm0, %v4218_v0, 0.0  ;;  %v4181_v54 = vsel %vm952_vm0, %v4144_v3, 0.0 }
 0xd1f   :  { %4485 = vadd.xlane.f32.xlu2 %v4484_v36  ;;  %4334 = vadd.xlane.f32.xlu0 %v4333_v55 }
 0xd22   :  { %v6952_v47 = vpop.f32.mrf.mxu2  ;;  %v4098_v20 = vpop.f32.mrf.mxu3 }
 0xd23   :  { %v3945_v39 = vpop.f32.mrf.mxu0  ;;  %v4000_v56 = vpop.f32.mrf.mxu1  ;;  %v4465_v25 = vmul.f32 %v6924_v62, %v4098_v20  ;;  %v4301_v35 = vmul.f32 %v6868_v52, %v6952_v47 }
 0xd24   :  { %v4219_v18 = vmul.f32 %v6859_v46, %v4000_v56  ;;  %v4145_v33 = vmul.f32 %v6855_v28, %v3945_v39 }
 0xd25   :  { %v4490_v27 = vsel %vm952_vm0, %v4465_v25, 0.0  ;;  %v4342_v37 = vsel %vm952_vm0, %v4301_v35, 0.0 }
 0xd26   :  { %4176 = vadd.xlane.f32.xlu1 %v4175_v21  ;;  %v4268_v59 = vsel %vm952_vm0, %v4219_v18, 0.0  ;;  %v4184_v9 = vsel %vm952_vm0, %v4145_v33, 0.0 }
 0xd27   :  { %4337 = vadd.xlane.f32.xlu0 %v4336_v42  ;;  %4179 = vadd.xlane.f32.xlu2 %v4178_v2 }
 0xd2a   :  { %v6960_v58 = vpop.f32.mrf.mxu2  ;;  %v4100_v24 = vpop.f32.mrf.mxu3 }
 0xd2b   :  { %v3948_v48 = vpop.f32.mrf.mxu0  ;;  %v4466_v13 = vmul.f32 %v6924_v62, %v4100_v24  ;;  %v6970_v32 = vpop.f32.mrf.mxu1  ;;  %v4302_v20 = vmul.f32 %v6868_v52, %v6960_v58 }
 0xd2c   :  { %v4146_v22 = vmul.f32 %v6855_v28, %v3948_v48 }
 0xd2d   :  { %v4493_v23 = vsel %vm952_vm0, %v4466_v13, 0.0  ;;  %v4345_v48 = vsel %vm952_vm0, %v4302_v20, 0.0 }
 0xd2e   :  { %4488 = vadd.xlane.f32.xlu1 %v4487_v61  ;;  %v4187_v60 = vsel %vm952_vm0, %v4146_v22, 0.0 }
 0xd2f   :  { %4263 = vadd.xlane.f32.xlu0 %v4262_v57  ;;  %4269 = vadd.xlane.f32.xlu2 %v4268_v59  ;;  %v4289_v59 = vmul.f32 %v6868_v52, %v6970_v32 }
 0xd32   :  { %v6967_v8 = vpop.f32.mrf.mxu2  ;;  %v4103_v45 = vpop.f32.mrf.mxu3 }
 0xd33   :  { %v6972_v16 = vpop.f32.mrf.mxu0  ;;  %v4005_v6 = vpop.f32.mrf.mxu1  ;;  %v4467_v12 = vmul.f32 %v6924_v62, %v4103_v45  ;;  %v4303_v22 = vmul.f32 %v6868_v52, %v6967_v8 }
 0xd34   :  { %v4290_v53 = vmul.f32 %v6868_v52, %v4005_v6 }
 0xd35   :  { %v4496_v17 = vsel %vm952_vm0, %v4467_v12, 0.0  ;;  %v4348_v12 = vsel %vm952_vm0, %v4303_v22, 0.0 }
 0xd36   :  { %4266 = vadd.xlane.f32.xlu1 %v4265_v49  ;;  %v4309_v7 = vsel %vm952_vm0, %v4290_v53, 0.0 }
 0xd37   :  { %4340 = vadd.xlane.f32.xlu0 %v4339_v30  ;;  %4494 = vadd.xlane.f32.xlu2 %v4493_v23  ;;  %v4306_v23 = vsel %vm952_vm0, %v4289_v59, 0.0 }
 0xd3a   :  { %v6980_v4 = vpop.f32.mrf.mxu2  ;;  %v4105_v14 = vpop.f32.mrf.mxu3 }
 0xd3b   :  { %v3953_v5 = vpop.f32.mrf.mxu0  ;;  %v4468_v10 = vmul.f32 %v6924_v62, %v4105_v14 }
 0xd3c   :  { %v4148_v26 = vmul.f32 %v6855_v28, %v3953_v5 }
 0xd3d   :  { %v4499_v39 = vsel %vm952_vm0, %v4468_v10, 0.0 }
 0xd3e   :  { %4185 = vadd.xlane.f32.xlu1 %v4184_v9  ;;  %v4193_v34 = vsel %vm952_vm0, %v4148_v26, 0.0 }
 0xd3f   :  { %4182 = vadd.xlane.f32.xlu0 %v4181_v54  ;;  %4188 = vadd.xlane.f32.xlu2 %v4187_v60 }
 0xd42   :  { %v6988_v29 = vpop.xlane.xlu0 %4152  ;;  %v6990_v11 = vpop.f32.mrf.mxu2 }
 0xd43   :  { %v3955_v40 = vpop.f32.mrf.mxu0  ;;  %v4108_v63 = vpop.f32.mrf.mxu3 }
 0xd44   :  { %v4469_v21 = vmul.f32 %v6924_v62, %v4108_v63  ;;  %v4149_v24 = vmul.f32 %v6855_v28, %v3955_v40 }
 0xd46   :  { %4310 = vadd.xlane.f32.xlu1 %v4309_v7  ;;  %v4502_v18 = vsel %vm952_vm0, %v4469_v21, 0.0  ;;  %v4196_v45 = vsel %vm952_vm0, %v4149_v24, 0.0  ;;  %v4147_v7 = vmul.f32 %v6855_v28, %v6972_v16 }
 0xd47   :  { %4491 = vadd.xlane.f32.xlu0 %v4490_v27  ;;  %4497 = vadd.xlane.f32.xlu2 %v4496_v17 }
 0xd48   :  { %v4190_v63 = vsel %vm952_vm0, %v4147_v7, 0.0 }
 0xd49   :  { %v6996_v31 = vpop.xlane.xlu1 %4426  ;;  %v6998_v44 = vpop.xlane.xlu2 %4313 }
 0xd4a   :  { %v7002_v36 = vpop.xlane.xlu0 %4236  ;;  %v4045_v41 = vpop.f32.mrf.mxu2 }
 0xd4b   :  { %v7005_v55 = vpop.f32.mrf.mxu0  ;;  %v4110_v57 = vpop.f32.mrf.mxu3  ;;  %v4375_v5 = vmul.f32 %v6865_v15, %v4045_v41 }
 0xd4c   :  { %v4470_v26 = vmul.f32 %v6924_v62, %v4110_v57  ;;  %v4150_v20 = vmul.f32 %v6855_v28, %v7005_v55 }
 0xd4d   :  { %v4392_v14 = vsel %vm952_vm0, %v4375_v5, 0.0 }
 0xd4e   :  { %4194 = vadd.xlane.f32.xlu1 %v4193_v34  ;;  %v4505_v34 = vsel %vm952_vm0, %v4470_v26, 0.0  ;;  %v4199_v57 = vsel %vm952_vm0, %v4150_v20, 0.0 }
 0xd4f   :  { %4343 = vadd.xlane.f32.xlu0 %v4342_v37  ;;  %4500 = vadd.xlane.f32.xlu2 %v4499_v39 }
 0xd51   :  { %v7011_v47 = vpop.xlane.xlu1 %4155 }
 0xd52   :  { %v7015_v42 = vpop.xlane.xlu0 %4316  ;;  %v7017_v2 = vpop.xlane.xlu2 %4158 }
 0xd53   :  { %v3960_v56 = vpop.f32.mrf.mxu0  ;;  %v7019_v51 = vpop.f32.mrf.mxu2 }
 0xd54   :  { %v4203_v43 = vmul.f32 %v6859_v46, %v3960_v56  ;;  %v4113_v33 = vpop.f32.mrf.mxu3  ;;  %v4376_v55 = vmul.f32 %v6865_v15, %v7019_v51 }
 0xd55   :  { %v4471_v39 = vmul.f32 %v6924_v62, %v4113_v33 }
 0xd56   :  { %v4220_v61 = vsel %vm952_vm0, %v4203_v43, 0.0  ;;  %v4395_v5 = vsel %vm952_vm0, %v4376_v55, 0.0 }
 0xd57   :  { %4346 = vadd.xlane.f32.xlu0 %v4345_v48  ;;  %4503 = vadd.xlane.f32.xlu2 %v4502_v18  ;;  %v4389_v18 = vmul.f32 %v6865_v15, %v6893_v50 }
 0xd58   :  { %4221 = vadd.xlane.f32.xlu1 %v4220_v61  ;;  %v4508_v61 = vsel %vm952_vm0, %v4471_v39, 0.0 }
 0xd59   :  { %v7025_v58 = vpop.xlane.xlu1 %4239  ;;  %v4434_v59 = vsel %vm952_vm0, %v4389_v18, 0.0 }
 0xd5a   :  { %v7030_v0 = vpop.xlane.xlu0 %4245  ;;  %v7032_v1 = vpop.xlane.xlu2 %4242 }
 0xd5b   :  { %v7034_v13 = vpop.f32.mrf.mxu0  ;;  %v4050_v49 = vpop.f32.mrf.mxu2 }
 0xd5c   :  { %v4377_v30 = vmul.f32 %v6865_v15, %v4050_v49  ;;  %v4115_v8 = vpop.f32.mrf.mxu3 }
 0xd5e   :  { %v4398_v32 = vsel %vm952_vm0, %v4377_v30, 0.0  ;;  %v4472_v30 = vmul.f32 %v6924_v62, %v4115_v8 }
 0xd5f   :  { %4307 = vadd.xlane.f32.xlu0 %v4306_v23  ;;  %4197 = vadd.xlane.f32.xlu2 %v4196_v45 }
 0xd60   :  { %4399 = vadd.xlane.f32.xlu1 %v4398_v32  ;;  %v4511_v22 = vsel %vm952_vm0, %v4472_v30, 0.0 }
 0xd61   :  { %v7040_v3 = vpop.xlane.xlu1 %4429 }
 0xd62   :  { %v7045_v6 = vpop.xlane.xlu2 %4161  ;;  %v7047_v9 = vpop.xlane.xlu0 %4164 }
 0xd63   :  { %v3965_v54 = vpop.f32.mrf.mxu0  ;;  %v4053_v60 = vpop.f32.mrf.mxu2 }
 0xd64   :  { %v4378_v53 = vmul.f32 %v6865_v15, %v4053_v60  ;;  %v7063_v16 = vpop.f32.mrf.mxu3 }
 0xd66   :  { %v4401_v25 = vsel %vm952_vm0, %v4378_v53, 0.0 }
 0xd67   :  { %4349 = vadd.xlane.f32.xlu0 %v4348_v12  ;;  %4393 = vadd.xlane.f32.xlu2 %v4392_v14  ;;  %v4205_v12 = vmul.f32 %v6859_v46, %v3965_v54 }
 0xd68   :  { %4402 = vadd.xlane.f32.xlu1 %v4401_v25 }
 0xd69   :  { %v7053_v40 = vpop.xlane.xlu1 %4319 }
 0xd6a   :  { %v4323_v17 = vpop.xlane.xlu2 %4322  ;;  %v4326_v27 = vpop.xlane.xlu0 %4325 }
 0xd6b   :  { %v3968_v35 = vpop.f32.mrf.mxu0  ;;  %v4055_v41 = vpop.f32.mrf.mxu2 }
 0xd6c   :  { %v4206_v10 = vmul.f32 %v6859_v46, %v3968_v35  ;;  %v7078_v24 = vpop.f32.mrf.mxu3 }
 0xd6e   :  { %v4229_v37 = vsel %vm952_vm0, %v4206_v10, 0.0 }
 0xd6f   :  { %4191 = vadd.xlane.f32.xlu0 %v4190_v63  ;;  %4506 = vadd.xlane.f32.xlu2 %v4505_v34  ;;  %v4226_v63 = vsel %vm952_vm0, %v4205_v12, 0.0  ;;  %v4379_v34 = vmul.f32 %v6865_v15, %v4055_v41 }
 0xd70   :  { %4230 = vadd.xlane.f32.xlu1 %v4229_v37 }
 0xd71   :  { %v7065_v21 = vpop.xlane.xlu1 %4432 }
 0xd72   :  { %v7069_v56 = vpop.xlane.xlu2 %4251  ;;  %v7071_v43 = vpop.xlane.xlu0 %4254 }
 0xd73   :  { %v4058_v48 = vpop.f32.mrf.mxu2  ;;  %v3970_v41 = vpop.f32.mrf.mxu0 }
 0xd74   :  { %v7094_v60 = vpop.f32.mrf.mxu3 }
 0xd77   :  { %4509 = vadd.xlane.f32.xlu2 %v4508_v61  ;;  %4200 = vadd.xlane.f32.xlu0 %v4199_v57  ;;  %v4404_v57 = vsel %vm952_vm0, %v4379_v34, 0.0 }
 0xd78   :  { %4435 = vadd.xlane.f32.xlu1 %v4434_v59 }
 0xd79   :  { %v7080_v28 = vpop.xlane.xlu1 %4248 }
 0xd7a   :  { %v7084_v49 = vpop.xlane.xlu0 %4331  ;;  %v4171_v50 = vpop.xlane.xlu2 %4170 }
 0xd7b   :  { %v4277_v23 = vadd.f32 %v7025_v58, %v4171_v50  ;;  %v4060_v45 = vpop.f32.mrf.mxu2  ;;  %v4204_v58 = vmul.f32 %v6859_v46, %v7034_v13  ;;  %v4304_v50 = vmul.f32 %v6868_v52, %v6980_v4  ;;  %v4305_v4 = vmul.f32 %v6868_v52, %v6990_v11 }
 0xd7c   :  { %v4381_v33 = vmul.f32 %v6865_v15, %v4060_v45  ;;  %v4207_v45 = vmul.f32 %v6859_v46, %v3970_v41  ;;  %v4473_v46 = vmul.f32 %v6924_v62, %v7063_v16  ;;  %v4391_v16 = vmul.f32 %v6865_v15, %v6912_v38 }
 0xd7d   :  { %v7089_v32 = vadd.f32 %v4326_v27, %v4277_v23  ;;  %v4223_v10 = vsel %vm952_vm0, %v4204_v58, 0.0  ;;  %v4475_v38 = vmul.f32 %v6924_v62, %v7094_v60 }
 0xd7e   :  { %v4410_v51 = vsel %vm952_vm0, %v4381_v33, 0.0  ;;  %v4514_v52 = vsel %vm952_vm0, %v4473_v46, 0.0 }
 0xd7f   :  { %4512 = vadd.xlane.f32.xlu2 %v4511_v22  ;;  %4396 = vadd.xlane.f32.xlu0 %v4395_v5  ;;  %v4351_v5 = vsel %vm952_vm0, %v4304_v50, 0.0 }
 0xd80   :  { %4411 = vadd.xlane.f32.xlu1 %v4410_v51 }
 0xd81   :  { %v4168_v53 = vpop.xlane.xlu1 %4167 }
 0xd82   :  { %v4276_v14 = vadd.f32 %v7002_v36, %v4168_v53  ;;  %v7100_v25 = vpop.xlane.xlu2 %4479  ;;  %v4174_v8 = vpop.xlane.xlu0 %4173  ;;  %v4232_v53 = vsel %vm952_vm0, %v4207_v45, 0.0 }
 0xd83   :  { %v4278_v7 = vadd.f32 %v7032_v1, %v4174_v8  ;;  %v4063_v27 = vpop.f32.mrf.mxu2  ;;  %v7109_v36 = vpop.f32.mrf.mxu3  ;;  %v4380_v1 = vmul.f32 %v6865_v15, %v4058_v48 }
 0xd84   :  { %v4382_v26 = vmul.f32 %v6865_v15, %v4063_v27  ;;  %v7104_v35 = vadd.f32 %v4323_v17, %v4276_v14  ;;  %v4476_v41 = vmul.f32 %v6924_v62, %v7109_v36 }
 0xd85   :  { %v4407_v61 = vsel %vm952_vm0, %v4380_v1, 0.0  ;;  %v4390_v1 = vmul.f32 %v6865_v15, %v6904_v19 }
 0xd86   :  { %v4413_v13 = vsel %vm952_vm0, %v4382_v26, 0.0  ;;  %v4523_v19 = vsel %vm952_vm0, %v4476_v41, 0.0 }
 0xd87   :  { %4224 = vadd.xlane.f32.xlu2 %v4223_v10  ;;  %4227 = vadd.xlane.f32.xlu0 %v4226_v63 }
 0xd88   :  { %4414 = vadd.xlane.f32.xlu1 %v4413_v13 }
 0xd89   :  { %v4329_v54 = vpop.xlane.xlu1 %4328 }
 0xd8a   :  { %v7113_v37 = vadd.f32 %v4329_v54, %v4278_v7  ;;  %v7115_v17 = vpop.xlane.xlu2 %4260  ;;  %v7117_v39 = vpop.xlane.xlu0 %4482  ;;  %v4354_v54 = vsel %vm952_vm0, %v4305_v4, 0.0 }
 0xd8b   :  { %v4065_v20 = vpop.f32.mrf.mxu2  ;;  %v4128_v48 = vpop.f32.mrf.mxu3 }
 0xd8c   :  { %v4383_v18 = vmul.f32 %v6865_v15, %v4065_v20  ;;  %v4440_v20 = vsel %vm952_vm0, %v4391_v16, 0.0  ;;  %v4477_v50 = vmul.f32 %v6924_v62, %v4128_v48 }
 0xd8e   :  { %v4416_v59 = vsel %vm952_vm0, %v4383_v18, 0.0  ;;  %v4526_v36 = vsel %vm952_vm0, %v4477_v50, 0.0 }
 0xd8f   :  { %4408 = vadd.xlane.f32.xlu2 %v4407_v61  ;;  %4405 = vadd.xlane.f32.xlu0 %v4404_v57  ;;  %v4437_v61 = vsel %vm952_vm0, %v4390_v1, 0.0 }
 0xd90   :  { %4417 = vadd.xlane.f32.xlu1 %v4416_v59 }
 0xd91   :  { %v4258_v55 = vpop.xlane.xlu1 %4257 }
 0xd92   :  { %v7125_v30 = vpop.xlane.xlu2 %4485  ;;  %v4335_v23 = vpop.xlane.xlu0 %4334 }
 0xd93   :  { %v4068_v33 = vpop.f32.mrf.mxu2  ;;  %v4130_v58 = vpop.f32.mrf.mxu3 }
 0xd94   :  { %v4384_v22 = vmul.f32 %v6865_v15, %v4068_v33 }
 0xd96   :  { %v4419_v51 = vsel %vm952_vm0, %v4384_v22, 0.0 }
 0xd97   :  { %4352 = vadd.xlane.f32.xlu0 %v4351_v5  ;;  %4233 = vadd.xlane.f32.xlu2 %v4232_v53 }
 0xd98   :  { %4420 = vadd.xlane.f32.xlu1 %v4419_v51 }
 0xd99   :  { %v4177_v12 = vpop.xlane.xlu1 %4176 }
 0xd9a   :  { %v4279_v14 = vadd.f32 %v7030_v0, %v4177_v12  ;;  %v4338_v8 = vpop.xlane.xlu0 %4337  ;;  %v4180_v7 = vpop.xlane.xlu2 %4179 }
 0xd9b   :  { %v4280_v27 = vadd.f32 %v7080_v28, %v4180_v7  ;;  %v4070_v26 = vpop.f32.mrf.mxu2  ;;  %v4474_v28 = vmul.f32 %v6924_v62, %v7078_v24 }
 0xd9c   :  { %v4385_v10 = vmul.f32 %v6865_v15, %v4070_v26  ;;  %v7140_v63 = vadd.f32 %v7084_v49, %v4279_v14  ;;  %v4520_v15 = vsel %vm952_vm0, %v4475_v38, 0.0 }
 0xd9d   :  { %v7142_v13 = vadd.f32 %v4335_v23, %v4280_v27  ;;  %v4517_v18 = vsel %vm952_vm0, %v4474_v28, 0.0 }
 0xd9e   :  { %v4422_v11 = vsel %vm952_vm0, %v4385_v10, 0.0 }
 0xd9f   :  { %4355 = vadd.xlane.f32.xlu0 %v4354_v54  ;;  %4515 = vadd.xlane.f32.xlu2 %v4514_v52 }
 0xda0   :  { %4423 = vadd.xlane.f32.xlu1 %v4422_v11 }
 0xda1   :  { %v7147_v0 = vpop.xlane.xlu1 %4488 }
 0xda2   :  { %v4264_v49 = vpop.xlane.xlu0 %4263  ;;  %v7153_v34 = vpop.xlane.xlu2 %4269 }
 0xda7   :  { %4441 = vadd.xlane.f32.xlu0 %v4440_v20  ;;  %4518 = vadd.xlane.f32.xlu2 %v4517_v18 }
 0xda8   :  { %4438 = vadd.xlane.f32.xlu1 %v4437_v61 }
 0xda9   :  { %v4267_v57 = vpop.xlane.xlu1 %4266 }
 0xdaa   :  { %v4341_v24 = vpop.xlane.xlu0 %4340  ;;  %v7162_v59 = vpop.xlane.xlu2 %4494 }
 0xdaf   :  { %4521 = vadd.xlane.f32.xlu2 %v4520_v15 }
 0xdb0   :  { %4524 = vadd.xlane.f32.xlu1 %v4523_v19 }
 0xdb1   :  { %v4186_v23 = vpop.xlane.xlu1 %4185 }
 0xdb2   :  { %v4282_v45 = vadd.f32 %v7071_v43, %v4186_v23  ;;  %v4183_v33 = vpop.xlane.xlu0 %4182  ;;  %v4189_v22 = vpop.xlane.xlu2 %4188 }
 0xdb3   :  { %v4281_v60 = vadd.f32 %v7069_v56, %v4183_v33  ;;  %v4283_v5 = vadd.f32 %v4258_v55, %v4189_v22 }
 0xdb4   :  { %v7171_v51 = vadd.f32 %v4341_v24, %v4282_v45 }
 0xdb5   :  { %v7174_v53 = vadd.f32 %v4338_v8, %v4281_v60 }
 0xdb7   :  { %4527 = vadd.xlane.f32.xlu2 %v4526_v36 }
 0xdb9   :  { %v4311_v58 = vpop.xlane.xlu1 %4310 }
 0xdba   :  { %v7176_v12 = vpop.xlane.xlu0 %4491  ;;  %v4498_v4 = vpop.xlane.xlu2 %4497 }
 0xdc1   :  { %v4195_v62 = vpop.xlane.xlu1 %4194 }
 0xdc2   :  { %v4344_v48 = vpop.xlane.xlu0 %4343  ;;  %v4501_v46 = vpop.xlane.xlu2 %4500  ;;  %v7178_v43 = vadd.f32 %v4264_v49, %v4195_v62 }
 0xdc3   :  { %v7180_v14 = vadd.f32 %v4344_v48, %v4283_v5 }
 0xdca   :  { %v7182_v56 = vpop.xlane.xlu0 %4346  ;;  %v4504_v55 = vpop.xlane.xlu2 %4503 }
 0xdcb   :  { %v4222_v7 = vpop.xlane.xlu1 %4221 }
 0xdcc   :  { %v4271_v33 = vadd.f32 %v4222_v7, %v6988_v29 }
 0xdd2   :  { %v4308_v27 = vpop.xlane.xlu0 %4307  ;;  %v4198_v26 = vpop.xlane.xlu2 %4197 }
 0xdd3   :  { %v7184_v8 = vadd.f32 %v4267_v57, %v4198_v26  ;;  %v4400_v10 = vpop.xlane.xlu1 %4399  ;;  %v4357_v36 = vadd.f32 %v4308_v27, %v4271_v33 }
 0xdda   :  { %v7186_v54 = vpop.xlane.xlu0 %4349  ;;  %v4394_v52 = vpop.xlane.xlu2 %4393 }
 0xddb   :  { %v4403_v11 = vpop.xlane.xlu1 %4402 }
 0xde2   :  { %v7188_v16 = vpop.xlane.xlu0 %4191  ;;  %v7190_v28 = vpop.xlane.xlu2 %4506 }
 0xde3   :  { %v4231_v49 = vpop.xlane.xlu1 %4230 }
 0xdea   :  { %v7192_v1 = vpop.xlane.xlu2 %4509  ;;  %v7194_v20 = vpop.xlane.xlu0 %4200 }
 0xdeb   :  { %v7196_v18 = vpop.xlane.xlu1 %4435 }
 0xdf2   :  { %v7198_v61 = vpop.xlane.xlu2 %4512  ;;  %v4397_v57 = vpop.xlane.xlu0 %4396 }
 0xdf3   :  { %v4412_v38 = vpop.xlane.xlu1 %4411 }
 0xdf4   :  { %v4449_v24 = vadd.f32 %v4412_v38, %v7089_v32  ;;  %v4274_v32 = vadd.f32 %v4231_v49, %v7045_v6 }
 0xdf6   :  { %v7201_v41 = vadd.f32 %v4498_v4, %v4449_v24  ;;  %v4443_v4 = vadd.f32 %v4394_v52, %v4357_v36 }
 0xdfa   :  { %v4225_v15 = vpop.xlane.xlu2 %4224  ;;  %v4228_v19 = vpop.xlane.xlu0 %4227 }
 0xdfb   :  { %v4272_v50 = vadd.f32 %v4225_v15, %v7011_v47  ;;  %v4415_v23 = vpop.xlane.xlu1 %4414  ;;  %v4273_v60 = vadd.f32 %v4228_v19, %v7017_v2  ;;  %v7217_v2 = vadd.f32 %v7100_v25, %v4443_v4 }
 0xdfc   :  { %v4450_v45 = vadd.f32 %v4415_v23, %v7113_v37  ;;  %v4360_v37 = vadd.f32 %v7015_v42, %v4274_v32  ;;  %v4576_v32 = vmul.f32 %v7201_v41, %v7201_v41 }
 0xdfd   :  { %v4358_v22 = vadd.f32 %v4311_v58, %v4272_v50  ;;  %v4359_v48 = vadd.f32 %v6998_v44, %v4273_v60 }
 0xdfe   :  { %v7207_v5 = vadd.f32 %v4501_v46, %v4450_v45  ;;  %v4446_v7 = vadd.f32 %v4403_v11, %v4360_v37 }
 0xdff   :  { %v4444_v62 = vadd.f32 %v4397_v57, %v4358_v22  ;;  %v4445_v58 = vadd.f32 %v4400_v10, %v4359_v48 }
 0xe00   :  { %v7232_v10 = vadd.f32 %v7147_v0, %v4446_v7 }
 0xe01   :  { %v7212_v47 = vadd.f32 %v7117_v39, %v4444_v62  ;;  %v4570_v39 = vmul.f32 %v7217_v2, %v7217_v2  ;;  %v7228_v42 = vadd.f32 %v7125_v30, %v4445_v58 }
 0xe02   :  { %v4409_v26 = vpop.xlane.xlu2 %4408  ;;  %v4406_v44 = vpop.xlane.xlu0 %4405  ;;  %v4573_v19 = vmul.f32 %v7232_v10, %v7232_v10 }
 0xe03   :  { %v4418_v38 = vpop.xlane.xlu1 %4417  ;;  %v4571_v6 = vmul.f32 %v7212_v47, %v7212_v47  ;;  %v4548_v27 = vadd.f32 %v7212_v47, %v7217_v2  ;;  %v4572_v49 = vmul.f32 %v7228_v42, %v7228_v42  ;;  %v4448_v57 = vadd.f32 %v4409_v26, %v7104_v35 }
 0xe04   :  { %v4451_v29 = vadd.f32 %v4418_v38, %v7140_v63  ;;  %v4577_v38 = vmul.f32 %v7207_v5, %v7207_v5 }
 0xe05   :  { %v4587_v25 = vadd.f32 %v4571_v6, %v4570_v39  ;;  %v4549_v11 = vadd.f32 %v4548_v27, %v7228_v42  ;;  %v7242_v50 = vadd.f32 %v7162_v59, %v4448_v57 }
 0xe06   :  { %v7219_v46 = vadd.f32 %v4504_v55, %v4451_v29 }
 0xe07   :  { %v4588_v15 = vadd.f32 %v4587_v25, %v4572_v49  ;;  %v4575_v60 = vmul.f32 %v7242_v50, %v7242_v50 }
 0xe09   :  { %v4589_v33 = vadd.f32 %v4588_v15, %v4573_v19 }
 0xe0a   :  { %v4234_v63 = vpop.xlane.xlu2 %4233  ;;  %v4353_v23 = vpop.xlane.xlu0 %4352 }
 0xe0b   :  { %v4421_v52 = vpop.xlane.xlu1 %4420  ;;  %v4275_v55 = vadd.f32 %v4234_v63, %v7047_v9  ;;  %v4550_v9 = vadd.f32 %v4549_v11, %v7232_v10  ;;  %v4372_v49 = vadd.f32 %v4353_v23, %v7184_v8 }
 0xe0c   :  { %v4452_v59 = vadd.f32 %v4421_v52, %v7142_v13 }
 0xe0d   :  { %v4361_v24 = vadd.f32 %v7053_v40, %v4275_v55 }
 0xe0e   :  { %v7264_v37 = vadd.f32 %v7190_v28, %v4452_v59 }
 0xe0f   :  { %v4447_v30 = vadd.f32 %v4406_v44, %v4361_v24 }
 0xe11   :  { %v7246_v0 = vadd.f32 %v7176_v12, %v4447_v30  ;;  %v4284_v12 = vadd.f32 %v7115_v17, %v7188_v16  ;;  %v4454_v17 = vadd.f32 %v6996_v31, %v7171_v51  ;;  %v4579_v31 = vmul.f32 %v7264_v37, %v7264_v37 }
 0xe12   :  { %v4516_v45 = vpop.xlane.xlu2 %4515  ;;  %v4356_v27 = vpop.xlane.xlu0 %4355 }
 0xe13   :  { %v4551_v35 = vadd.f32 %v4550_v9, %v7246_v0  ;;  %v4574_v40 = vmul.f32 %v7246_v0, %v7246_v0  ;;  %v4424_v22 = vpop.xlane.xlu1 %4423  ;;  %v4370_v58 = vadd.f32 %v7182_v56, %v4284_v12  ;;  %v7277_v39 = vadd.f32 %v7198_v61, %v4454_v17 }
 0xe14   :  { %v4453_v48 = vadd.f32 %v4424_v22, %v7174_v53  ;;  %v4578_v53 = vmul.f32 %v7219_v46, %v7219_v46  ;;  %v4455_v56 = vadd.f32 %v7040_v3, %v7180_v14 }
 0xe15   :  { %v4552_v36 = vadd.f32 %v4551_v35, %v7242_v50  ;;  %v4590_v62 = vadd.f32 %v4589_v33, %v4574_v40  ;;  %v4456_v11 = vadd.f32 %v7065_v21, %v4370_v58  ;;  %v4581_v14 = vmul.f32 %v7277_v39, %v7277_v39 }
 0xe16   :  { %v7273_v6 = vadd.f32 %v7192_v1, %v4453_v48  ;;  %v4371_v1 = vadd.f32 %v7186_v54, %v7178_v43  ;;  %v7286_v25 = vadd.f32 %v4516_v45, %v4455_v56  ;;  %v4287_v45 = vadd.f32 %v7153_v34, %v7194_v20 }
 0xe17   :  { %v4591_v4 = vadd.f32 %v4590_v62, %v4575_v60  ;;  %v4553_v26 = vadd.f32 %v4552_v36, %v7201_v41 }
 0xe18   :  { %v4580_v61 = vmul.f32 %v7273_v6, %v7273_v6  ;;  %v4457_v3 = vadd.f32 %v7196_v18, %v4371_v1  ;;  %v4582_v24 = vmul.f32 %v7286_v25, %v7286_v25  ;;  %v4373_v22 = vadd.f32 %v4356_v27, %v4287_v45 }
 0xe19   :  { %v4554_v13 = vadd.f32 %v4553_v26, %v7207_v5  ;;  %v4592_v29 = vadd.f32 %v4591_v4, %v4576_v32 }
 0xe1a   :  { %v4519_v16 = vpop.xlane.xlu2 %4518  ;;  %v4442_v40 = vpop.xlane.xlu0 %4441 }
 0xe1b   :  { %v4555_v7 = vadd.f32 %v4554_v13, %v7219_v46  ;;  %v4593_v44 = vadd.f32 %v4592_v29, %v4577_v38  ;;  %v4439_v28 = vpop.xlane.xlu1 %4438  ;;  %v7297_v54 = vadd.f32 %v4519_v16, %v4456_v11  ;;  %v4459_v62 = vadd.f32 %v4442_v40, %v4373_v22 }
 0xe1c   :  { %v4458_v21 = vadd.f32 %v4439_v28, %v4372_v49 }
 0xe1d   :  { %v4556_v51 = vadd.f32 %v4555_v7, %v7264_v37  ;;  %v4594_v63 = vadd.f32 %v4593_v44, %v4578_v53  ;;  %v4583_v33 = vmul.f32 %v7297_v54, %v7297_v54 }
 0xe1f   :  { %v4557_v52 = vadd.f32 %v4556_v51, %v7273_v6  ;;  %v4595_v55 = vadd.f32 %v4594_v63, %v4579_v31 }
 0xe21   :  { %v4596_v57 = vadd.f32 %v4595_v55, %v4580_v61  ;;  %v4558_v43 = vadd.f32 %v4557_v52, %v7277_v39 }
 0xe22   :  { %v4522_v15 = vpop.xlane.xlu2 %4521 }
 0xe23   :  { %v4597_v30 = vadd.f32 %v4596_v57, %v4581_v14  ;;  %v4559_v19 = vadd.f32 %v4558_v43, %v7286_v25  ;;  %v4525_v9 = vpop.xlane.xlu1 %4524  ;;  %v7302_v18 = vadd.f32 %v4522_v15, %v4457_v3 }
 0xe24   :  { %v7309_v35 = vadd.f32 %v4525_v9, %v4458_v21 }
 0xe25   :  { %v4598_v8 = vadd.f32 %v4597_v30, %v4582_v24  ;;  %v4560_v23 = vadd.f32 %v4559_v19, %v7297_v54  ;;  %v4584_v36 = vmul.f32 %v7302_v18, %v7302_v18  ;;  %v5501_v24 = vld [vmem:[%s7417_s13 + $0xa] sm:$0x3] }
 0xe26   :  { %v4585_v34 = vmul.f32 %v7309_v35, %v7309_v35 }
 0xe27   :  { %v4599_v60 = vadd.f32 %v4598_v8, %v4583_v33  ;;  %v4561_v59 = vadd.f32 %v4560_v23, %v7302_v18 }
 0xe29   :  { %v4600_v20 = vadd.f32 %v4599_v60, %v4584_v36  ;;  %v4562_v12 = vadd.f32 %v4561_v59, %v7309_v35 }
 0xe2a   :  { %v4528_v32 = vpop.xlane.xlu2 %4527 }
 0xe2b   :  { %v4601_v4 = vadd.f32 %v4600_v20, %v4585_v34  ;;  %v4545_v48 = vadd.f32 %v4528_v32, %v4459_v62 }
 0xe2d   :  { %v4563_v26 = vadd.f32 %v4562_v12, %v4545_v48  ;;  %v4586_v38 = vmul.f32 %v4545_v48, %v4545_v48 }
 0xe2f   :  { %v4564_v13 = vrot.slane %v4563_v26, 4  ;;  %v4602_v29 = vadd.f32 %v4601_v4, %v4586_v38 }
 0xe31   :  { %v4565_v58 = vadd.f32 %v4564_v13, %v4563_v26  ;;  %v4603_v17 = vrot.slane %v4602_v29, 4 }
 0xe33   :  { %v4566_v16 = vrot.slane %v4565_v58, 2  ;;  %v4604_v53 = vadd.f32 %v4603_v17, %v4602_v29 }
 0xe35   :  { %v4567_v7 = vadd.f32 %v4566_v16, %v4565_v58  ;;  %v4605_v44 = vrot.slane %v4604_v53, 2 }
 0xe37   :  { %v4568_v28 = vrot.slane %v4567_v7, 1  ;;  %v4606_v27 = vadd.f32 %v4605_v44, %v4604_v53 }
 0xe39   :  { %v4569_v56 = vadd.f32 %v4568_v28, %v4567_v7  ;;  %v4607_v31 = vrot.slane %v4606_v27, 1 }
 0xe3b   :  { %v4608_v51 = vadd.f32 %v4607_v31, %v4606_v27  ;;  %v4609_v63 = vmul.f32 0.007352941, %v4569_v56 }
 0xe3d   :  { %v4610_v1 = vmul.f32 0.007352941, %v4608_v51  ;;  %v4611_v52 = vmul.f32 %v4609_v63, %v4609_v63 }
 0xe3f   :  { %v4612_v61 = vsub.f32 %v4610_v1, %v4611_v52 }
 0xe41   :  { %v4613_v55 = vmax.f32 %v4612_v61, 0.0 }
 0xe43   :  { %v4614_v11 = vadd.f32 1e-05, %v4613_v55 }
 0xe45   :  { %5710 = vrsqrt.f32 %v4614_v11  ;;  %vm4621_vm13 = vweird.f32 %v4614_v11 }
 0xe4b   :  { %v5711_v3 = vpop.eup %5710 }
 0xe4c   :  { %v4616_v14 = vmul.f32 %v5711_v3, %v4614_v11  ;;  %vm4622_vm0 = vweird.f32 %v5711_v3 }
 0xe4d   :  { %vm4623_vm14 = vmor %vm4621_vm13, %vm4622_vm0 }
 0xe4e   :  { %v4617_v49 = vmul.f32 %v5711_v3, %v4616_v14 }
 0xe50   :  { %v4618_v57 = vmul.f32 0.5, %v4617_v49 }
 0xe52   :  { %v4619_v43 = vsub.f32 1.5, %v4618_v57 }
 0xe54   :  { %v4620_v15 = vmul.f32 %v5711_v3, %v4619_v43 }
 0xe56   :  { %v4624_v30 = vsel %vm4623_vm14, %v5711_v3, %v4620_v15 }
 0xe57   :  { %v4625_v19 = vmul.f32 %v5501_v24, %v4624_v30 }
 0xe59   :  { %v4626_v21 = vmul.f32 %v4625_v19, %v4609_v63  ;;  %v4631_v9 = vperm.slane %v4625_v19, 0 }
 0xe5b   :  { %v4628_v45 = vrot.slane %v4626_v21, 7  ;;  %v4632_v8 = vmul.f32 %v4631_v9, %v7217_v2  ;;  %v4633_v23 = vmul.f32 %v4631_v9, %v7212_v47  ;;  %v4634_v33 = vmul.f32 %v4631_v9, %v7228_v42 }
 0xe5c   :  { %v4635_v22 = vmul.f32 %v4631_v9, %v7232_v10  ;;  %v4636_v60 = vmul.f32 %v4631_v9, %v7246_v0  ;;  %v4637_v59 = vmul.f32 %v4631_v9, %v7242_v50  ;;  %v4638_v36 = vmul.f32 %v4631_v9, %v7201_v41 }
 0xe5d   :  { %v4630_v40 = vsub.f32 %v5501_v24, %v4628_v45  ;;  %v4639_v62 = vmul.f32 %v4631_v9, %v7207_v5  ;;  %v4640_v34 = vmul.f32 %v4631_v9, %v7219_v46  ;;  %v4641_v20 = vmul.f32 %v4631_v9, %v7264_v37 }
 0xe5e   :  { %v4646_v2 = vmul.f32 %v4631_v9, %v7302_v18  ;;  %v4647_v47 = vmul.f32 %v4631_v9, %v7309_v35  ;;  %v4648_v42 = vmul.f32 %v4631_v9, %v4545_v48  ;;  %v4642_v10 = vmul.f32 %v4631_v9, %v7273_v6 }
 0xe5f   :  { %v4649_v12 = vperm.slane %v4630_v40, 1  ;;  %v4643_v0 = vmul.f32 %v4631_v9, %v7277_v39  ;;  %v4644_v50 = vmul.f32 %v4631_v9, %v7286_v25  ;;  %v4645_v41 = vmul.f32 %v4631_v9, %v7297_v54 }
 0xe61   :  { %v4650_v32 = vadd.f32 %v4649_v12, %v4632_v8  ;;  %v4651_v5 = vadd.f32 %v4649_v12, %v4633_v23  ;;  %v4652_v4 = vadd.f32 %v4649_v12, %v4634_v33  ;;  %v4653_v46 = vadd.f32 %v4649_v12, %v4635_v22 }
 0xe62   :  { %v4654_v26 = vadd.f32 %v4649_v12, %v4636_v60  ;;  %v4655_v37 = vadd.f32 %v4649_v12, %v4637_v59  ;;  %v4656_v38 = vadd.f32 %v4649_v12, %v4638_v36  ;;  %v4657_v18 = vadd.f32 %v4649_v12, %v4639_v62 }
 0xe63   :  { %v4658_v13 = vadd.f32 %v4649_v12, %v4640_v34  ;;  %v4659_v35 = vadd.f32 %v4649_v12, %v4641_v20  ;;  %v4660_v48 = vadd.f32 %v4649_v12, %v4642_v10  ;;  %v4661_v29 = vadd.f32 %v4649_v12, %v4643_v0 }
 0xe64   :  { %v4662_v58 = vadd.f32 %v4649_v12, %v4644_v50  ;;  %v4663_v6 = vadd.f32 %v4649_v12, %v4645_v41  ;;  %v4664_v17 = vadd.f32 %v4649_v12, %v4646_v2  ;;  %v4665_v39 = vadd.f32 %v4649_v12, %v4647_v47 }
 0xe65   :  { %v4666_v16 = vadd.f32 %v4649_v12, %v4648_v42  ;;  %v4667_v25 = vmax.f32 %v4650_v32, 0.0  ;;  %v4668_v53 = vmax.f32 %v4651_v5, 0.0  ;;  %v4669_v54 = vmax.f32 %v4652_v4, 0.0 }
 0xe66   :  { %v4670_v7 = vmax.f32 %v4653_v46, 0.0  ;;  %v4671_v44 = vmax.f32 %v4654_v26, 0.0  ;;  %v4672_v28 = vmax.f32 %v4655_v37, 0.0  ;;  %v4673_v27 = vmax.f32 %v4656_v38, 0.0 }
 0xe67   :  { %4685 = vst.msk [vmem:[%s7418_s14] sm:$0xff] %vm4684_vm15, %v4667_v25  ;;  %v4674_v56 = vmax.f32 %v4657_v18, 0.0  ;;  %v4675_v31 = vmax.f32 %v4658_v13, 0.0  ;;  %v4676_v51 = vmax.f32 %v4659_v35, 0.0  ;;  %v4677_v63 = vmax.f32 %v4660_v48, 0.0 }
 0xe68   :  { %4686 = vst.msk [vmem:[%s7418_s14 + $0x8] sm:$0xff] %vm4684_vm15, %v4668_v53  ;;  %v4678_v1 = vmax.f32 %v4661_v29, 0.0  ;;  %v4679_v52 = vmax.f32 %v4662_v58, 0.0  ;;  %v4680_v61 = vmax.f32 %v4663_v6, 0.0  ;;  %v4681_v55 = vmax.f32 %v4664_v17, 0.0 }
 0xe69   :  { %4687 = vst.msk [vmem:[%s7418_s14 + $0x10] sm:$0xff] %vm4684_vm15, %v4669_v54  ;;  %v4682_v11 = vmax.f32 %v4665_v39, 0.0  ;;  %v4683_v3 = vmax.f32 %v4666_v16, 0.0 }
 0xe6a   :  { %4688 = vst.msk [vmem:[%s7418_s14 + $0x18] sm:$0xff] %vm4684_vm15, %v4670_v7 }
 0xe6b   :  { %4689 = vst.msk [vmem:[%s7418_s14 + $0x20] sm:$0xff] %vm4684_vm15, %v4671_v44 }
 0xe6c   :  { %4690 = vst.msk [vmem:[%s7418_s14 + $0x28] sm:$0xff] %vm4684_vm15, %v4672_v28 }
 0xe6d   :  { %4691 = vst.msk [vmem:[%s7418_s14 + $0x30] sm:$0xff] %vm4684_vm15, %v4673_v27 }
 0xe6e   :  { %4692 = vst.msk [vmem:[%s7418_s14 + $0x38] sm:$0xff] %vm4684_vm15, %v4674_v56 }
 0xe6f   :  { %4693 = vst.msk [vmem:[%s7418_s14 + $0x40] sm:$0xff] %vm4684_vm15, %v4675_v31 }
 0xe70   :  { %4694 = vst.msk [vmem:[%s7418_s14 + $0x48] sm:$0xff] %vm4684_vm15, %v4676_v51 }
 0xe71   :  { %4695 = vst.msk [vmem:[%s7418_s14 + $0x50] sm:$0xff] %vm4684_vm15, %v4677_v63 }
 0xe72   :  { %4696 = vst.msk [vmem:[%s7418_s14 + $0x58] sm:$0xff] %vm4684_vm15, %v4678_v1 }
 0xe73   :  { %4697 = vst.msk [vmem:[%s7418_s14 + $0x60] sm:$0xff] %vm4684_vm15, %v4679_v52 }
 0xe74   :  { %4698 = vst.msk [vmem:[%s7418_s14 + $0x68] sm:$0xff] %vm4684_vm15, %v4680_v61 }
 0xe75   :  { %4699 = vst.msk [vmem:[%s7418_s14 + $0x70] sm:$0xff] %vm4684_vm15, %v4681_v55 }
 0xe76   :  { %4700 = vst.msk [vmem:[%s7418_s14 + $0x78] sm:$0xff] %vm4684_vm15, %v4682_v11 }
 0xe77   :  { %4701 = vst.msk [vmem:[%s7418_s14 + $0x80] sm:$0xff] %vm4684_vm15, %v4683_v3 }
 0xe78   :  { %4706 = vsyncpa [#allocation3], 1 }
 0xe79   :  { %4707 = vsyncpa [#allocation5], 1 }
 0xe7a   :  { %4708 = vsyncpa [#allocation8], 1 }
 0xe7b   :  { %4709 = vsyncpa [#allocation11], 1 }
 0xe7c   :  { %4710 = vsyncpa [#allocation14], 1 }
 0xe7d   :  { %4711 = vsyncpa [#allocation17], 1 }

</bundles_post_ra>
